<compile_context>
chip_gen: v7x
topology: tpu7x:2x2x1
jax: 0.10.0
libtpu: 0.0.40
codegen_flags: <defaults>
</compile_context>

<pallas_src>
import functools

import jax
import jax.numpy as jnp
from jax.experimental import pallas as pl
from jax.experimental.pallas import tpu as pltpu


def _round_up(x, m):
    return (x + m - 1) // m * m


# ------------------------------- fused kernel --------------------------------

def _bottleneck_kernel(x_ref, w1_ref, b1_ref, w2_ref, b2_ref, w3_ref, b3_ref,
                       o_ref, y1_ref, patch_ref, *, bh, W):
    # x_ref:     (1, H*W, Cin)      bf16  whole image, resident across row tiles
    # w1_ref:    (Cin, Cmid)        bf16  (BN1 scale folded in), b1: (1, Cmid) f32
    # w2_ref:    (9*Cmid, Cmid)     bf16  rows ordered (kh, kw, ci), BN2 folded in
    # w3_ref:    (Cmid, Cout)       bf16  BN3 folded in
    # o_ref:     (1, bh*W, Cout)    bf16
    # y1_ref:    (bh+2, W+2, Cmid)  bf16  scratch: stage-1 output + 3x3 halo
    # patch_ref: (bh*W, 9*Cmid)     bf16  scratch: per-tile im2col patches
    r = pl.program_id(1)
    n_row_blocks = pl.num_programs(1)
    cmid = w1_ref.shape[1]
    row0 = r * bh                                   # first output row of this tile

    # ---- stage 1: 1x1 conv (+folded bn1) + ReLU into a haloed VMEM scratch ----
    # Zeroing the scratch realizes the 3x3 zero padding (halo) entirely in-kernel.
    y1_ref[...] = jnp.zeros_like(y1_ref)

    def stage1_rows(first_img_row, n_rows, dst_plane):
        start = pl.multiple_of(first_img_row * W, W)
        xt = x_ref[0, pl.ds(start, n_rows * W), :]                    # (n*W, Cin)
        y = jnp.dot(xt, w1_ref[...], preferred_element_type=jnp.float32)
        y = jnp.maximum(y + b1_ref[...], 0.0).astype(y1_ref.dtype)
        y1_ref[pl.ds(dst_plane, n_rows), pl.ds(1, W), :] = y.reshape(n_rows, W, cmid)

    stage1_rows(row0, bh, 1)                        # the tile's own rows

    @pl.when(r > 0)                                 # halo row above (zero at image top)
    def _():
        stage1_rows(row0 - 1, 1, 0)

    @pl.when(r < n_row_blocks - 1)                  # halo row below (zero at bottom)
    def _():
        stage1_rows(row0 + bh, 1, bh + 1)

    # ---- stage 2: 3x3 conv (+folded bn2) + ReLU, per-tile im2col in VMEM ------
    # 9 small static-offset window copies into the patches scratch, then ONE
    # MXU matmul with a 9*Cmid-wide contraction (fills v6e/v7x 256-wide MXU K).
    for k in range(9):
        dh, dw = divmod(k, 3)
        win = y1_ref[dh:dh + bh, dw:dw + W, :]                        # (bh, W, Cmid)
        patch_ref[:, k * cmid:(k + 1) * cmid] = win.reshape(bh * W, cmid)

    y2 = jnp.dot(patch_ref[...], w2_ref[...], preferred_element_type=jnp.float32)
    y2 = jnp.maximum(y2 + b2_ref[...], 0.0).astype(jnp.bfloat16)

    # ---- stage 3: 1x1 conv (+folded bn3) + residual add + ReLU ----------------
    rstart = pl.multiple_of(row0 * W, bh * W)
    resid = x_ref[0, pl.ds(rstart, bh * W), :].astype(jnp.float32)    # identity tile
    y3 = jnp.dot(y2, w3_ref[...], preferred_element_type=jnp.float32)
    o_ref[0] = jnp.maximum(y3 + b3_ref[...] + resid, 0.0).astype(o_ref.dtype)


# ------------------------------ kernel wrapper --------------------------------

def conv_block_forward(x_nchw, p, *, cout, stride=1, block_h=8):
    """ResNet bottleneck ConvBlock forward (downsample=None, stride=1)."""
    assert stride == 1, "downsample=None requires stride == 1"
    N, Cin, H, W = x_nchw.shape
    cin_p, cmid_p = p["w1"].shape
    cout_p = p["w3"].shape[1]
    assert Cin == cout and cin_p == cout_p, \
        "residual add requires in_channels == out_channels * expansion"
    assert W % 8 == 0, "kernel assumes W is a multiple of the sublane tile (8)"

    bh = block_h if H % block_h == 0 else H
    n_row_blocks = H // bh

    # NHWC, bf16, channel-pad to the lane width (pad done in bf16, not f32).
    x = jnp.transpose(x_nchw, (0, 2, 3, 1)).astype(jnp.bfloat16)
    if cin_p != Cin:
        x = jnp.pad(x, ((0, 0), (0, 0), (0, 0), (0, cin_p - Cin)))
    x_flat = x.reshape(N, H * W, cin_p)

    flops = 2 * N * H * W * (cin_p * cmid_p + 9 * cmid_p * cmid_p + cmid_p * cout_p)
    bytes_accessed = (x_flat.size * 2
                      + (p["w1"].size + p["w2"].size + p["w3"].size) * 2
                      + (p["b1"].size + p["b2"].size + p["b3"].size) * 4
                      + N * H * W * cout_p * 2)
    cost = pl.CostEstimate(flops=int(flops), transcendentals=0,
                           bytes_accessed=int(bytes_accessed))

    # Explicit scoped-VMEM budget computed from the tiles (double-buffered blocks
    # + scratch), with headroom; important on v5e (16 MiB default) and v7x (64 MiB
    # physical).
    blk_bytes = 2 * (H * W * cin_p * 2 + bh * W * cout_p * 2
                     + (cin_p * cmid_p + 9 * cmid_p * cmid_p + cmid_p * cout_p) * 2
                     + (2 * cmid_p + cout_p) * 4)
    scratch_bytes = (bh + 2) * (W + 2) * cmid_p * 2 + bh * W * 9 * cmid_p * 2
    vmem_limit = int(min(max(4 * (blk_bytes + scratch_bytes), 32 << 20), 64 << 20))

    out_flat = pl.pallas_call(
        functools.partial(_bottleneck_kernel, bh=bh, W=W),
        out_shape=jax.ShapeDtypeStruct((N, H * W, cout_p), jnp.bfloat16),
        grid=(N, n_row_blocks),
        in_specs=[
            # Whole image per batch element; index constant over the row-tile
            # axis so it is DMA'd once per image and stays resident in VMEM.
            pl.BlockSpec((1, H * W, cin_p), lambda n, r: (n, 0, 0)),
            # Resident weights / biases (constant index maps).
            pl.BlockSpec((cin_p, cmid_p), lambda n, r: (0, 0)),
            pl.BlockSpec((1, cmid_p), lambda n, r: (0, 0)),
            pl.BlockSpec((9 * cmid_p, cmid_p), lambda n, r: (0, 0)),
            pl.BlockSpec((1, cmid_p), lambda n, r: (0, 0)),
            pl.BlockSpec((cmid_p, cout_p), lambda n, r: (0, 0)),
            pl.BlockSpec((1, cout_p), lambda n, r: (0, 0)),
        ],
        out_specs=pl.BlockSpec((1, bh * W, cout_p), lambda n, r: (n, r, 0)),
        scratch_shapes=[
            pltpu.VMEM((bh + 2, W + 2, cmid_p), jnp.bfloat16),   # haloed stage-1 out
            pltpu.VMEM((bh * W, 9 * cmid_p), jnp.bfloat16),      # im2col patches
        ],
        compiler_params=pltpu.CompilerParams(
            dimension_semantics=("parallel", "parallel"),
            vmem_limit_bytes=vmem_limit),
        cost_estimate=cost,
    )(x_flat, p["w1"], p["b1"], p["w2"], p["b2"], p["w3"], p["b3"])

    out = out_flat.reshape(N, H, W, cout_p)[..., :cout]
    return jnp.transpose(out, (0, 3, 1, 2)).astype(jnp.float32)       # back to NCHW


# ------------------------------- parameters ----------------------------------

def make_params(in_channels, out_channels, expansion=4, seed=0):
    """Raw PyTorch-equivalent parameters (f32) for ConvBlock."""
    keys = jax.random.split(jax.random.PRNGKey(seed), 6)
    cmid = out_channels
    cout = out_channels * expansion

    w1_oihw = 0.1 * jax.random.normal(keys[0], (cmid, in_channels, 1, 1), jnp.float32)
    w1 = w1_oihw[:, :, 0, 0].T                                  # (Cin, Cmid)
    w2_oihw = 0.1 * jax.random.normal(keys[1], (cmid, cmid, 3, 3), jnp.float32)
    w2 = jnp.transpose(w2_oihw, (2, 3, 1, 0))                   # (kh, kw, Ci, Co)
    w3_oihw = 0.1 * jax.random.normal(keys[2], (cout, cmid, 1, 1), jnp.float32)
    w3 = w3_oihw[:, :, 0, 0].T                                  # (Cmid, Cout)

    def bn_params(key, c):
        k1, k2, k3, k4 = jax.random.split(key, 4)
        gamma = 1.0 + 0.1 * jax.random.normal(k1, (c,), jnp.float32)
        beta = 0.1 * jax.random.normal(k2, (c,), jnp.float32)
        mean = 0.1 * jax.random.normal(k3, (c,), jnp.float32)
        var = 1.0 + 0.1 * jnp.abs(jax.random.normal(k4, (c,), jnp.float32))
        return (gamma, beta, mean, var)

    return {"w1": w1, "w2": w2, "w3": w3,
            "bn1": bn_params(keys[3], cmid),
            "bn2": bn_params(keys[4], cmid),
            "bn3": bn_params(keys[5], cout)}


def prepare_params(raw, eps=1e-5):
    """Fold BN scale into weights, pad channels to 128 multiples, cast to bf16."""
    def fold(w, bn):
        g, b, m, v = bn
        scale = g / jnp.sqrt(v + eps)
        return w * scale, b - m * scale            # scale folds into output columns

    w1, b1 = fold(raw["w1"], raw["bn1"])           # (Cin, Cmid)
    w2, b2 = fold(raw["w2"], raw["bn2"])           # (3, 3, Cmid, Cmid)
    w3, b3 = fold(raw["w3"], raw["bn3"])           # (Cmid, Cout)

    cin, cmid = w1.shape
    cout = w3.shape[1]
    cin_p, cmid_p, cout_p = (_round_up(c, 128) for c in (cin, cmid, cout))

    def pad2(w, rp, cp):
        return jnp.pad(w, ((0, rp - w.shape[0]), (0, cp - w.shape[1]))).astype(jnp.bfloat16)

    def padb(b, cp):
        return jnp.pad(b, (0, cp - b.shape[0])).reshape(1, cp).astype(jnp.float32)

    w2p = jnp.pad(w2, ((0, 0), (0, 0), (0, cmid_p - cmid), (0, cmid_p - cmid)))
    w2p = w2p.reshape(9 * cmid_p, cmid_p).astype(jnp.bfloat16)   # rows = (kh, kw, ci)
    return {
        "w1": pad2(w1, cin_p, cmid_p), "b1": padb(b1, cmid_p),
        "w2": w2p, "b2": padb(b2, cmid_p),
        "w3": pad2(w3, cmid_p, cout_p), "b3": padb(b3, cout_p),
    }


# --------------------------- pure-JAX f32 reference ---------------------------

def reference_forward(x_nchw, raw, stride=1, eps=1e-5):
    hp = jax.lax.Precision.HIGHEST
    x = jnp.transpose(x_nchw, (0, 2, 3, 1)).astype(jnp.float32)
    identity = x

    def bn(y, pbn):
        g, b, m, v = pbn
        return (y - m) / jnp.sqrt(v + eps) * g + b

    y = jax.nn.relu(bn(jnp.einsum("nhwc,cd->nhwd", x, raw["w1"], precision=hp),
                       raw["bn1"]))
    H, W = y.shape[1], y.shape[2]
    Ho = (H + 2 - 3) // stride + 1
    Wo = (W + 2 - 3) // stride + 1
    yp = jnp.pad(y, ((0, 0), (1, 1), (1, 1), (0, 0)))
    acc = jnp.zeros((y.shape[0], Ho, Wo, raw["w2"].shape[3]), jnp.float32)
    for dh in range(3):
        for dw in range(3):
            win = yp[:, dh:dh + (Ho - 1) * stride + 1:stride,
                     dw:dw + (Wo - 1) * stride + 1:stride, :]
            acc = acc + jnp.einsum("nhwc,cd->nhwd", win, raw["w2"][dh, dw], precision=hp)
    y = jax.nn.relu(bn(acc, raw["bn2"]))
    y = bn(jnp.einsum("nhwc,cd->nhwd", y, raw["w3"], precision=hp), raw["bn3"])
    out = jax.nn.relu(y + identity)
    return jnp.transpose(out, (0, 3, 1, 2))


# ---------------------------------- driver ------------------------------------

if __name__ == "__main__":
    # Residual with downsample=None requires in_channels == out_channels*expansion.
    batch, out_channels, expansion, spatial = 2, 4, 4, 16
    in_channels = out_channels * expansion   # 16

    x = jax.random.normal(jax.random.PRNGKey(0),
                          (batch, in_channels, spatial, spatial), jnp.float32)

    raw = make_params(in_channels, out_channels, expansion, seed=0)
    params = prepare_params(raw)

    fwd = jax.jit(functools.partial(conv_block_forward,
                                    cout=out_channels * expansion, stride=1))
    out = jax.block_until_ready(fwd(x, params))

    assert out.shape == (batch, out_channels * expansion, spatial, spatial)
    assert bool(jnp.all(jnp.isfinite(out)))
    assert bool(jnp.all(out >= 0.0))          # final ReLU

    ref = reference_forward(x, raw, stride=1)
    max_err = float(jnp.max(jnp.abs(out - ref)))
    assert max_err < 1e-1, f"mismatch vs f32 reference: max abs err {max_err}"

    print("KERNEL_OK")
</pallas_src>

<mosaic_0001>
module attributes {stable_mosaic.version = 11 : i64} {
  func.func @_bottleneck_kernel(%arg0: i32, %arg1: i32, %arg2: memref<1x256x128xbf16, #tpu.memory_space<vmem>>, %arg3: memref<128x128xbf16, #tpu.memory_space<vmem>>, %arg4: memref<1x128xf32, #tpu.memory_space<vmem>>, %arg5: memref<1152x128xbf16, #tpu.memory_space<vmem>>, %arg6: memref<1x128xf32, #tpu.memory_space<vmem>>, %arg7: memref<128x128xbf16, #tpu.memory_space<vmem>>, %arg8: memref<1x128xf32, #tpu.memory_space<vmem>>, %arg9: memref<1x128x128xbf16, #tpu.memory_space<vmem>>, %arg10: memref<10x18x128xbf16, #tpu.memory_space<vmem>>, %arg11: memref<128x1152xbf16, #tpu.memory_space<vmem>>) attributes {dimension_semantics = [#tpu.dimension_semantics<parallel>, #tpu.dimension_semantics<parallel>], iteration_bounds = array<i64: 2, 2>, scalar_prefetch = 0 : i64, scratch_operands = 2 : i64, tpu.core_type = #tpu.core_type<tc>, window_params = [{transform_indices = @transform_0, window_bounds = array<i64: 1, 256, 128>}, {pipeline_mode = #tpu.pipeline_mode<synchronous>, transform_indices = @transform_1, window_bounds = array<i64: 128, 128>}, {pipeline_mode = #tpu.pipeline_mode<synchronous>, transform_indices = @transform_2, window_bounds = array<i64: 1, 128>}, {pipeline_mode = #tpu.pipeline_mode<synchronous>, transform_indices = @transform_3, window_bounds = array<i64: 1152, 128>}, {pipeline_mode = #tpu.pipeline_mode<synchronous>, transform_indices = @transform_4, window_bounds = array<i64: 1, 128>}, {pipeline_mode = #tpu.pipeline_mode<synchronous>, transform_indices = @transform_5, window_bounds = array<i64: 128, 128>}, {pipeline_mode = #tpu.pipeline_mode<synchronous>, transform_indices = @transform_6, window_bounds = array<i64: 1, 128>}, {transform_indices = @transform_7, window_bounds = array<i64: 1, 128, 128>}]} {
    %c8_i32 = arith.constant 8 : i32
    %0 = arith.muli %arg1, %c8_i32 : i32
    %cst = arith.constant 0.000000e+00 : bf16
    %1 = vector.broadcast %cst : bf16 to vector<10x18x128xbf16>
    %c0 = arith.constant 0 : index
    %c0_0 = arith.constant 0 : index
    %c0_1 = arith.constant 0 : index
    %2 = vector.load %arg10[%c0, %c0_0, %c0_1] : memref<10x18x128xbf16, #tpu.memory_space<vmem>>, vector<10x18x128xbf16>
    tpu.vector_store %arg10[%c0, %c0_0, %c0_1], %1 {strides = array<i32>} : memref<10x18x128xbf16, #tpu.memory_space<vmem>>, vector<10x18x128xbf16>,
    %c16_i32 = arith.constant 16 : i32
    %3 = arith.muli %0, %c16_i32 : i32
    %4 = tpu.assume_multiple %3, 16 : i32
    %c0_2 = arith.constant 0 : index
    %5 = arith.index_cast %4 : i32 to index
    %c0_3 = arith.constant 0 : index
    %6 = vector.load %arg2[%c0_2, %5, %c0_3] : memref<1x256x128xbf16, #tpu.memory_space<vmem>>, vector<1x128x128xbf16>
    %7 = vector.shape_cast %6 : vector<1x128x128xbf16> to vector<128x128xbf16>
    %c0_4 = arith.constant 0 : index
    %c0_5 = arith.constant 0 : index
    %8 = vector.load %arg3[%c0_4, %c0_5] : memref<128x128xbf16, #tpu.memory_space<vmem>>, vector<128x128xbf16>
    %cst_6 = arith.constant dense<0.000000e+00> : vector<128x128xf32>
    %9 = tpu.matmul %7, %8, %cst_6 {dimension_numbers = #tpu.dot_dimension_numbers<[1], [0], [0], [1], [0, 0, 1, 1], [], []>} : vector<128x128xbf16>, vector<128x128xbf16>, vector<128x128xf32> -> vector<128x128xf32>
    %c0_7 = arith.constant 0 : index
    %c0_8 = arith.constant 0 : index
    %10 = vector.load %arg4[%c0_7, %c0_8] : memref<1x128xf32, #tpu.memory_space<vmem>>, vector<1x128xf32>
    %11 = vector.broadcast %10 : vector<1x128xf32> to vector<128x128xf32>
    %12 = arith.addf %9, %11 : vector<128x128xf32>
    %cst_9 = arith.constant 0.000000e+00 : f32
    %13 = vector.broadcast %cst_9 : f32 to vector<128x128xf32>
    %14 = arith.maximumf %12, %13 : vector<128x128xf32>
    %15 = arith.truncf %14 : vector<128x128xf32> to vector<128x128xbf16>
    %16 = vector.shape_cast %15 : vector<128x128xbf16> to vector<8x16x128xbf16>
    %c1 = arith.constant 1 : index
    %c1_10 = arith.constant 1 : index
    %c0_11 = arith.constant 0 : index
    %17 = vector.load %arg10[%c1, %c1_10, %c0_11] : memref<10x18x128xbf16, #tpu.memory_space<vmem>>, vector<8x16x128xbf16>
    tpu.vector_store %arg10[%c1, %c1_10, %c0_11], %16 {strides = array<i32>} : memref<10x18x128xbf16, #tpu.memory_space<vmem>>, vector<8x16x128xbf16>,
    %c0_i32 = arith.constant 0 : i32
    %18 = arith.cmpi sgt, %arg1, %c0_i32 : i32
    %19 = arith.extui %18 : i1 to i32
    %c0_i32_12 = arith.constant 0 : i32
    %20 = arith.cmpi ne, %19, %c0_i32_12 : i32
    scf.if %20 {
      %c1_i32_70 = arith.constant 1 : i32
      %78 = arith.subi %0, %c1_i32_70 : i32
      %c16_i32_71 = arith.constant 16 : i32
      %79 = arith.muli %78, %c16_i32_71 : i32
      %80 = tpu.assume_multiple %79, 16 : i32
      %c0_72 = arith.constant 0 : index
      %81 = arith.index_cast %80 : i32 to index
      %c0_73 = arith.constant 0 : index
      %82 = vector.load %arg2[%c0_72, %81, %c0_73] : memref<1x256x128xbf16, #tpu.memory_space<vmem>>, vector<1x16x128xbf16>
      %83 = vector.shape_cast %82 : vector<1x16x128xbf16> to vector<16x128xbf16>
      %c0_74 = arith.constant 0 : index
      %c0_75 = arith.constant 0 : index
      %84 = vector.load %arg3[%c0_74, %c0_75] : memref<128x128xbf16, #tpu.memory_space<vmem>>, vector<128x128xbf16>
      %cst_76 = arith.constant dense<0.000000e+00> : vector<16x128xf32>
      %85 = tpu.matmul %83, %84, %cst_76 {dimension_numbers = #tpu.dot_dimension_numbers<[1], [0], [0], [1], [0, 0, 1, 1], [], []>} : vector<16x128xbf16>, vector<128x128xbf16>, vector<16x128xf32> -> vector<16x128xf32>
      %c0_77 = arith.constant 0 : index
      %c0_78 = arith.constant 0 : index
      %86 = vector.load %arg4[%c0_77, %c0_78] : memref<1x128xf32, #tpu.memory_space<vmem>>, vector<1x128xf32>
      %87 = vector.broadcast %86 : vector<1x128xf32> to vector<16x128xf32>
      %88 = arith.addf %85, %87 : vector<16x128xf32>
      %cst_79 = arith.constant 0.000000e+00 : f32
      %89 = vector.broadcast %cst_79 : f32 to vector<16x128xf32>
      %90 = arith.maximumf %88, %89 : vector<16x128xf32>
      %91 = arith.truncf %90 : vector<16x128xf32> to vector<16x128xbf16>
      %92 = vector.shape_cast %91 : vector<16x128xbf16> to vector<1x16x128xbf16>
      %c0_80 = arith.constant 0 : index
      %c1_81 = arith.constant 1 : index
      %c0_82 = arith.constant 0 : index
      %93 = vector.load %arg10[%c0_80, %c1_81, %c0_82] : memref<10x18x128xbf16, #tpu.memory_space<vmem>>, vector<1x16x128xbf16>
      tpu.vector_store %arg10[%c0_80, %c1_81, %c0_82], %92 {strides = array<i32>} : memref<10x18x128xbf16, #tpu.memory_space<vmem>>, vector<1x16x128xbf16>,
    } else {
    }
    %c1_i32 = arith.constant 1 : i32
    %21 = arith.cmpi slt, %arg1, %c1_i32 : i32
    %22 = arith.extui %21 : i1 to i32
    %c0_i32_13 = arith.constant 0 : i32
    %23 = arith.cmpi ne, %22, %c0_i32_13 : i32
    scf.if %23 {
      %c8_i32_70 = arith.constant 8 : i32
      %78 = arith.addi %0, %c8_i32_70 : i32
      %c16_i32_71 = arith.constant 16 : i32
      %79 = arith.muli %78, %c16_i32_71 : i32
      %80 = tpu.assume_multiple %79, 16 : i32
      %c0_72 = arith.constant 0 : index
      %81 = arith.index_cast %80 : i32 to index
      %c0_73 = arith.constant 0 : index
      %82 = vector.load %arg2[%c0_72, %81, %c0_73] : memref<1x256x128xbf16, #tpu.memory_space<vmem>>, vector<1x16x128xbf16>
      %83 = vector.shape_cast %82 : vector<1x16x128xbf16> to vector<16x128xbf16>
      %c0_74 = arith.constant 0 : index
      %c0_75 = arith.constant 0 : index
      %84 = vector.load %arg3[%c0_74, %c0_75] : memref<128x128xbf16, #tpu.memory_space<vmem>>, vector<128x128xbf16>
      %cst_76 = arith.constant dense<0.000000e+00> : vector<16x128xf32>
      %85 = tpu.matmul %83, %84, %cst_76 {dimension_numbers = #tpu.dot_dimension_numbers<[1], [0], [0], [1], [0, 0, 1, 1], [], []>} : vector<16x128xbf16>, vector<128x128xbf16>, vector<16x128xf32> -> vector<16x128xf32>
      %c0_77 = arith.constant 0 : index
      %c0_78 = arith.constant 0 : index
      %86 = vector.load %arg4[%c0_77, %c0_78] : memref<1x128xf32, #tpu.memory_space<vmem>>, vector<1x128xf32>
      %87 = vector.broadcast %86 : vector<1x128xf32> to vector<16x128xf32>
      %88 = arith.addf %85, %87 : vector<16x128xf32>
      %cst_79 = arith.constant 0.000000e+00 : f32
      %89 = vector.broadcast %cst_79 : f32 to vector<16x128xf32>
      %90 = arith.maximumf %88, %89 : vector<16x128xf32>
      %91 = arith.truncf %90 : vector<16x128xf32> to vector<16x128xbf16>
      %92 = vector.shape_cast %91 : vector<16x128xbf16> to vector<1x16x128xbf16>
      %c9 = arith.constant 9 : index
      %c1_80 = arith.constant 1 : index
      %c0_81 = arith.constant 0 : index
      %93 = vector.load %arg10[%c9, %c1_80, %c0_81] : memref<10x18x128xbf16, #tpu.memory_space<vmem>>, vector<1x16x128xbf16>
      tpu.vector_store %arg10[%c9, %c1_80, %c0_81], %92 {strides = array<i32>} : memref<10x18x128xbf16, #tpu.memory_space<vmem>>, vector<1x16x128xbf16>,
    } else {
    }
    %c0_14 = arith.constant 0 : index
    %c0_15 = arith.constant 0 : index
    %c0_16 = arith.constant 0 : index
    %24 = vector.load %arg10[%c0_14, %c0_15, %c0_16] : memref<10x18x128xbf16, #tpu.memory_space<vmem>>, vector<8x16x128xbf16>
    %25 = vector.shape_cast %24 : vector<8x16x128xbf16> to vector<128x128xbf16>
    %c0_17 = arith.constant 0 : index
    %c0_18 = arith.constant 0 : index
    %26 = vector.load %arg11[%c0_17, %c0_18] : memref<128x1152xbf16, #tpu.memory_space<vmem>>, vector<128x128xbf16>
    tpu.vector_store %arg11[%c0_17, %c0_18], %25 {strides = array<i32>} : memref<128x1152xbf16, #tpu.memory_space<vmem>>, vector<128x128xbf16>,
    %c0_19 = arith.constant 0 : index
    %c1_20 = arith.constant 1 : index
    %c0_21 = arith.constant 0 : index
    %27 = vector.load %arg10[%c0_19, %c1_20, %c0_21] : memref<10x18x128xbf16, #tpu.memory_space<vmem>>, vector<8x16x128xbf16>
    %28 = vector.shape_cast %27 : vector<8x16x128xbf16> to vector<128x128xbf16>
    %c0_22 = arith.constant 0 : index
    %c128 = arith.constant 128 : index
    %29 = vector.load %arg11[%c0_22, %c128] : memref<128x1152xbf16, #tpu.memory_space<vmem>>, vector<128x128xbf16>
    tpu.vector_store %arg11[%c0_22, %c128], %28 {strides = array<i32>} : memref<128x1152xbf16, #tpu.memory_space<vmem>>, vector<128x128xbf16>,
    %c0_23 = arith.constant 0 : index
    %c2 = arith.constant 2 : index
    %c0_24 = arith.constant 0 : index
    %30 = vector.load %arg10[%c0_23, %c2, %c0_24] : memref<10x18x128xbf16, #tpu.memory_space<vmem>>, vector<8x16x128xbf16>
    %31 = vector.shape_cast %30 : vector<8x16x128xbf16> to vector<128x128xbf16>
    %c0_25 = arith.constant 0 : index
    %c256 = arith.constant 256 : index
    %32 = vector.load %arg11[%c0_25, %c256] : memref<128x1152xbf16, #tpu.memory_space<vmem>>, vector<128x128xbf16>
    tpu.vector_store %arg11[%c0_25, %c256], %31 {strides = array<i32>} : memref<128x1152xbf16, #tpu.memory_space<vmem>>, vector<128x128xbf16>,
    %c1_26 = arith.constant 1 : index
    %c0_27 = arith.constant 0 : index
    %c0_28 = arith.constant 0 : index
    %33 = vector.load %arg10[%c1_26, %c0_27, %c0_28] : memref<10x18x128xbf16, #tpu.memory_space<vmem>>, vector<8x16x128xbf16>
    %34 = vector.shape_cast %33 : vector<8x16x128xbf16> to vector<128x128xbf16>
    %c0_29 = arith.constant 0 : index
    %c384 = arith.constant 384 : index
    %35 = vector.load %arg11[%c0_29, %c384] : memref<128x1152xbf16, #tpu.memory_space<vmem>>, vector<128x128xbf16>
    tpu.vector_store %arg11[%c0_29, %c384], %34 {strides = array<i32>} : memref<128x1152xbf16, #tpu.memory_space<vmem>>, vector<128x128xbf16>,
    %c1_30 = arith.constant 1 : index
    %c1_31 = arith.constant 1 : index
    %c0_32 = arith.constant 0 : index
    %36 = vector.load %arg10[%c1_30, %c1_31, %c0_32] : memref<10x18x128xbf16, #tpu.memory_space<vmem>>, vector<8x16x128xbf16>
    %37 = vector.shape_cast %36 : vector<8x16x128xbf16> to vector<128x128xbf16>
    %c0_33 = arith.constant 0 : index
    %c512 = arith.constant 512 : index
    %38 = vector.load %arg11[%c0_33, %c512] : memref<128x1152xbf16, #tpu.memory_space<vmem>>, vector<128x128xbf16>
    tpu.vector_store %arg11[%c0_33, %c512], %37 {strides = array<i32>} : memref<128x1152xbf16, #tpu.memory_space<vmem>>, vector<128x128xbf16>,
    %c1_34 = arith.constant 1 : index
    %c2_35 = arith.constant 2 : index
    %c0_36 = arith.constant 0 : index
    %39 = vector.load %arg10[%c1_34, %c2_35, %c0_36] : memref<10x18x128xbf16, #tpu.memory_space<vmem>>, vector<8x16x128xbf16>
    %40 = vector.shape_cast %39 : vector<8x16x128xbf16> to vector<128x128xbf16>
    %c0_37 = arith.constant 0 : index
    %c640 = arith.constant 640 : index
    %41 = vector.load %arg11[%c0_37, %c640] : memref<128x1152xbf16, #tpu.memory_space<vmem>>, vector<128x128xbf16>
    tpu.vector_store %arg11[%c0_37, %c640], %40 {strides = array<i32>} : memref<128x1152xbf16, #tpu.memory_space<vmem>>, vector<128x128xbf16>,
    %c2_38 = arith.constant 2 : index
    %c0_39 = arith.constant 0 : index
    %c0_40 = arith.constant 0 : index
    %42 = vector.load %arg10[%c2_38, %c0_39, %c0_40] : memref<10x18x128xbf16, #tpu.memory_space<vmem>>, vector<8x16x128xbf16>
    %43 = vector.shape_cast %42 : vector<8x16x128xbf16> to vector<128x128xbf16>
    %c0_41 = arith.constant 0 : index
    %c768 = arith.constant 768 : index
    %44 = vector.load %arg11[%c0_41, %c768] : memref<128x1152xbf16, #tpu.memory_space<vmem>>, vector<128x128xbf16>
    tpu.vector_store %arg11[%c0_41, %c768], %43 {strides = array<i32>} : memref<128x1152xbf16, #tpu.memory_space<vmem>>, vector<128x128xbf16>,
    %c2_42 = arith.constant 2 : index
    %c1_43 = arith.constant 1 : index
    %c0_44 = arith.constant 0 : index
    %45 = vector.load %arg10[%c2_42, %c1_43, %c0_44] : memref<10x18x128xbf16, #tpu.memory_space<vmem>>, vector<8x16x128xbf16>
    %46 = vector.shape_cast %45 : vector<8x16x128xbf16> to vector<128x128xbf16>
    %c0_45 = arith.constant 0 : index
    %c896 = arith.constant 896 : index
    %47 = vector.load %arg11[%c0_45, %c896] : memref<128x1152xbf16, #tpu.memory_space<vmem>>, vector<128x128xbf16>
    tpu.vector_store %arg11[%c0_45, %c896], %46 {strides = array<i32>} : memref<128x1152xbf16, #tpu.memory_space<vmem>>, vector<128x128xbf16>,
    %c2_46 = arith.constant 2 : index
    %c2_47 = arith.constant 2 : index
    %c0_48 = arith.constant 0 : index
    %48 = vector.load %arg10[%c2_46, %c2_47, %c0_48] : memref<10x18x128xbf16, #tpu.memory_space<vmem>>, vector<8x16x128xbf16>
    %49 = vector.shape_cast %48 : vector<8x16x128xbf16> to vector<128x128xbf16>
    %c0_49 = arith.constant 0 : index
    %c1024 = arith.constant 1024 : index
    %50 = vector.load %arg11[%c0_49, %c1024] : memref<128x1152xbf16, #tpu.memory_space<vmem>>, vector<128x128xbf16>
    tpu.vector_store %arg11[%c0_49, %c1024], %49 {strides = array<i32>} : memref<128x1152xbf16, #tpu.memory_space<vmem>>, vector<128x128xbf16>,
    %c0_50 = arith.constant 0 : index
    %c0_51 = arith.constant 0 : index
    %51 = vector.load %arg11[%c0_50, %c0_51] : memref<128x1152xbf16, #tpu.memory_space<vmem>>, vector<128x1152xbf16>
    %c0_52 = arith.constant 0 : index
    %c0_53 = arith.constant 0 : index
    %52 = vector.load %arg5[%c0_52, %c0_53] : memref<1152x128xbf16, #tpu.memory_space<vmem>>, vector<1152x128xbf16>
    %cst_54 = arith.constant dense<0.000000e+00> : vector<128x128xf32>
    %53 = tpu.matmul %51, %52, %cst_54 {dimension_numbers = #tpu.dot_dimension_numbers<[1], [0], [0], [1], [0, 0, 1, 1], [], []>} : vector<128x1152xbf16>, vector<1152x128xbf16>, vector<128x128xf32> -> vector<128x128xf32>
    %c0_55 = arith.constant 0 : index
    %c0_56 = arith.constant 0 : index
    %54 = vector.load %arg6[%c0_55, %c0_56] : memref<1x128xf32, #tpu.memory_space<vmem>>, vector<1x128xf32>
    %55 = vector.broadcast %54 : vector<1x128xf32> to vector<128x128xf32>
    %56 = arith.addf %53, %55 : vector<128x128xf32>
    %cst_57 = arith.constant 0.000000e+00 : f32
    %57 = vector.broadcast %cst_57 : f32 to vector<128x128xf32>
    %58 = arith.maximumf %56, %57 : vector<128x128xf32>
    %59 = arith.truncf %58 : vector<128x128xf32> to vector<128x128xbf16>
    %c16_i32_58 = arith.constant 16 : i32
    %60 = arith.muli %0, %c16_i32_58 : i32
    %61 = tpu.assume_multiple %60, 128 : i32
    %c0_59 = arith.constant 0 : index
    %62 = arith.index_cast %61 : i32 to index
    %c0_60 = arith.constant 0 : index
    %63 = vector.load %arg2[%c0_59, %62, %c0_60] : memref<1x256x128xbf16, #tpu.memory_space<vmem>>, vector<1x128x128xbf16>
    %64 = vector.shape_cast %63 : vector<1x128x128xbf16> to vector<128x128xbf16>
    %65 = arith.extf %64 : vector<128x128xbf16> to vector<128x128xf32>
    %c0_61 = arith.constant 0 : index
    %c0_62 = arith.constant 0 : index
    %66 = vector.load %arg7[%c0_61, %c0_62] : memref<128x128xbf16, #tpu.memory_space<vmem>>, vector<128x128xbf16>
    %cst_63 = arith.constant dense<0.000000e+00> : vector<128x128xf32>
    %67 = tpu.matmul %59, %66, %cst_63 {dimension_numbers = #tpu.dot_dimension_numbers<[1], [0], [0], [1], [0, 0, 1, 1], [], []>} : vector<128x128xbf16>, vector<128x128xbf16>, vector<128x128xf32> -> vector<128x128xf32>
    %c0_64 = arith.constant 0 : index
    %c0_65 = arith.constant 0 : index
    %68 = vector.load %arg8[%c0_64, %c0_65] : memref<1x128xf32, #tpu.memory_space<vmem>>, vector<1x128xf32>
    %69 = vector.broadcast %68 : vector<1x128xf32> to vector<128x128xf32>
    %70 = arith.addf %67, %69 : vector<128x128xf32>
    %71 = arith.addf %70, %65 : vector<128x128xf32>
    %cst_66 = arith.constant 0.000000e+00 : f32
    %72 = vector.broadcast %cst_66 : f32 to vector<128x128xf32>
    %73 = arith.maximumf %71, %72 : vector<128x128xf32>
    %74 = arith.truncf %73 : vector<128x128xf32> to vector<128x128xbf16>
    %c0_67 = arith.constant 0 : index
    %c0_68 = arith.constant 0 : index
    %c0_69 = arith.constant 0 : index
    %75 = vector.load %arg9[%c0_67, %c0_68, %c0_69] : memref<1x128x128xbf16, #tpu.memory_space<vmem>>, vector<1x128x128xbf16>
    %76 = vector.shape_cast %75 : vector<1x128x128xbf16> to vector<128x128xbf16>
    %77 = vector.shape_cast %74 : vector<128x128xbf16> to vector<1x128x128xbf16>
    tpu.vector_store %arg9[%c0_67, %c0_68, %c0_69], %77 {strides = array<i32>} : memref<1x128x128xbf16, #tpu.memory_space<vmem>>, vector<1x128x128xbf16>,
    return
  }
  func.func @transform_0(%arg0: i32, %arg1: i32) -> (i32, i32, i32) {
    %c0_i32 = arith.constant 0 : i32
    %c0_i32_0 = arith.constant 0 : i32
    %c0_i32_1 = arith.constant 0 : i32
    return %arg0, %c0_i32, %c0_i32_0 : i32, i32, i32
  }
  func.func @transform_1(%arg0: i32, %arg1: i32) -> (i32, i32) {
    %c0_i32 = arith.constant 0 : i32
    %c0_i32_0 = arith.constant 0 : i32
    %c0_i32_1 = arith.constant 0 : i32
    return %c0_i32, %c0_i32_0 : i32, i32
  }
  func.func @transform_2(%arg0: i32, %arg1: i32) -> (i32, i32) {
    %c0_i32 = arith.constant 0 : i32
    %c0_i32_0 = arith.constant 0 : i32
    %c0_i32_1 = arith.constant 0 : i32
    return %c0_i32, %c0_i32_0 : i32, i32
  }
  func.func @transform_3(%arg0: i32, %arg1: i32) -> (i32, i32) {
    %c0_i32 = arith.constant 0 : i32
    %c0_i32_0 = arith.constant 0 : i32
    %c0_i32_1 = arith.constant 0 : i32
    return %c0_i32, %c0_i32_0 : i32, i32
  }
  func.func @transform_4(%arg0: i32, %arg1: i32) -> (i32, i32) {
    %c0_i32 = arith.constant 0 : i32
    %c0_i32_0 = arith.constant 0 : i32
    %c0_i32_1 = arith.constant 0 : i32
    return %c0_i32, %c0_i32_0 : i32, i32
  }
  func.func @transform_5(%arg0: i32, %arg1: i32) -> (i32, i32) {
    %c0_i32 = arith.constant 0 : i32
    %c0_i32_0 = arith.constant 0 : i32
    %c0_i32_1 = arith.constant 0 : i32
    return %c0_i32, %c0_i32_0 : i32, i32
  }
  func.func @transform_6(%arg0: i32, %arg1: i32) -> (i32, i32) {
    %c0_i32 = arith.constant 0 : i32
    %c0_i32_0 = arith.constant 0 : i32
    %c0_i32_1 = arith.constant 0 : i32
    return %c0_i32, %c0_i32_0 : i32, i32
  }
  func.func @transform_7(%arg0: i32, %arg1: i32) -> (i32, i32, i32) {
    %c0_i32 = arith.constant 0 : i32
    %c0_i32_0 = arith.constant 0 : i32
    return %arg0, %arg1, %c0_i32 : i32, i32, i32
  }
}

</mosaic_0001>

<bundles_post_ra>
// kernel: conv_block_forward.1
= control target key start
LH: loop header
LB: loop body
LE: loop exit
PB: predicated region body
PF: predicated region fallthrough
CT: control target
= control target key end

     0   :  { %s5328_s24 = smov 0   ;;  %s5330_s25 = smov 0   ;;  %s6210_s0 = inlined_call_operand.vmem [shape: bf16[2,256,128], index: 0, kind: input, shape index: {}]   ;;  %s6211_s1 = inlined_call_operand.vmem [shape: bf16[128,128], index: 1, kind: input, shape index: {}]   ;;  %s6212_s2 = inlined_call_operand.vmem [shape: f32[1,128], index: 2, kind: input, shape index: {}]   ;;  %s6213_s3 = inlined_call_operand.vmem [shape: bf16[1152,128], index: 3, kind: input, shape index: {}]   ;;  %s6214_s4 = inlined_call_operand.vmem [shape: f32[1,128], index: 4, kind: input, shape index: {}]   ;;  %s6215_s5 = inlined_call_operand.vmem [shape: bf16[128,128], index: 5, kind: input, shape index: {}]   ;;  %s6216_s6 = inlined_call_operand.vmem [shape: f32[1,128], index: 6, kind: input, shape index: {}]   ;;  %s6217_s7 = inlined_call_operand.vmem [shape: bf16[2,256,128], index: 7, kind: output, shape index: {}]  }
   0x1   :  { %s5332_s26 = smov 0   ;;  %s5334_s27 = smov 0  }
   0x2   :  { %s5336_s28 = smov 0  }
   0x3 LB: > { %s26_s29 = sadd.s32 1, %s5273_s26  ;;  %s29_s30 = sadd.s32 1, %s5277_s27  ;;  %s5281_s28 = sphi %s5336_s28, %s17_s28   ;;  %s5277_s27 = sphi %s5334_s27, %s6231_s27   ;;  %s5273_s26 = sphi %s5332_s26, %s6230_s26   ;;  %s5269_s25 = sphi %s5330_s25, %s6229_s25   ;;  %s5265_s24 = sphi %s5328_s24, %s6228_s24  }
   0x4   : > { %p27_p0 = scmp.ge.s32.totalorder %s26_s29, 2  ;;  %p4190_p1 = scmp.ge.s32.totalorder %s5281_s28, 1 }
   0x5   : > { %p251_p2 = scmp.lt.s32.totalorder %s5281_s28, 5 }
   0x6   : > { %s6233_s29 = smov (%p27_p0, %s26_s29), 0  ;;  %s6235_s30 = smov (!%p27_p0, %s29_s30), %s5277_s27 }
   0x7   : > { %p252_p3 = pnand %p4190_p1, %p251_p2  ;;  %p31_p4 = scmp.ge.s32.totalorder %s6235_s30, 2 }
   0x8   : > { %s4196_s8 = sshll.u32 (!%p252_p3), %s5265_s24, 3  ;;  %v5105_v0 = vld [vmem:[%s6211_s1] sm:$0xff] (!%p252_p3)   ;;  %v5106_v1 = vld [vmem:[%s6211_s1 + $0x8] sm:$0xff] (!%p252_p3)   ;;  %p287_p5 = scmp.lt.s32.totalorder (!%p252_p3), %s5269_s25, 1  ;;  %v5107_v2 = vld [vmem:[%s6211_s1 + $0x10] sm:$0xff] (!%p252_p3)   ;;  %v5283_v4 = vmov (!%p252_p3), 0  }
   0x9   : > { %s6237_s30 = smov (%p31_p4, %s6235_s30), 0  ;;  %255 = sbr.rel (%p252_p3) target bundleno = 1451 (0x5ab), region = 48 }
   0xa   : > { %4908 = vmatprep.subr.bf16.mxu0 (!%p252_p3), %v5105_v0  ;;  %5044 = vmatprep.subr.bf16.mxu1 (!%p252_p3), %v5105_v0  ;;  %s4193_s13 = sshll.u32 (!%p252_p3), %s5265_s24, 4  ;;  %v5108_v3 = vld [vmem:[%s6211_s1 + $0x18] sm:$0xff] (!%p252_p3)   ;;  %s4197_s23 = sshll.u32 (!%p252_p3), %s5265_s24, 7  ;;  %304 = vst [vmem:[#allocation2] sm:$0xf] (!%p252_p3), %v5283_v4  ;;  %v5109_v5 = vld [vmem:[%s6211_s1 + $0x20] sm:$0xff] (!%p252_p3)  }
   0xb   : > { %4909 = vmatpush3.bf16.msra.mxu0 (!%p252_p3), %v5105_v0  ;;  %5052 = vmatpush3.bf16.msra.mxu1 (!%p252_p3), %v5105_v0  ;;  %p295_p6 = scmp.lt.s32.totalorder (!%p252_p3), %s4193_s13, 31  ;;  %s5384_s10 = sshra.s32 (!%p252_p3), %s4197_s23, 3  ;;  %305 = vst [vmem:[#allocation2 + $0x4] sm:$0xf] (!%p252_p3), %v5283_v4  ;;  %306 = vst [vmem:[#allocation2 + $0x8] sm:$0x1] (!%p252_p3), %v5283_v4 }
   0xc   : > { %4910 = vmatprep.subr.bf16.mxu0 (!%p252_p3), %v5106_v1  ;;  %5045 = vmatprep.subr.bf16.mxu1 (!%p252_p3), %v5106_v1  ;;  %310 = vst [vmem:[#allocation2 + $0x18] sm:$0xf] (!%p252_p3), %v5283_v4  ;;  %331 = vst [vmem:[#allocation2 + $0x6c] sm:$0xf] (!%p252_p3), %v5283_v4  ;;  %s4198_s11 = sshll.u32 (!%p252_p3), %s5384_s10, 2  ;;  %v5110_v8 = vld [vmem:[%s6211_s1 + $0x28] sm:$0xff] (!%p252_p3)  }
   0xd   : > { %332 = vst [vmem:[#allocation2 + $0x70] sm:$0xf] (!%p252_p3), %v5283_v4  ;;  %333 = vst [vmem:[#allocation2 + $0x74] sm:$0x1] (!%p252_p3), %v5283_v4  ;;  %v5111_v9 = vld [vmem:[%s6211_s1 + $0x30] sm:$0xff] (!%p252_p3)   ;;  %v5112_v10 = vld [vmem:[%s6211_s1 + $0x38] sm:$0xff] (!%p252_p3)  }
   0xe   : > { %307 = vst [vmem:[#allocation2 + $0xc] sm:$0xf] (!%p252_p3), %v5283_v4  ;;  %308 = vst [vmem:[#allocation2 + $0x10] sm:$0xf] (!%p252_p3), %v5283_v4  ;;  %v5419_v17 = vld [vmem:[%s6212_s2] ss:$0 sm:$0xff] (!%p252_p3) }
   0xf   : > { %4911 = vmatpush3.bf16.msra.mxu0 (!%p252_p3), %v5106_v1  ;;  %5053 = vmatpush3.bf16.msra.mxu1 (!%p252_p3), %v5106_v1  ;;  %309 = vst [vmem:[#allocation2 + $0x14] sm:$0x1] (!%p252_p3), %v5283_v4  ;;  %311 = vst [vmem:[#allocation2 + $0x1c] sm:$0xf] (!%p252_p3), %v5283_v4  ;;  %vm799_vm0 = vcmask (!%p252_p3), 1043456   ;;  %vm806_vm4 = vcmask (!%p252_p3), 1040384  }
  0x10   : > { %s6239_s25 = smov (!%p287_p5, %s5269_s25), 1  ;;  %s6241_s13 = smov (!%p295_p6, %s4193_s13), 31  ;;  %4912 = vmatprep.subr.bf16.mxu0 %v5107_v2  ;;  %5046 = vmatprep.subr.bf16.mxu1 %v5107_v2  ;;  %312 = vst [vmem:[#allocation2 + $0x20] sm:$0x1] %v5283_v4  ;;  %313 = vst [vmem:[#allocation2 + $0x24] sm:$0xf] %v5283_v4 }
  0x11   : > { %s4460_s16 = sshll.u32 %s6239_s25, 7  ;;  %s4194_s17 = sshll.u32 %s6239_s25, 5  ;;  %314 = vst [vmem:[#allocation2 + $0x28] sm:$0xf] %v5283_v4  ;;  %315 = vst [vmem:[#allocation2 + $0x2c] sm:$0x1] %v5283_v4 }
  0x12   : > { %s5377_s22 = scalar_lea.vmem %s6210_s0, %s4460_s16  ;;  %s5380_s9 = sadd.s32 %s4194_s17, %s6241_s13  ;;  %316 = vst [vmem:[#allocation2 + $0x30] sm:$0xf] %v5283_v4  ;;  %317 = vst [vmem:[#allocation2 + $0x34] sm:$0xf] %v5283_v4  ;;  %vm800_vm1 = vsmask.f32 7938 }
  0x13   : > { %318 = vst [vmem:[#allocation2 + $0x38] sm:$0x1] %v5283_v4  ;;  %319 = vst [vmem:[#allocation2 + $0x3c] sm:$0xf] %v5283_v4  ;;  %s4195_s25 = sshll.u32 %s5380_s9, 2  ;;  %4913 = vmatpush3.bf16.msra.mxu0 %v5107_v2  ;;  %5054 = vmatpush3.bf16.msra.mxu1 %v5107_v2  ;;  %s5397_s17 = scalar_lea.vmem %s5377_s22, %s4198_s11 }
  0x14   : > { %320 = vst [vmem:[#allocation2 + $0x40] sm:$0xf] %v5283_v4  ;;  %321 = vst [vmem:[#allocation2 + $0x44] sm:$0x1] %v5283_v4  ;;  %s5394_s16 = scalar_lea.vmem %s6217_s7, %s4195_s25  ;;  %4914 = vmatprep.subr.bf16.mxu0 %v5108_v3  ;;  %5047 = vmatprep.subr.bf16.mxu1 %v5108_v3  ;;  %v5113_v6 = vld [vmem:[%s5397_s17] sm:$0xff]   ;;  %v5115_v11 = vld [vmem:[%s5397_s17 + $0x8] sm:$0xff]  }
  0x15   : > { %322 = vst [vmem:[#allocation2 + $0x48] sm:$0xf] %v5283_v4  ;;  %323 = vst [vmem:[#allocation2 + $0x4c] sm:$0xf] %v5283_v4  ;;  %v5114_v7 = vld [vmem:[%s5397_s17 + $0x20] sm:$0xff]   ;;  %4924 = vmatprep.mubr.bf16.mxu0 %v5113_v6  ;;  %v5116_v12 = vld [vmem:[%s5397_s17 + $0x28] sm:$0xff]  }
  0x16   : > { %324 = vst [vmem:[#allocation2 + $0x50] sm:$0x1] %v5283_v4  ;;  %325 = vst [vmem:[#allocation2 + $0x54] sm:$0xf] %v5283_v4  ;;  %4932 = vmatprep.mubr.bf16.mxu1 %v5114_v7  ;;  %v5117_v13 = vld [vmem:[%s5397_s17 + $0x10] sm:$0xff]   ;;  %v5119_v15 = vld [vmem:[%s5397_s17 + $0x18] sm:$0xff]  }
  0x17   : > { %326 = vst [vmem:[#allocation2 + $0x58] sm:$0xf] %v5283_v4  ;;  %327 = vst [vmem:[#allocation2 + $0x5c] sm:$0x1] %v5283_v4  ;;  %4915 = vmatpush3.bf16.msra.mxu0 %v5108_v3  ;;  %5055 = vmatpush3.bf16.msra.mxu1 %v5108_v3  ;;  %v5118_v14 = vld [vmem:[%s5397_s17 + $0x30] sm:$0xff]   ;;  %v5120_v16 = vld [vmem:[%s5397_s17 + $0x38] sm:$0xff]  }
  0x18   : > { %328 = vst [vmem:[#allocation2 + $0x60] sm:$0xf] %v5283_v4  ;;  %329 = vst [vmem:[#allocation2 + $0x64] sm:$0xf] %v5283_v4  ;;  %4916 = vmatprep.subr.bf16.mxu0 %v5109_v5  ;;  %5048 = vmatprep.subr.bf16.mxu1 %v5109_v5  ;;  %vm635_vm2 = vsmask.f32 256 }
  0x19   : > { %330 = vst [vmem:[#allocation2 + $0x68] sm:$0x1] %v5283_v4  ;;  %vm636_vm3 = vsmask.f32 4368  ;;  %v811_v50 = vld [vmem:[#allocation2 + $0x18] sm:$0xf]  ;;  %vm5437_vm5 = vmand %vm799_vm0, %vm800_vm1 }
  0x1a   : > { %v802_v2 = vld [vmem:[#allocation2 + $0xc] sm:$0xf]  ;;  %vm5469_vm6 = vmor %vm635_vm2, %vm636_vm3  ;;  %p4232_p7 = scmp.le.s32.totalorder %s5265_s24, 0 }
  0x1b   : > { %4917 = vmatpush3.bf16.msra.mxu0 %v5109_v5  ;;  %5056 = vmatpush3.bf16.msra.mxu1 %v5109_v5  ;;  %vm5475_vm7 = vmand %vm806_vm4, %vm635_vm2  ;;  %vm5285_vm8 = vmmov (!%p4232_p7), 0   ;;  %s4233_s18 = sadd.s32 (!%p4232_p7), 4294967295, %s4196_s8 }
  0x1c   : > { %4918 = vmatprep.subr.bf16.mxu0 %v5110_v8  ;;  %5049 = vmatprep.subr.bf16.mxu1 %v5110_v8  ;;  %v839_v59 = vld [vmem:[#allocation2 + $0x48] sm:$0xf]  ;;  %s4234_s19 = sshll.u32 (!%p4232_p7), %s4233_s18, 4 }
  0x1d   : > { %s866_s20 = sshra.s32 (!%p4232_p7), %s4234_s19, 3 }
  0x1e   : > { %s4235_s21 = sshll.u32 (!%p4232_p7), %s866_s20, 2 }
  0x1f   : > { %4919 = vmatpush3.bf16.msra.mxu0 %v5110_v8  ;;  %5057 = vmatpush3.bf16.msra.mxu1 %v5110_v8  ;;  %s869_s25 = scalar_lea.vmem (!%p4232_p7), %s5377_s22, %s4235_s21 }
  0x20   : > { %4920 = vmatprep.subr.bf16.mxu0 %v5111_v9  ;;  %5050 = vmatprep.subr.bf16.mxu1 %v5111_v9 }
  0x23   : > { %4921 = vmatpush3.bf16.msra.mxu0 %v5111_v9  ;;  %5058 = vmatpush3.bf16.msra.mxu1 %v5111_v9 }
  0x24   : > { %4922 = vmatprep.subr.bf16.mxu0 %v5112_v10  ;;  %5051 = vmatprep.subr.bf16.mxu1 %v5112_v10 }
  0x27   : > { %4923 = vmatpush3.bf16.msra.mxu0 %v5112_v10  ;;  %5059 = vmatpush3.bf16.msra.mxu1 %v5112_v10 }
  0x2a   : > { %4925 = vmatmul.mubr.bf16.vlgmr.msra.gmra.mrb[0].mxu0 %v5115_v11  ;;  %4933 = vmatmul.mubr.bf16.vlgmr.msra.gmra.mrb[0].mxu1 %v5116_v12  ;;  %v832_v12 = vld [vmem:[#allocation2 + $0x3c] sm:$0xf] }
  0x2b   : > { %4928 = vmatprep.mubr.bf16.mxu0 %v5117_v13  ;;  %4936 = vmatprep.mubr.bf16.mxu1 %v5118_v14 }
  0x32   : > { %4929 = vmatmul.mubr.bf16.gmra.mrb[4].mxu0 %v5119_v15  ;;  %4937 = vmatmul.mubr.bf16.gmra.mrb[4].mxu1 %v5120_v16 }
  0xfd   : > { %v4926_v18 = vpop.f32.mrb[0].mxu0  ;;  %v4934_v19 = vpop.f32.mrb[0].mxu1 }
  0xfe   : > { %v517_v20 = vadd.f32 %v4926_v18, %v5419_v17  ;;  %v549_v21 = vadd.f32 %v4934_v19, %v5419_v17  ;;  %v508_v22 = vpop.f32.mrb[1].mxu0  ;;  %v540_v23 = vpop.f32.mrb[1].mxu1 }
  0xff   : > { %v509_v24 = vadd.f32 %v5419_v17, %v508_v22  ;;  %v541_v25 = vadd.f32 %v5419_v17, %v540_v23  ;;  %v4927_v26 = vpop.f32.mrb[2].mxu0  ;;  %v4935_v27 = vpop.f32.mrb[2].mxu1 }
 0x100   : > { %v573_v28 = vmax.f32 %v517_v20, 0.0  ;;  %v581_v29 = vmax.f32 %v549_v21, 0.0  ;;  %v520_v30 = vadd.f32 %v4927_v26, %v5419_v17  ;;  %v552_v31 = vadd.f32 %v4935_v27, %v5419_v17  ;;  %v511_v32 = vpop.f32.mrb[3].mxu0  ;;  %v543_v33 = vpop.f32.mrb[3].mxu1 }
 0x101   : > { %v571_v34 = vmax.f32 %v509_v24, 0.0  ;;  %v579_v35 = vmax.f32 %v541_v25, 0.0  ;;  %v512_v36 = vadd.f32 %v5419_v17, %v511_v32  ;;  %v544_v37 = vadd.f32 %v5419_v17, %v543_v33 }
 0x102   : > { %v4463_v38 = vpack.c.bf16 %v573_v28, %v573_v28  ;;  %v4471_v39 = vpack.c.bf16 %v581_v29, %v581_v29  ;;  %v574_v40 = vmax.f32 %v520_v30, 0.0  ;;  %v582_v41 = vmax.f32 %v552_v31, 0.0 }
 0x103   : > { %v4461_v42 = vpack.c.bf16 %v571_v34, %v571_v34  ;;  %v4469_v43 = vpack.c.bf16 %v579_v35, %v579_v35  ;;  %v572_v44 = vmax.f32 %v512_v36, 0.0  ;;  %v580_v45 = vmax.f32 %v544_v37, 0.0  ;;  %v815_v34 = vld [vmem:[#allocation2 + $0x20] sm:$0x1] }
 0x104   : > { %v656_v46 = vshrl.u32 %v4463_v38, 16  ;;  %v659_v47 = vshll.u32 %v4463_v38, 16  ;;  %v724_v48 = vshrl.u32 %v4471_v39, 16  ;;  %v727_v49 = vshll.u32 %v4471_v39, 16 }
 0x105   : > { %v639_v51 = vshrl.u32 %v4461_v42, 16  ;;  %v642_v52 = vshll.u32 %v4461_v42, 16  ;;  %v707_v53 = vshrl.u32 %v4469_v43, 16  ;;  %v710_v54 = vshll.u32 %v4469_v43, 16  ;;  %v4930_v55 = vpop.f32.mrb[4].mxu0  ;;  %v4938_v56 = vpop.f32.mrb[4].mxu1 }
 0x106   : > { %v658_v57 = vrot.slane %v656_v46, 7  ;;  %v5429_v58 = vrot.slane %v724_v48, 7  ;;  %v4464_v60 = vpack.c.bf16 %v574_v40, %v574_v40  ;;  %v4472_v61 = vpack.c.bf16 %v582_v41, %v582_v41  ;;  %v5431_v62 = vpop.f32.mrb[5].mxu0  ;;  %v5433_v63 = vpop.f32.mrb[5].mxu1  ;;  %v843_v41 = vld [vmem:[#allocation2 + $0x50] sm:$0x1] }
 0x107   : > { %v5441_v1 = vrot.slane %v639_v51, 7  ;;  %v5443_v3 = vrot.slane %v707_v53, 7  ;;  %v4462_v4 = vpack.c.bf16 %v572_v44, %v572_v44  ;;  %v4470_v5 = vpack.c.bf16 %v580_v45, %v580_v45  ;;  %v5445_v6 = vpop.f32.mrb[6].mxu0  ;;  %v5447_v7 = vpop.f32.mrb[6].mxu1  ;;  %v808_v46 = vld [vmem:[#allocation2 + $0x14] sm:$0x1] }
 0x108   : > { %v661_v8 = vor.u32 %v659_v47, %v658_v57  ;;  %v662_v9 = vrot.slane %v658_v57, 4  ;;  %v729_v10 = vor.u32 %v727_v49, %v5429_v58  ;;  %v730_v11 = vrot.slane %v5429_v58, 4  ;;  %v5451_v13 = vpop.f32.mrb[7].mxu0  ;;  %v5453_v14 = vpop.f32.mrb[7].mxu1  ;;  %v836_v53 = vld [vmem:[#allocation2 + $0x44] sm:$0x1] }
 0x109   : > { %v644_v15 = vor.u32 %v642_v52, %v5441_v1  ;;  %v645_v16 = vrot.slane %v5441_v1, 4  ;;  %v712_v18 = vor.u32 %v710_v54, %v5443_v3  ;;  %v713_v19 = vrot.slane %v5443_v3, 4 }
 0x10a   : > { %v812_v20 = vsel %vm5437_vm5, %v661_v8, %v811_v50  ;;  %v840_v21 = vsel %vm5437_vm5, %v729_v10, %v839_v59  ;;  %v664_v22 = vshrl.u32 %v4464_v60, 16  ;;  %v667_v23 = vshll.u32 %v4464_v60, 16 }
 0x10b   : > { %813 = vst [vmem:[#allocation2 + $0x18] sm:$0xf] %v812_v20  ;;  %841 = vst [vmem:[#allocation2 + $0x48] sm:$0xf] %v840_v21  ;;  %v803_v24 = vsel %vm5437_vm5, %v644_v15, %v802_v2  ;;  %v833_v25 = vsel %vm5437_vm5, %v712_v18, %v832_v12  ;;  %v732_v26 = vshrl.u32 %v4472_v61, 16  ;;  %v735_v27 = vshll.u32 %v4472_v61, 16 }
 0x10c   : > { %804 = vst [vmem:[#allocation2 + $0xc] sm:$0xf] %v803_v24  ;;  %834 = vst [vmem:[#allocation2 + $0x3c] sm:$0xf] %v833_v25  ;;  %v666_v29 = vrot.slane %v664_v22, 7  ;;  %v647_v30 = vshrl.u32 %v4462_v4, 16  ;;  %v533_v37 = vadd.f32 %v4930_v55, %v5419_v17  ;;  %v565_v38 = vadd.f32 %v4938_v56, %v5419_v17 }
 0x10d   : > { %v650_v31 = vshll.u32 %v4462_v4, 16  ;;  %v715_v32 = vshrl.u32 %v4470_v5, 16  ;;  %v734_v35 = vrot.slane %v732_v26, 7  ;;  %v718_v36 = vshll.u32 %v4470_v5, 16  ;;  %v825_v20 = vld [vmem:[#allocation2 + $0x30] sm:$0xf] }
 0x10e   : > { %v669_v39 = vor.u32 %v667_v23, %v666_v29  ;;  %v671_v40 = vrot.slane %v666_v29, 4  ;;  %v649_v42 = vrot.slane %v647_v30, 7  ;;  %v577_v47 = vmax.f32 %v533_v37, 0.0  ;;  %v853_v21 = vld [vmem:[#allocation2 + $0x60] sm:$0xf] }
 0x10f   : > { %v717_v43 = vrot.slane %v715_v32, 7  ;;  %v737_v44 = vor.u32 %v735_v27, %v734_v35  ;;  %v739_v45 = vrot.slane %v734_v35, 4  ;;  %v585_v48 = vmax.f32 %v565_v38, 0.0  ;;  %v818_v37 = vld [vmem:[#allocation2 + $0x24] sm:$0xf] }
 0x110   : > { %v670_v49 = vsel %vm5469_vm6, %v662_v9, %v669_v39  ;;  %v816_v50 = vsel %vm5475_vm7, %v671_v40, %v815_v34  ;;  %v652_v51 = vor.u32 %v650_v31, %v649_v42  ;;  %v654_v52 = vrot.slane %v649_v42, 4  ;;  %v846_v38 = vld [vmem:[#allocation2 + $0x54] sm:$0xf] }
 0x111   : > { %814 = vst [vmem:[#allocation2 + $0x1c] sm:$0xf] %v670_v49  ;;  %817 = vst [vmem:[#allocation2 + $0x20] sm:$0x1] %v816_v50  ;;  %v738_v54 = vsel %vm5469_vm6, %v730_v11, %v737_v44  ;;  %v844_v55 = vsel %vm5475_vm7, %v739_v45, %v843_v41  ;;  %v720_v56 = vor.u32 %v718_v36, %v717_v43  ;;  %v722_v57 = vrot.slane %v717_v43, 4 }
 0x112   : > { %842 = vst [vmem:[#allocation2 + $0x4c] sm:$0xf] %v738_v54  ;;  %845 = vst [vmem:[#allocation2 + $0x50] sm:$0x1] %v844_v55  ;;  %v653_v58 = vsel %vm5469_vm6, %v645_v16, %v652_v51  ;;  %v809_v59 = vsel %vm5475_vm7, %v654_v52, %v808_v46  ;;  %v4467_v60 = vpack.c.bf16 %v577_v47, %v577_v47  ;;  %v857_v54 = vld [vmem:[#allocation2 + $0x68] sm:$0x1] }
 0x113   : > { %v4475_v61 = vpack.c.bf16 %v585_v48, %v585_v48  ;;  %805 = vst [vmem:[#allocation2 + $0x10] sm:$0xf] %v653_v58  ;;  %810 = vst [vmem:[#allocation2 + $0x14] sm:$0x1] %v809_v59  ;;  %v721_v1 = vsel %vm5469_vm6, %v713_v19, %v720_v56  ;;  %v837_v2 = vsel %vm5475_vm7, %v722_v57, %v836_v53  ;;  %v829_v53 = vld [vmem:[#allocation2 + $0x38] sm:$0x1] }
 0x114   : > { %v525_v3 = vadd.f32 %v5419_v17, %v5431_v62  ;;  %v557_v4 = vadd.f32 %v5419_v17, %v5433_v63  ;;  %835 = vst [vmem:[#allocation2 + $0x40] sm:$0xf] %v721_v1  ;;  %838 = vst [vmem:[#allocation2 + $0x44] sm:$0x1] %v837_v2  ;;  %v690_v5 = vshrl.u32 %v4467_v60, 16  ;;  %v693_v8 = vshll.u32 %v4467_v60, 16 }
 0x115   : > { %v758_v9 = vshrl.u32 %v4475_v61, 16  ;;  %v761_v10 = vshll.u32 %v4475_v61, 16  ;;  %v536_v15 = vadd.f32 %v5445_v6, %v5419_v17  ;;  %v568_v16 = vadd.f32 %v5447_v7, %v5419_v17 }
 0x116   : > { %v575_v11 = vmax.f32 %v525_v3, 0.0  ;;  %v583_v12 = vmax.f32 %v557_v4, 0.0  ;;  %v692_v18 = vrot.slane %v690_v5, 7  ;;  %v528_v62 = vadd.f32 %v5419_v17, %v5451_v13 }
 0x117   : > { %v760_v19 = vrot.slane %v758_v9, 7  ;;  %v560_v63 = vadd.f32 %v5419_v17, %v5453_v14  ;;  %v578_v24 = vmax.f32 %v536_v15, 0.0  ;;  %v586_v25 = vmax.f32 %v568_v16, 0.0  ;;  %v850_v15 = vld [vmem:[#allocation2 + $0x5c] sm:$0x1] }
 0x118   : > { %v4465_v22 = vpack.c.bf16 %v575_v11, %v575_v11  ;;  %v4473_v23 = vpack.c.bf16 %v583_v12, %v583_v12  ;;  %v695_v26 = vor.u32 %v693_v8, %v692_v18  ;;  %v576_v35 = vmax.f32 %v528_v62, 0.0  ;;  %v822_v12 = vld [vmem:[#allocation2 + $0x2c] sm:$0x1] }
 0x119   : > { %v763_v27 = vor.u32 %v761_v10, %v760_v19  ;;  %v4468_v32 = vpack.c.bf16 %v578_v24, %v578_v24  ;;  %v4476_v17 = vpack.c.bf16 %v586_v25, %v586_v25  ;;  %v584_v36 = vmax.f32 %v560_v63, 0.0  ;;  %v5122_v25 = vld [vmem:[%s6211_s1 + $0x8] sm:$0xff] (!%p4232_p7)  }
 0x11a   : > { %v673_v6 = vshrl.u32 %v4465_v22, 16  ;;  %v676_v29 = vshll.u32 %v4465_v22, 16  ;;  %v741_v30 = vshrl.u32 %v4473_v23, 16  ;;  %v744_v7 = vshll.u32 %v4473_v23, 16  ;;  %v5121_v23 = vld [vmem:[%s6211_s1] sm:$0xff] (!%p4232_p7)  }
 0x11b   : > { %v826_v31 = vsel %vm5437_vm5, %v695_v26, %v825_v20  ;;  %v854_v13 = vsel %vm5437_vm5, %v763_v27, %v853_v21  ;;  %v698_v39 = vshrl.u32 %v4468_v32, 16  ;;  %v766_v40 = vshrl.u32 %v4476_v17, 16  ;;  %v5123_v26 = vld [vmem:[%s6211_s1 + $0x10] sm:$0xff] (!%p4232_p7)   ;;  %v5124_v27 = vld [vmem:[%s6211_s1 + $0x18] sm:$0xff] (!%p4232_p7)  }
 0x11c   : > { %827 = vst [vmem:[#allocation2 + $0x30] sm:$0xf] %v826_v31  ;;  %855 = vst [vmem:[#allocation2 + $0x60] sm:$0xf] %v854_v13  ;;  %v675_v14 = vrot.slane %v673_v6, 7  ;;  %v743_v34 = vrot.slane %v741_v30, 7  ;;  %v4466_v47 = vpack.c.bf16 %v576_v35, %v576_v35  ;;  %v4474_v48 = vpack.c.bf16 %v584_v36, %v584_v36 }
 0x11d   : > { %v701_v43 = vshll.u32 %v4468_v32, 16  ;;  %v769_v44 = vshll.u32 %v4476_v17, 16  ;;  %v700_v45 = vrot.slane %v698_v39, 7  ;;  %v768_v46 = vrot.slane %v766_v40, 7  ;;  %v5125_v6 = vld [vmem:[%s6211_s1 + $0x20] sm:$0xff] (!%p4232_p7)   ;;  %v5127_v30 = vld [vmem:[%s6211_s1 + $0x30] sm:$0xff] (!%p4232_p7)  }
 0x11e   : > { %v678_v41 = vor.u32 %v676_v29, %v675_v14  ;;  %v746_v42 = vor.u32 %v744_v7, %v743_v34  ;;  %v696_v49 = vrot.slane %v692_v18, 4  ;;  %v764_v50 = vrot.slane %v760_v19, 4  ;;  %v5126_v29 = vld [vmem:[%s6211_s1 + $0x28] sm:$0xff] (!%p4232_p7)   ;;  %v5128_v7 = vld [vmem:[%s6211_s1 + $0x38] sm:$0xff] (!%p4232_p7)   ;;  %v5129_v31 = vld [vmem:[%s869_s25] sm:$0xff] (!%p4232_p7)  }
 0x11f   : > { %v703_v55 = vor.u32 %v701_v43, %v700_v45  ;;  %v705_v56 = vrot.slane %v700_v45, 4  ;;  %v771_v57 = vor.u32 %v769_v44, %v768_v46  ;;  %v773_v58 = vrot.slane %v768_v46, 4  ;;  %v4236_v13 = vld [vmem:[%s6212_s2] ss:$0 sm:$0xff] (!%p4232_p7) }
 0x120   : > { %v819_v51 = vsel %vm5437_vm5, %v678_v41, %v818_v37  ;;  %v847_v52 = vsel %vm5437_vm5, %v746_v42, %v846_v38  ;;  %v681_v59 = vshrl.u32 %v4466_v47, 16  ;;  %v749_v60 = vshrl.u32 %v4474_v48, 16  ;;  %v1018_v45 = vld [vmem:[#allocation2] sm:$0xf] (!%p4232_p7) }
 0x121   : > { %820 = vst [vmem:[#allocation2 + $0x24] sm:$0xf] %v819_v51  ;;  %848 = vst [vmem:[#allocation2 + $0x54] sm:$0xf] %v847_v52  ;;  %v704_v61 = vsel %vm5469_vm6, %v696_v49, %v703_v55  ;;  %v830_v1 = vsel %vm5475_vm7, %v705_v56, %v829_v53  ;;  %v772_v2 = vsel %vm5469_vm6, %v764_v50, %v771_v57  ;;  %v684_v5 = vshll.u32 %v4466_v47, 16 }
 0x122   : > { %v858_v3 = vsel %vm5475_vm7, %v773_v58, %v857_v54  ;;  %828 = vst [vmem:[#allocation2 + $0x34] sm:$0xf] %v704_v61  ;;  %831 = vst [vmem:[#allocation2 + $0x38] sm:$0x1] %v830_v1  ;;  %v683_v4 = vrot.slane %v681_v59, 7  ;;  %v751_v8 = vrot.slane %v749_v60, 7 }
 0x123   : > { %856 = vst [vmem:[#allocation2 + $0x64] sm:$0xf] %v772_v2  ;;  %859 = vst [vmem:[#allocation2 + $0x68] sm:$0x1] %v858_v3  ;;  %v752_v9 = vshll.u32 %v4474_v48, 16  ;;  %v679_v10 = vrot.slane %v675_v14, 4 }
 0x124   : > { %v747_v11 = vrot.slane %v743_v34, 4  ;;  %v686_v16 = vor.u32 %v684_v5, %v683_v4  ;;  %v688_v18 = vrot.slane %v683_v4, 4  ;;  %v756_v62 = vrot.slane %v751_v8, 4  ;;  %863 = sbr.rel (%p4232_p7) target bundleno = 554 (0x22a), region = 52  ;;  %v1022_v49 = vld [vmem:[#allocation2 + $0x8] sm:$0x1] (!%p4232_p7) }
 0x125   : > { %v754_v19 = vor.u32 %v752_v9, %v751_v8  ;;  %v5284_v24 = vmov (!%p4232_p7), 0.0  }
 0x126   : > { %v687_v63 = vsel %vm5469_vm6, %v679_v10, %v686_v16  ;;  %v823_v20 = vsel %vm5475_vm7, %v688_v18, %v822_v12  ;;  %v851_v22 = vsel %vm5475_vm7, %v756_v62, %v850_v15  ;;  %4940 = vmatprep.subr.bf16.mxu0 (!%p4232_p7), %v5284_v24  ;;  %4956 = vmatprep.mubr.msk.bf16.mxu0 (!%p4232_p7), %vm5285_vm8, %v5284_v24 }
 0x127   : > { %v755_v21 = vsel %vm5469_vm6, %v747_v11, %v754_v19  ;;  %821 = vst [vmem:[#allocation2 + $0x28] sm:$0xf] %v687_v63  ;;  %824 = vst [vmem:[#allocation2 + $0x2c] sm:$0x1] %v823_v20  ;;  %4941 = vmatpush3.bf16.msra.mxu0 (!%p4232_p7), %v5121_v23 }
 0x128   : > { %849 = vst [vmem:[#allocation2 + $0x58] sm:$0xf] %v755_v21  ;;  %852 = vst [vmem:[#allocation2 + $0x5c] sm:$0x1] %v851_v22  ;;  %4942 = vmatprep.subr.bf16.mxu0 (!%p4232_p7), %v5284_v24 }
 0x12b   : > { %4943 = vmatpush3.bf16.msra.mxu0 %v5122_v25 }
 0x12c   : > { %4944 = vmatprep.subr.bf16.mxu0 %v5284_v24 }
 0x12f   : > { %4945 = vmatpush3.bf16.msra.mxu0 %v5123_v26 }
 0x130   : > { %4946 = vmatprep.subr.bf16.mxu0 %v5284_v24 }
 0x133   : > { %4947 = vmatpush3.bf16.msra.mxu0 %v5124_v27 }
 0x134   : > { %4948 = vmatprep.subr.bf16.mxu0 %v5284_v24 }
 0x137   : > { %4949 = vmatpush3.bf16.msra.mxu0 %v5125_v6 }
 0x138   : > { %4950 = vmatprep.subr.bf16.mxu0 %v5284_v24 }
 0x13b   : > { %4951 = vmatpush3.bf16.msra.mxu0 %v5126_v29 }
 0x13c   : > { %4952 = vmatprep.subr.bf16.mxu0 %v5284_v24 }
 0x13f   : > { %4953 = vmatpush3.bf16.msra.mxu0 %v5127_v30 }
 0x140   : > { %4954 = vmatprep.subr.bf16.mxu0 %v5284_v24 }
 0x143   : > { %4955 = vmatpush3.bf16.msra.mxu0 %v5128_v7 }
 0x146   : > { %4957 = vmatmul.mubr.bf16.vlgmr.msra.gmra.mrb[0].mxu0 %v5129_v31 }
 0x219   : > { %v983_v32 = vpop.f32.mrb[0].mxu0 }
 0x21a   : > { %v984_v17 = vadd.f32 %v4236_v13, %v983_v32  ;;  %v4958_v14 = vpop.f32.mrb[1].mxu0 }
 0x21b   : > { %v986_v34 = vpop.f32.mrb[2].mxu0 }
 0x21c   : > { %v990_v35 = vmax.f32 %v984_v17, 0.0  ;;  %v987_v36 = vadd.f32 %v4236_v13, %v986_v34  ;;  %v4959_v37 = vpop.f32.mrb[3].mxu0 }
 0x21e   : > { %v4477_v38 = vpack.c.bf16 %v990_v35, %v990_v35  ;;  %v991_v39 = vmax.f32 %v987_v36, 0.0 }
 0x220   : > { %v999_v40 = vshrl.u32 %v4477_v38, 16  ;;  %v4478_v41 = vpack.c.bf16 %v991_v39, %v991_v39  ;;  %v1002_v43 = vshll.u32 %v4477_v38, 16 }
 0x222   : > { %v1001_v42 = vrot.slane %v999_v40, 7  ;;  %v1007_v44 = vshrl.u32 %v4478_v41, 16  ;;  %v1010_v48 = vshll.u32 %v4478_v41, 16 }
 0x224   : > { %v1004_v46 = vor.u32 %v1002_v43, %v1001_v42  ;;  %v1009_v47 = vrot.slane %v1007_v44, 7  ;;  %v1005_v50 = vrot.slane %v1001_v42, 4 }
 0x226   : > { %v1019_v51 = vsel %vm5437_vm5, %v1004_v46, %v1018_v45  ;;  %v1012_v52 = vor.u32 %v1010_v48, %v1009_v47  ;;  %v1014_v53 = vrot.slane %v1009_v47, 4 }
 0x227   : > { %1020 = vst [vmem:[#allocation2] sm:$0xf] %v1019_v51 }
 0x228   : > { %v1013_v54 = vsel %vm5469_vm6, %v1005_v50, %v1012_v52  ;;  %v1023_v55 = vsel %vm5475_vm7, %v1014_v53, %v1022_v49 }
 0x229   : > { %1021 = vst [vmem:[#allocation2 + $0x4] sm:$0xf] %v1013_v54  ;;  %1024 = vst [vmem:[#allocation2 + $0x8] sm:$0x1] %v1023_v55 }
 0x22a PF: > { %p4248_p8 = scmp.ge.s32.totalorder %s5265_s24, 1 }
 0x22b   : > { %v5130_v56 = vld [vmem:[%s6211_s1] sm:$0xff] (!%p4248_p8)   ;;  %v5286_v57 = vmov (!%p4248_p8), 0.0   ;;  %v5131_v58 = vld [vmem:[%s6211_s1 + $0x8] sm:$0xff] (!%p4248_p8)   ;;  %vm5287_vm9 = vmmov (!%p4248_p8), 0   ;;  %s4480_s8 = sadd.s32 (!%p4248_p8), 128, %s4197_s23  ;;  %v5132_v59 = vld [vmem:[%s6211_s1 + $0x10] sm:$0xff] (!%p4248_p8)  }
 0x22c   : > { %1028 = sbr.rel (%p4248_p8) target bundleno = 816 (0x330), region = 56  ;;  %4960 = vmatprep.subr.bf16.mxu0 (!%p4248_p8), %v5286_v57  ;;  %4976 = vmatprep.mubr.msk.bf16.mxu0 (!%p4248_p8), %vm5287_vm9, %v5286_v57  ;;  %s1031_s14 = sshra.s32 (!%p4248_p8), %s4480_s8, 3  ;;  %v5133_v60 = vld [vmem:[%s6211_s1 + $0x18] sm:$0xff] (!%p4248_p8)   ;;  %v5134_v61 = vld [vmem:[%s6211_s1 + $0x20] sm:$0xff] (!%p4248_p8)   ;;  %v5135_v1 = vld [vmem:[%s6211_s1 + $0x28] sm:$0xff] (!%p4248_p8)  }
 0x22d   : > { %4961 = vmatpush3.bf16.msra.mxu0 (!%p4248_p8), %v5130_v56  ;;  %s4250_s15 = sshll.u32 (!%p4248_p8), %s1031_s14, 2  ;;  %v5136_v2 = vld [vmem:[%s6211_s1 + $0x30] sm:$0xff] (!%p4248_p8)   ;;  %v5137_v3 = vld [vmem:[%s6211_s1 + $0x38] sm:$0xff] (!%p4248_p8)   ;;  %v4251_v5 = vld [vmem:[%s6212_s2] ss:$0 sm:$0xff] (!%p4248_p8) }
 0x22e   : > { %4962 = vmatprep.subr.bf16.mxu0 (!%p4248_p8), %v5286_v57  ;;  %s1034_s20 = scalar_lea.vmem (!%p4248_p8), %s5377_s22, %s4250_s15  ;;  %v1184_v23 = vld [vmem:[#allocation2 + $0x6c] sm:$0xf] (!%p4248_p8)  ;;  %v1188_v27 = vld [vmem:[#allocation2 + $0x74] sm:$0x1] (!%p4248_p8) }
 0x22f   : > { %v5138_v4 = vld [vmem:[%s1034_s20] sm:$0xff] (!%p4248_p8)  }
 0x231   : > { %4963 = vmatpush3.bf16.msra.mxu0 (!%p4248_p8), %v5131_v58 }
 0x232   : > { %4964 = vmatprep.subr.bf16.mxu0 (!%p4248_p8), %v5286_v57 }
 0x235   : > { %4965 = vmatpush3.bf16.msra.mxu0 %v5132_v59 }
 0x236   : > { %4966 = vmatprep.subr.bf16.mxu0 %v5286_v57 }
 0x239   : > { %4967 = vmatpush3.bf16.msra.mxu0 %v5133_v60 }
 0x23a   : > { %4968 = vmatprep.subr.bf16.mxu0 %v5286_v57 }
 0x23d   : > { %4969 = vmatpush3.bf16.msra.mxu0 %v5134_v61 }
 0x23e   : > { %4970 = vmatprep.subr.bf16.mxu0 %v5286_v57 }
 0x241   : > { %4971 = vmatpush3.bf16.msra.mxu0 %v5135_v1 }
 0x242   : > { %4972 = vmatprep.subr.bf16.mxu0 %v5286_v57 }
 0x245   : > { %4973 = vmatpush3.bf16.msra.mxu0 %v5136_v2 }
 0x246   : > { %4974 = vmatprep.subr.bf16.mxu0 %v5286_v57 }
 0x249   : > { %4975 = vmatpush3.bf16.msra.mxu0 %v5137_v3 }
 0x24c   : > { %4977 = vmatmul.mubr.bf16.vlgmr.msra.gmra.mrb[0].mxu0 %v5138_v4 }
 0x31f   : > { %v1148_v8 = vpop.f32.mrb[0].mxu0 }
 0x320   : > { %v1149_v9 = vadd.f32 %v4251_v5, %v1148_v8  ;;  %v4978_v10 = vpop.f32.mrb[1].mxu0 }
 0x321   : > { %v1151_v11 = vpop.f32.mrb[2].mxu0 }
 0x322   : > { %v1155_v12 = vmax.f32 %v1149_v9, 0.0  ;;  %v1152_v15 = vadd.f32 %v4251_v5, %v1151_v11  ;;  %v4979_v16 = vpop.f32.mrb[3].mxu0 }
 0x324   : > { %v4481_v18 = vpack.c.bf16 %v1155_v12, %v1155_v12  ;;  %v1156_v19 = vmax.f32 %v1152_v15, 0.0 }
 0x326   : > { %v1164_v62 = vshrl.u32 %v4481_v18, 16  ;;  %v4482_v63 = vpack.c.bf16 %v1156_v19, %v1156_v19  ;;  %v1167_v21 = vshll.u32 %v4481_v18, 16 }
 0x328   : > { %v1166_v20 = vrot.slane %v1164_v62, 7  ;;  %v1172_v22 = vshrl.u32 %v4482_v63, 16  ;;  %v1175_v26 = vshll.u32 %v4482_v63, 16 }
 0x32a   : > { %v1169_v24 = vor.u32 %v1167_v21, %v1166_v20  ;;  %v1174_v25 = vrot.slane %v1172_v22, 7  ;;  %v1170_v6 = vrot.slane %v1166_v20, 4 }
 0x32c   : > { %v1185_v29 = vsel %vm5437_vm5, %v1169_v24, %v1184_v23  ;;  %v1177_v30 = vor.u32 %v1175_v26, %v1174_v25  ;;  %v1179_v7 = vrot.slane %v1174_v25, 4 }
 0x32d   : > { %1186 = vst [vmem:[#allocation2 + $0x6c] sm:$0xf] %v1185_v29 }
 0x32e   : > { %v1178_v31 = vsel %vm5469_vm6, %v1170_v6, %v1177_v30  ;;  %v1189_v13 = vsel %vm5475_vm7, %v1179_v7, %v1188_v27 }
 0x32f   : > { %1187 = vst [vmem:[#allocation2 + $0x70] sm:$0xf] %v1178_v31  ;;  %1190 = vst [vmem:[#allocation2 + $0x74] sm:$0x1] %v1189_v13 }
 0x330 PF: > { %v5139_v32 = vld [vmem:[%s6213_s3 + $0x40] sm:$0xff]   ;;  %v5143_v17 = vld [vmem:[%s6213_s3 + $0x48] sm:$0xff]   ;;  %v5147_v36 = vld [vmem:[%s6213_s3 + $0x50] sm:$0xff]   ;;  %vm1287_vm10 = vsmask.f32 3328  ;;  %vm1570_vm13 = vcmask 1042432  }
 0x331   : > { %v5140_v0 = vld [vmem:[%s6213_s3] sm:$0xff]   ;;  %4620 = vmatprep.subr.bf16.mxu0 %v5139_v32  ;;  %v5144_v14 = vld [vmem:[%s6213_s3 + $0x8] sm:$0xff]   ;;  %v5148_v37 = vld [vmem:[%s6213_s3 + $0x10] sm:$0xff]   ;;  %vm1288_vm11 = vsmask.f32 7440  ;;  %vm1571_vm14 = vcmask 1046532  }
 0x332   : > { %v5141_v28 = vld [vmem:[%s6213_s3 + $0xc0] sm:$0xff]   ;;  %4621 = vmatpush3.bf16.msra.mxu0 %v5140_v0  ;;  %v5145_v34 = vld [vmem:[%s6213_s3 + $0xc8] sm:$0xff]   ;;  %v5149_v38 = vld [vmem:[%s6213_s3 + $0xd0] sm:$0xff]  }
 0x333   : > { %v5142_v33 = vld [vmem:[%s6213_s3 + $0x80] sm:$0xff]   ;;  %4684 = vmatprep.subr.bf16.mxu1 %v5141_v28  ;;  %4622 = vmatprep.subr.bf16.mxu0 %v5143_v17  ;;  %v5146_v35 = vld [vmem:[%s6213_s3 + $0x88] sm:$0xff]   ;;  %v5150_v39 = vld [vmem:[%s6213_s3 + $0x90] sm:$0xff]  }
 0x334   : > { %4685 = vmatpush3.bf16.msra.mxu1 %v5142_v33  ;;  %v5151_v40 = vld [vmem:[%s6213_s3 + $0x58] sm:$0xff]   ;;  %v5155_v44 = vld [vmem:[%s6213_s3 + $0x60] sm:$0xff]   ;;  %v5159_v48 = vld [vmem:[%s6213_s3 + $0x68] sm:$0xff]  }
 0x335   : > { %4686 = vmatprep.subr.bf16.mxu1 %v5145_v34  ;;  %v5152_v41 = vld [vmem:[%s6213_s3 + $0x18] sm:$0xff]   ;;  %v5156_v45 = vld [vmem:[%s6213_s3 + $0x20] sm:$0xff]   ;;  %v5160_v49 = vld [vmem:[%s6213_s3 + $0x28] sm:$0xff]  }
 0x336   : > { %4623 = vmatpush3.bf16.msra.mxu0 %v5144_v14  ;;  %v5153_v42 = vld [vmem:[%s6213_s3 + $0xd8] sm:$0xff]   ;;  %v5157_v46 = vld [vmem:[%s6213_s3 + $0xe0] sm:$0xff]   ;;  %v5161_v50 = vld [vmem:[%s6213_s3 + $0xe8] sm:$0xff]  }
 0x337   : > { %4624 = vmatprep.subr.bf16.mxu0 %v5147_v36  ;;  %v5154_v43 = vld [vmem:[%s6213_s3 + $0x98] sm:$0xff]   ;;  %v5158_v47 = vld [vmem:[%s6213_s3 + $0xa0] sm:$0xff]   ;;  %v5162_v51 = vld [vmem:[%s6213_s3 + $0xa8] sm:$0xff]  }
 0x338   : > { %4687 = vmatpush3.bf16.msra.mxu1 %v5146_v35  ;;  %v5163_v52 = vld [vmem:[%s6213_s3 + $0x70] sm:$0xff]   ;;  %v5167_v56 = vld [vmem:[%s6213_s3 + $0x78] sm:$0xff]   ;;  %v1263_v59 = vld [vmem:[#allocation2] sm:$0xf] }
 0x339   : > { %4688 = vmatprep.subr.bf16.mxu1 %v5149_v38  ;;  %v5164_v53 = vld [vmem:[%s6213_s3 + $0x30] sm:$0xff]   ;;  %v5168_v57 = vld [vmem:[%s6213_s3 + $0x38] sm:$0xff]   ;;  %v1264_v60 = vld [vmem:[#allocation2 + $0x4] sm:$0xf]  ;;  %v1291_v1 = vshrl.u32 %v1263_v59, 16  ;;  %v1294_v2 = vshll.u32 %v1263_v59, 16 }
 0x33a   : > { %4625 = vmatpush3.bf16.msra.mxu0 %v5148_v37  ;;  %v5165_v54 = vld [vmem:[%s6213_s3 + $0xf0] sm:$0xff]   ;;  %v5169_v58 = vld [vmem:[%s6213_s3 + $0xf8] sm:$0xff]   ;;  %v1265_v61 = vld [vmem:[#allocation2 + $0x8] sm:$0x1]  ;;  %v1300_v3 = vshll.u32 %v1264_v60, 16  ;;  %v1304_v4 = vshrl.u32 %v1264_v60, 16 }
 0x33b   : > { %4626 = vmatprep.subr.bf16.mxu0 %v5151_v40  ;;  %v5166_v55 = vld [vmem:[%s6213_s3 + $0xb0] sm:$0xff]   ;;  %v1310_v5 = vshll.u32 %v1265_v61, 16  ;;  %v5170_v8 = vld [vmem:[%s6213_s3 + $0xb8] sm:$0xff]   ;;  %v1293_v9 = vrot.slane %v1291_v1, 4  ;;  %v1296_v10 = vrot.slane %v1294_v2, 5  ;;  %vm5703_vm12 = vmor %vm1287_vm10, %vm1288_vm11 }
 0x33c   : > { %4689 = vmatpush3.bf16.msra.mxu1 %v5150_v39  ;;  %v1302_v12 = vrot.slane %v1300_v3, 5  ;;  %v1306_v15 = vrot.slane %v1304_v4, 4  ;;  %v5172_v18 = vld [vmem:[%s6213_s3 + $0x140] sm:$0xff]   ;;  %v5173_v63 = vld [vmem:[#allocation2 + $0xc] sm:$0xff]   ;;  %vm5710_vm15 = vmor %vm1570_vm13, %vm1571_vm14 }
 0x33d   : > { %4690 = vmatprep.subr.bf16.mxu1 %v5153_v42  ;;  %v1297_v16 = vor.u32 %v1296_v10, %v1293_v9  ;;  %v1312_v62 = vrot.slane %v1310_v5, 5  ;;  %v5171_v23 = vld [vmem:[#allocation2] sm:$0xff]   ;;  %3398 = vmatprep.mubr.bf16.mxu1 %v5173_v63  ;;  %v1524_v6 = vld [vmem:[#allocation2 + $0x8] sm:$0x1]  ;;  %v1266_v7 = vld [vmem:[#allocation2 + $0xc] sm:$0xf] }
 0x33e   : > { %4627 = vmatpush3.bf16.msra.mxu0 %v5152_v41  ;;  %v1307_v19 = vor.u32 %v1306_v15, %v1302_v12  ;;  %v1522_v24 = vld [vmem:[#allocation2] sm:$0xe]  ;;  %v1523_v25 = vld [vmem:[#allocation2 + $0x4] sm:$0xf]  ;;  %v1578_v13 = vrot.slane %v1524_v6, 5  ;;  %v1315_v28 = vshrl.u32 %v1266_v7, 16 }
 0x33f   : > { %4628 = vmatprep.subr.bf16.mxu0 %v5155_v44  ;;  %v1298_v20 = vrot.slane %v1297_v16, 4  ;;  %v5174_v27 = vld [vmem:[%s6213_s3 + $0x100] sm:$0xff]   ;;  %v4279_v29 = vrot.slane %v1522_v24, 9  ;;  %v1575_v30 = vrot.slane %v1523_v25, 5  ;;  %v1267_v32 = vld [vmem:[#allocation2 + $0x10] sm:$0xf] }
 0x340   : > { %4691 = vmatpush3.bf16.msra.mxu1 %v5154_v43  ;;  %v1308_v22 = vrot.slane %v1307_v19, 4  ;;  %v1268_v0 = vld [vmem:[#allocation2 + $0x14] sm:$0x1]  ;;  %v1318_v34 = vshll.u32 %v1266_v7, 16  ;;  %v1317_v35 = vrot.slane %v1315_v28, 4  ;;  %v1324_v36 = vshll.u32 %v1267_v32, 16 }
 0x341   : > { %4692 = vmatprep.subr.bf16.mxu1 %v5157_v46  ;;  %v1303_v26 = vsel %vm5703_vm12, %v1298_v20, %v1302_v12  ;;  %v1576_v17 = vsel %vm5710_vm15, %v4279_v29, %v1575_v30  ;;  %v1577_v14 = vrot.slane %v1575_v30, 4  ;;  %v1328_v37 = vshrl.u32 %v1267_v32, 16  ;;  %v5176_v41 = vld [vmem:[%s6213_s3 + $0x148] sm:$0xff]   ;;  %v1270_v59 = vld [vmem:[#allocation2 + $0x1c] sm:$0xf] }
 0x342   : > { %4629 = vmatpush3.bf16.msra.mxu0 %v5156_v45  ;;  %v1313_v31 = vsel %vm5703_vm12, %v1308_v22, %v1312_v62  ;;  %v1334_v38 = vshll.u32 %v1268_v0, 16  ;;  %v1320_v40 = vrot.slane %v1318_v34, 5  ;;  %v1326_v43 = vrot.slane %v1324_v36, 5  ;;  %v5177_v45 = vld [vmem:[#allocation2 + $0x18] sm:$0xff]   ;;  %v1271_v60 = vld [vmem:[#allocation2 + $0x20] sm:$0x1] }
 0x343   : > { %4630 = vmatprep.subr.bf16.mxu0 %v5159_v48  ;;  %v4271_v33 = vcombine.low %v1303_v26, %v1313_v31  ;;  %v1579_v39 = vsel %vm5710_vm15, %v1577_v14, %v1578_v13  ;;  %v1330_v44 = vrot.slane %v1328_v37, 4  ;;  %v5178_v48 = vld [vmem:[%s6213_s3 + $0x108] sm:$0xff]   ;;  %v1348_v10 = vshll.u32 %v1270_v59, 16  ;;  %v5180_v62 = vld [vmem:[%s6213_s3 + $0x150] sm:$0xff]   ;;  %v1528_v6 = vld [vmem:[#allocation2 + $0x18] sm:$0xe] }
 0x344   : > { %4693 = vmatpush3.bf16.msra.mxu1 %v5158_v47  ;;  %v4287_v42 = vcombine.low %v1576_v17, %v1579_v39  ;;  %v1321_v46 = vor.u32 %v1320_v40, %v1317_v35  ;;  %v1336_v47 = vrot.slane %v1334_v38, 5  ;;  %v1352_v12 = vshrl.u32 %v1270_v59, 16  ;;  %v5181_v63 = vld [vmem:[#allocation2 + $0x24] sm:$0xff]   ;;  %v5182_v26 = vld [vmem:[%s6213_s3 + $0x110] sm:$0xff]   ;;  %v1529_v29 = vld [vmem:[#allocation2 + $0x1c] sm:$0xf] }
 0x345   : > { %4694 = vmatprep.subr.bf16.mxu1 %v5161_v50  ;;  %3301 = vmatprep.mubr.bf16.mxu0 %v4271_v33  ;;  %v1525_v50 = vld [vmem:[#allocation2 + $0xc] sm:$0xe]  ;;  %v1358_v19 = vshll.u32 %v1271_v60, 16  ;;  %v1350_v22 = vrot.slane %v1348_v10, 5  ;;  %v1530_v30 = vld [vmem:[#allocation2 + $0x20] sm:$0x1] }
 0x346   : > { %4631 = vmatpush3.bf16.msra.mxu0 %v5160_v49  ;;  %v1331_v49 = vor.u32 %v1330_v44, %v1326_v43  ;;  %v4281_v31 = vrot.slane %v1528_v6, 9  ;;  %v1589_v13 = vrot.slane %v1529_v29, 5  ;;  %v1592_v32 = vrot.slane %v1530_v30, 5  ;;  %v1272_v0 = vld [vmem:[#allocation2 + $0x24] sm:$0xf]  ;;  %v5179_v39 = vld [vmem:[#allocation2 + $0x18] sm:$0xff]  }
 0x347   : > { %4632 = vmatprep.subr.bf16.mxu0 %v5163_v52  ;;  %v1527_v52 = vld [vmem:[#allocation2 + $0x14] sm:$0x1]  ;;  %v1360_v25 = vrot.slane %v1358_v19, 5  ;;  %v1273_v33 = vld [vmem:[#allocation2 + $0x28] sm:$0xf]  ;;  %v1363_v14 = vshrl.u32 %v1272_v0, 16 }
 0x348   : > { %4695 = vmatpush3.bf16.msra.mxu1 %v5162_v51  ;;  %v1526_v51 = vld [vmem:[#allocation2 + $0x10] sm:$0xf]  ;;  %v1274_v17 = vld [vmem:[#allocation2 + $0x2c] sm:$0x1]  ;;  %v1590_v35 = vsel %vm5710_vm15, %v4281_v31, %v1589_v13  ;;  %v1591_v36 = vrot.slane %v1589_v13, 4  ;;  %v1366_v37 = vshll.u32 %v1272_v0, 16 }
 0x349   : > { %4696 = vmatprep.subr.bf16.mxu1 %v5165_v54  ;;  %v4280_v54 = vrot.slane %v1525_v50, 9  ;;  %v1365_v40 = vrot.slane %v1363_v14, 4  ;;  %v5188_v10 = vld [vmem:[%s6213_s3 + $0x180] sm:$0xff]   ;;  %v1536_v14 = vld [vmem:[#allocation2 + $0x38] sm:$0x1] }
 0x34a   : > { %4633 = vmatpush3.bf16.msra.mxu0 %v5164_v53  ;;  %v1322_v53 = vrot.slane %v1321_v46, 4  ;;  %v1593_v44 = vsel %vm5710_vm15, %v1591_v36, %v1592_v32  ;;  %v1382_v46 = vshll.u32 %v1274_v17, 16  ;;  %v5190_v30 = vld [vmem:[%s6213_s3 + $0x160] sm:$0xff]   ;;  %v1535_v17 = vld [vmem:[#allocation2 + $0x34] sm:$0xf] }
 0x34b   : > { %4634 = vmatprep.subr.bf16.mxu0 %v5167_v56  ;;  %v1585_v56 = vrot.slane %v1527_v52, 5  ;;  %v5192_v32 = vld [vmem:[%s6213_s3 + $0x120] sm:$0xff]   ;;  %v5189_v36 = vld [vmem:[#allocation2 + $0x30] sm:$0xff]  }
 0x34c   : > { %4697 = vmatpush3.bf16.msra.mxu1 %v5166_v55  ;;  %v1582_v55 = vrot.slane %v1526_v51, 5  ;;  %v1327_v1 = vsel %vm5703_vm12, %v1322_v53, %v1326_v43  ;;  %v1384_v53 = vrot.slane %v1382_v46, 5  ;;  %v1279_v46 = vld [vmem:[#allocation2 + $0x40] sm:$0xf] }
 0x34d   : > { %4698 = vmatprep.subr.bf16.mxu1 %v5169_v58  ;;  %v1332_v58 = vrot.slane %v1331_v49, 4  ;;  %v4289_v49 = vcombine.low %v1590_v35, %v1593_v44  ;;  %v5194_v44 = vld [vmem:[%s6213_s3 + $0x188] sm:$0xff]  }
 0x34e   : > { %4635 = vmatpush3.bf16.msra.mxu0 %v5168_v57  ;;  %v1269_v57 = vld [vmem:[#allocation2 + $0x18] sm:$0xf]  ;;  %v1583_v2 = vsel %vm5710_vm15, %v4280_v54, %v1582_v55  ;;  %v1584_v3 = vrot.slane %v1582_v55, 4 }
 0x34f   : > { %4748 = vmatprep.subr.bf16.mxu0 %v5172_v18  ;;  %v1339_v61 = vshrl.u32 %v1269_v57, 16  ;;  %v1342_v4 = vshll.u32 %v1269_v57, 16  ;;  %v1337_v5 = vsel %vm5703_vm12, %v1332_v58, %v1336_v47  ;;  %v5184_v47 = vld [vmem:[%s6213_s3 + $0x158] sm:$0xff]   ;;  %v1532_v57 = vld [vmem:[#allocation2 + $0x28] sm:$0xf] }
 0x350   : > { %4699 = vmatpush3.bf16.msra.mxu1 %v5170_v8  ;;  %v5175_v8 = vld [vmem:[#allocation2 + $0xc] sm:$0xff]   ;;  %v4272_v15 = vcombine.low %v1327_v1, %v1337_v5  ;;  %v1586_v16 = vsel %vm5710_vm15, %v1584_v3, %v1585_v56  ;;  %v5186_v54 = vld [vmem:[%s6213_s3 + $0x118] sm:$0xff]   ;;  %v1531_v56 = vld [vmem:[#allocation2 + $0x24] sm:$0xe] }
 0x351   : > { %3302 = vmatmul.mubr.bf16.vlgmr.msra.gmra.mrb[0].mxu0 %v5171_v23  ;;  %v1341_v9 = vrot.slane %v1339_v61, 4  ;;  %v1344_v18 = vrot.slane %v1342_v4, 5  ;;  %v4288_v20 = vcombine.low %v1583_v2, %v1586_v16  ;;  %v1354_v23 = vrot.slane %v1352_v12, 4  ;;  %v1533_v58 = vld [vmem:[#allocation2 + $0x2c] sm:$0x1]  ;;  %v5183_v3 = vld [vmem:[#allocation2 + $0x24] sm:$0xff]  }
 0x352   : > { %4749 = vmatpush3.bf16.msra.mxu0 %v5174_v27  ;;  %3309 = vmatprep.mubr.bf16.mxu0 %v4272_v15  ;;  %v4282_v60 = vrot.slane %v1531_v56, 9  ;;  %v1596_v61 = vrot.slane %v1532_v57, 5  ;;  %v1599_v1 = vrot.slane %v1533_v58, 5  ;;  %v5187_v4 = vld [vmem:[%s6213_s3 + $0x1c0] sm:$0xff]   ;;  %v1275_v12 = vld [vmem:[#allocation2 + $0x30] sm:$0xf] }
 0x353   : > { %3399 = vmatmul.mubr.bf16.vlgmr.msra.gmra.mrb[0].mxu1 %v4287_v42  ;;  %4750 = vmatprep.subr.bf16.mxu0 %v5176_v41  ;;  %v1345_v24 = vor.u32 %v1344_v18, %v1341_v9  ;;  %v1355_v27 = vor.u32 %v1354_v23, %v1350_v22  ;;  %v1372_v41 = vshll.u32 %v1273_v33, 16  ;;  %v1376_v42 = vshrl.u32 %v1273_v33, 16  ;;  %v1276_v16 = vld [vmem:[#allocation2 + $0x34] sm:$0xf]  ;;  %v1277_v18 = vld [vmem:[#allocation2 + $0x38] sm:$0x1] }
 0x354   : > { %3406 = vmatprep.mubr.bf16.mxu1 %v5177_v45  ;;  %v1368_v45 = vrot.slane %v1366_v37, 5  ;;  %v1598_v9 = vrot.slane %v1596_v61, 4  ;;  %4812 = vmatprep.subr.bf16.mxu1 %v5187_v4  ;;  %v1387_v19 = vshrl.u32 %v1275_v12, 16  ;;  %v1400_v23 = vshrl.u32 %v1276_v16, 16  ;;  %v5198_v4 = vld [vmem:[%s6213_s3 + $0x128] sm:$0xff]  }
 0x355   : > { %v1346_v7 = vrot.slane %v1345_v24, 4  ;;  %v1356_v28 = vrot.slane %v1355_v27, 4  ;;  %v1374_v50 = vrot.slane %v1372_v41, 5  ;;  %v1378_v51 = vrot.slane %v1376_v42, 4  ;;  %4813 = vmatpush3.bf16.msra.mxu1 %v5188_v10  ;;  %v1539_v10 = vld [vmem:[#allocation2 + $0x44] sm:$0x1] }
 0x356   : > { %4751 = vmatpush3.bf16.msra.mxu0 %v5178_v48  ;;  %v5185_v48 = vld [vmem:[#allocation2 + $0x30] sm:$0xff]   ;;  %v1369_v52 = vor.u32 %v1368_v45, %v1365_v40  ;;  %v1406_v27 = vshll.u32 %v1277_v18, 16  ;;  %v1402_v29 = vrot.slane %v1400_v23, 4  ;;  %v1603_v37 = vrot.slane %v1535_v17, 5  ;;  %v1278_v45 = vld [vmem:[#allocation2 + $0x3c] sm:$0xf] }
 0x357   : > { %4752 = vmatprep.subr.bf16.mxu0 %v5180_v62  ;;  %v1351_v34 = vsel %vm5703_vm12, %v1346_v7, %v1350_v22  ;;  %v1361_v38 = vsel %vm5703_vm12, %v1356_v28, %v1360_v25  ;;  %v1379_v55 = vor.u32 %v1378_v51, %v1374_v50  ;;  %v1390_v62 = vshll.u32 %v1275_v12, 16  ;;  %v5191_v7 = vld [vmem:[#allocation2 + $0x3c] sm:$0xff]   ;;  %v1534_v28 = vld [vmem:[#allocation2 + $0x30] sm:$0xe] }
 0x358   : > { %v4273_v43 = vcombine.low %v1351_v34, %v1361_v38  ;;  %v1370_v59 = vrot.slane %v1369_v52, 4  ;;  %v1396_v22 = vshll.u32 %v1276_v16, 16  ;;  %v1389_v25 = vrot.slane %v1387_v19, 4  ;;  %v5195_v16 = vld [vmem:[#allocation2 + $0x3c] sm:$0xff]  }
 0x359   : > { %3310 = vmatmul.mubr.bf16.gmra.mrb[4].mxu0 %v5175_v8  ;;  %v1380_v2 = vrot.slane %v1379_v55, 4  ;;  %v1597_v8 = vsel %vm5710_vm15, %v4282_v60, %v1596_v61  ;;  %v1408_v13 = vrot.slane %v1406_v27, 5  ;;  %v4283_v34 = vrot.slane %v1534_v28, 9  ;;  %v1281_v27 = vld [vmem:[#allocation2 + $0x48] sm:$0xf] }
 0x35a   : > { %4753 = vmatpush3.bf16.msra.mxu0 %v5182_v26  ;;  %3317 = vmatprep.mubr.bf16.mxu0 %v4273_v43  ;;  %v1375_v5 = vsel %vm5703_vm12, %v1370_v59, %v1374_v50  ;;  %v1392_v26 = vrot.slane %v1390_v62, 5  ;;  %v1398_v6 = vrot.slane %v1396_v22, 5  ;;  %v1606_v38 = vrot.slane %v1536_v14, 5  ;;  %v5196_v59 = vld [vmem:[%s6213_s3 + $0x168] sm:$0xff]   ;;  %v5199_v62 = vld [vmem:[%s6213_s3 + $0x1d0] sm:$0xff]  }
 0x35b   : > { %3407 = vmatmul.mubr.bf16.gmra.mrb[4].mxu1 %v4288_v20  ;;  %4754 = vmatprep.subr.bf16.mxu0 %v5184_v47  ;;  %v1385_v15 = vsel %vm5703_vm12, %v1380_v2, %v1384_v53  ;;  %v1600_v20 = vsel %vm5710_vm15, %v1598_v9, %v1599_v1  ;;  %v1604_v42 = vsel %vm5710_vm15, %v4283_v34, %v1603_v37  ;;  %v1605_v43 = vrot.slane %v1603_v37, 4  ;;  %v5197_v1 = vld [vmem:[#allocation2 + $0x48] sm:$0xff]   ;;  %v1538_v9 = vld [vmem:[#allocation2 + $0x40] sm:$0xf]  ;;  %v5204_v37 = vld [vmem:[%s6213_s3 + $0x170] sm:$0xff]  }
 0x35c   : > { %3414 = vmatprep.mubr.bf16.mxu1 %v5181_v63  ;;  %v4274_v63 = vcombine.low %v1375_v5, %v1385_v15  ;;  %v4290_v24 = vcombine.low %v1597_v8, %v1600_v20  ;;  %v1393_v31 = vor.u32 %v1392_v26, %v1389_v25  ;;  %v1403_v0 = vor.u32 %v1402_v29, %v1398_v6  ;;  %v1537_v5 = vld [vmem:[#allocation2 + $0x3c] sm:$0xe] }
 0x35d   : > { %v1414_v50 = vshll.u32 %v1278_v45, 16  ;;  %v1420_v51 = vshll.u32 %v1279_v46, 16  ;;  %v1607_v52 = vsel %vm5710_vm15, %v1605_v43, %v1606_v38  ;;  %v1424_v53 = vshrl.u32 %v1279_v46, 16  ;;  %v5201_v26 = vld [vmem:[%s6213_s3 + $0x1d8] sm:$0xff]   ;;  %v1540_v43 = vld [vmem:[#allocation2 + $0x48] sm:$0xe] }
 0x35e   : > { %4755 = vmatpush3.bf16.msra.mxu0 %v5186_v54  ;;  %v1394_v33 = vrot.slane %v1393_v31, 4  ;;  %v1404_v35 = vrot.slane %v1403_v0, 4  ;;  %v4291_v55 = vcombine.low %v1604_v42, %v1607_v52  ;;  %v4284_v12 = vrot.slane %v1537_v5, 9  ;;  %v5206_v42 = vld [vmem:[%s6213_s3 + $0x130] sm:$0xff]   ;;  %v1541_v46 = vld [vmem:[#allocation2 + $0x4c] sm:$0xf] }
 0x35f   : > { %4756 = vmatprep.subr.bf16.mxu0 %v5190_v30  ;;  %v1416_v57 = vrot.slane %v1414_v50, 5  ;;  %v1422_v58 = vrot.slane %v1420_v51, 5  ;;  %v1426_v60 = vrot.slane %v1424_v53, 4  ;;  %v1610_v18 = vrot.slane %v1538_v9, 5  ;;  %v1283_v30 = vld [vmem:[#allocation2 + $0x50] sm:$0x1] }
 0x360   : > { %v1399_v40 = vsel %vm5703_vm12, %v1394_v33, %v1398_v6  ;;  %v1409_v41 = vsel %vm5703_vm12, %v1404_v35, %v1408_v13  ;;  %v1613_v19 = vrot.slane %v1539_v10, 5  ;;  %v1282_v6 = vld [vmem:[#allocation2 + $0x4c] sm:$0xf]  ;;  %v1438_v31 = vshll.u32 %v1281_v27, 16  ;;  %v5207_v53 = vld [vmem:[%s6213_s3 + $0x1e0] sm:$0xff]  }
 0x361   : > { %3318 = vmatmul.mubr.bf16.gmra.mrb[8].mxu0 %v5179_v39  ;;  %v5193_v39 = vld [vmem:[%s6213_s3 + $0x1c8] sm:$0xff]   ;;  %v4275_v47 = vcombine.low %v1399_v40, %v1409_v41  ;;  %v1427_v2 = vor.u32 %v1426_v60, %v1422_v58  ;;  %v1611_v22 = vsel %vm5710_vm15, %v4284_v12, %v1610_v18  ;;  %v1612_v23 = vrot.slane %v1610_v18, 4  ;;  %v5205_v40 = vld [vmem:[#allocation2 + $0x54] sm:$0xff]  }
 0x362   : > { %3325 = vmatprep.mubr.bf16.mxu0 %v4274_v63  ;;  %4757 = vmatpush3.bf16.msra.mxu0 %v5192_v32  ;;  %v1444_v13 = vshll.u32 %v1282_v6, 16  ;;  %v5202_v32 = vld [vmem:[%s6213_s3 + $0x198] sm:$0xff]   ;;  %v1448_v28 = vshrl.u32 %v1282_v6, 16  ;;  %v1454_v33 = vshll.u32 %v1283_v30, 16  ;;  %v1440_v14 = vrot.slane %v1438_v31, 5  ;;  %v5210_v5 = vld [vmem:[%s6213_s3 + $0x1a8] sm:$0xff]  }
 0x363   : > { %3415 = vmatmul.mubr.bf16.gmra.mrb[8].mxu1 %v4289_v49  ;;  %4814 = vmatprep.subr.bf16.mxu1 %v5193_v39  ;;  %v1411_v49 = vshrl.u32 %v1278_v45, 16  ;;  %v1428_v15 = vrot.slane %v1427_v2, 4  ;;  %v1614_v29 = vsel %vm5710_vm15, %v1612_v23, %v1613_v19  ;;  %v5203_v45 = vld [vmem:[#allocation2 + $0x48] sm:$0xff]   ;;  %v1617_v50 = vrot.slane %v1541_v46, 5  ;;  %v1285_v60 = vld [vmem:[#allocation2 + $0x58] sm:$0xf] }
 0x364   : > { %3422 = vmatprep.mubr.bf16.mxu1 %v5185_v48  ;;  %v1280_v48 = vld [vmem:[#allocation2 + $0x44] sm:$0x1]  ;;  %4815 = vmatpush3.bf16.msra.mxu1 %v5194_v44  ;;  %v4292_v0 = vcombine.low %v1611_v22, %v1614_v29  ;;  %v1446_v34 = vrot.slane %v1444_v13, 5  ;;  %v1450_v35 = vrot.slane %v1448_v28, 4  ;;  %v1456_v39 = vrot.slane %v1454_v33, 5 }
 0x365   : > { %v1430_v54 = vshll.u32 %v1280_v48, 16  ;;  %v1413_v56 = vrot.slane %v1411_v49, 4  ;;  %4758 = vmatprep.subr.bf16.mxu0 %v5196_v59  ;;  %4816 = vmatprep.subr.bf16.mxu1 %v5199_v62  ;;  %v4285_v48 = vrot.slane %v1540_v43, 9  ;;  %v1284_v59 = vld [vmem:[#allocation2 + $0x54] sm:$0xf]  ;;  %v1472_v9 = vshrl.u32 %v1285_v60, 16 }
 0x366   : > { %4759 = vmatpush3.bf16.msra.mxu0 %v5198_v4  ;;  %v1451_v38 = vor.u32 %v1450_v35, %v1446_v34  ;;  %v1459_v2 = vshrl.u32 %v1284_v59, 16  ;;  %v1468_v4 = vshll.u32 %v1285_v60, 16  ;;  %v5212_v62 = vld [vmem:[%s6213_s3 + $0x178] sm:$0xff]   ;;  %v5213_v22 = vld [vmem:[#allocation2 + $0x60] sm:$0xff]   ;;  %v1997_v35 = vld [vmem:[#allocation2 + $0xc] sm:$0xe] }
 0x367   : > { %v1417_v61 = vor.u32 %v1416_v57, %v1413_v56  ;;  %4760 = vmatprep.subr.bf16.mxu0 %v5204_v37  ;;  %v1619_v56 = vrot.slane %v1617_v50, 4  ;;  %v5208_v57 = vld [vmem:[%s6213_s3 + $0x1a0] sm:$0xff]   ;;  %v1474_v18 = vrot.slane %v1472_v9, 4  ;;  %v1544_v6 = vld [vmem:[#allocation2 + $0x58] sm:$0xf] }
 0x368   : > { %v1452_v44 = vrot.slane %v1451_v38, 4  ;;  %v1461_v12 = vrot.slane %v1459_v2, 4  ;;  %v1545_v29 = vld [vmem:[#allocation2 + $0x5c] sm:$0x1]  ;;  %v1624_v31 = vrot.slane %v1544_v6, 5 }
 0x369   : > { %3326 = vmatmul.mubr.bf16.gmra.mrb[12].mxu0 %v5183_v3  ;;  %v1432_v3 = vrot.slane %v1430_v54, 5  ;;  %v1418_v8 = vrot.slane %v1417_v61, 4  ;;  %v1627_v13 = vrot.slane %v1545_v29, 5  ;;  %v1999_v38 = vld [vmem:[#allocation2 + $0x14] sm:$0x1]  ;;  %v5218_v43 = vld [vmem:[%s6213_s3 + $0x1b8] sm:$0xff]  }
 0x36a   : > { %3333 = vmatprep.mubr.bf16.mxu0 %v4275_v47  ;;  %v1542_v47 = vld [vmem:[#allocation2 + $0x50] sm:$0x1]  ;;  %4761 = vmatpush3.bf16.msra.mxu0 %v5206_v42  ;;  %v1457_v52 = vsel %vm5703_vm12, %v1452_v44, %v1456_v39  ;;  %v4311_v39 = vrot.slane %v1997_v35, 9  ;;  %v2050_v42 = vrot.slane %v1999_v38, 5  ;;  %v1741_v44 = vld [vmem:[#allocation2 + $0xc] sm:$0xf] }
 0x36b   : > { %3423 = vmatmul.mubr.bf16.gmra.mrb[12].mxu1 %v4290_v24  ;;  %v1423_v63 = vsel %vm5703_vm12, %v1418_v8, %v1422_v58  ;;  %v1433_v20 = vsel %vm5703_vm12, %v1428_v15, %v1432_v3  ;;  %v5200_v24 = vld [vmem:[%s6213_s3 + $0x190] sm:$0xff]   ;;  %v1620_v51 = vrot.slane %v1542_v47, 5  ;;  %v5209_v58 = vld [vmem:[%s6213_s3 + $0x1e8] sm:$0xff]   ;;  %v1462_v3 = vshll.u32 %v1284_v59, 16  ;;  %4762 = vmatprep.subr.bf16.mxu0 %v5212_v62  ;;  %v2000_v62 = vld [vmem:[#allocation2 + $0x18] sm:$0xe] }
 0x36c   : > { %3430 = vmatprep.mubr.bf16.mxu1 %v5191_v7  ;;  %v4276_v25 = vcombine.low %v1423_v63, %v1433_v20  ;;  %4817 = vmatpush3.bf16.msra.mxu1 %v5200_v24  ;;  %v1435_v7 = vshrl.u32 %v1281_v27, 16  ;;  %v5214_v24 = vld [vmem:[%s6213_s3 + $0x138] sm:$0xff]   ;;  %v1742_v47 = vld [vmem:[#allocation2 + $0x10] sm:$0xf] }
 0x36d   : > { %4818 = vmatprep.subr.bf16.mxu1 %v5201_v26  ;;  %v1621_v61 = vsel %vm5710_vm15, %v1619_v56, %v1620_v51  ;;  %v1464_v15 = vrot.slane %v1462_v3, 5  ;;  %v5211_v27 = vld [vmem:[#allocation2 + $0x54] sm:$0xff]   ;;  %v1775_v51 = vshll.u32 %v1742_v47, 16  ;;  %v5219_v56 = vld [vmem:[%s6213_s3 + $0x200] sm:$0xff]  }
 0x36e   : > { %v1437_v17 = vrot.slane %v1435_v7, 4  ;;  %4763 = vmatpush3.bf16.msra.mxu0 %v5214_v24  ;;  %v2216_v3 = vld [vmem:[#allocation2 + $0x20] sm:$0x1]  ;;  %v2001_v24 = vld [vmem:[#allocation2 + $0x1c] sm:$0xf] }
 0x36f   : > { %v1465_v19 = vor.u32 %v1464_v15, %v1461_v12  ;;  %v1777_v60 = vrot.slane %v1775_v51, 5  ;;  %4980 = vmatprep.subr.bf16.mxu0 %v5219_v56  ;;  %v2258_v15 = vshll.u32 %v2216_v3, 16  ;;  %v2054_v6 = vrot.slane %v2001_v24, 5  ;;  %v1744_v29 = vld [vmem:[#allocation2 + $0x18] sm:$0xf] }
 0x370   : > { %4819 = vmatpush3.bf16.msra.mxu1 %v5202_v32  ;;  %v1793_v38 = vshll.u32 %v1744_v29, 16 }
 0x371   : > { %3334 = vmatmul.mubr.bf16.gmra.mrb[16].mxu0 %v5189_v36  ;;  %v1441_v36 = vor.u32 %v1440_v14, %v1437_v17  ;;  %4820 = vmatprep.subr.bf16.mxu1 %v5207_v53  ;;  %v1466_v23 = vrot.slane %v1465_v19, 4  ;;  %v1626_v17 = vrot.slane %v1624_v31, 4  ;;  %v5216_v14 = vld [vmem:[%s6213_s3 + $0x1b0] sm:$0xff]  }
 0x372   : > { %3341 = vmatprep.mubr.bf16.mxu0 %v4276_v25  ;;  %v1543_v25 = vld [vmem:[#allocation2 + $0x54] sm:$0xe] }
 0x373   : > { %3431 = vmatmul.mubr.bf16.gmra.mrb[16].mxu1 %v4291_v55  ;;  %v1442_v41 = vrot.slane %v1441_v36, 4  ;;  %v1618_v55 = vsel %vm5710_vm15, %v4285_v48, %v1617_v50  ;;  %v4286_v30 = vrot.slane %v1543_v25, 9  ;;  %v1998_v36 = vld [vmem:[#allocation2 + $0x10] sm:$0xf]  ;;  %v1628_v37 = vsel %vm5710_vm15, %v1626_v17, %v1627_v13  ;;  %v1743_v48 = vld [vmem:[#allocation2 + $0x14] sm:$0x1] }
 0x374   : > { %3438 = vmatprep.mubr.bf16.mxu1 %v5197_v1  ;;  %4821 = vmatpush3.bf16.msra.mxu1 %v5208_v57  ;;  %v1286_v1 = vld [vmem:[#allocation2 + $0x5c] sm:$0x1]  ;;  %v4293_v8 = vcombine.low %v1618_v55, %v1621_v61  ;;  %v1769_v50 = vshll.u32 %v1741_v44, 16  ;;  %v1785_v53 = vshll.u32 %v1743_v48, 16  ;;  %v2214_v57 = vld [vmem:[#allocation2 + $0x18] sm:$0xf] }
 0x375   : > { %v1447_v49 = vsel %vm5703_vm12, %v1442_v41, %v1446_v34  ;;  %4822 = vmatprep.subr.bf16.mxu1 %v5209_v58  ;;  %v1478_v10 = vshll.u32 %v1286_v1, 16  ;;  %v1625_v33 = vsel %vm5710_vm15, %v4286_v30, %v1624_v31  ;;  %v5217_v34 = vld [vmem:[%s6213_s3 + $0x1f8] sm:$0xff]  }
 0x376   : > { %v4277_v54 = vcombine.low %v1447_v49, %v1457_v52  ;;  %v4294_v41 = vcombine.low %v1625_v33, %v1628_v37  ;;  %v1766_v49 = vshrl.u32 %v1741_v44, 16  ;;  %v1779_v52 = vshrl.u32 %v1742_v47, 16  ;;  %v2215_v1 = vld [vmem:[#allocation2 + $0x1c] sm:$0xf] }
 0x377   : > { %v1480_v20 = vrot.slane %v1478_v10, 5  ;;  %v1771_v59 = vrot.slane %v1769_v50, 5  ;;  %v1787_v2 = vrot.slane %v1785_v53, 5  ;;  %v2252_v12 = vshrl.u32 %v2215_v1, 16 }
 0x378   : > { %4823 = vmatpush3.bf16.msra.mxu1 %v5210_v5  ;;  %v1768_v55 = vrot.slane %v1766_v49, 4  ;;  %v1781_v61 = vrot.slane %v1779_v52, 4  ;;  %v2242_v5 = vshll.u32 %v2214_v57, 16  ;;  %v1790_v37 = vshrl.u32 %v1744_v29, 16 }
 0x379   : > { %3342 = vmatmul.mubr.bf16.gmra.mrb[20].mxu0 %v5195_v16  ;;  %v1470_v16 = vrot.slane %v1468_v4, 5  ;;  %v2239_v4 = vshrl.u32 %v2214_v57, 16  ;;  %v1795_v50 = vrot.slane %v1793_v38, 5  ;;  %v5223_v57 = vld [vmem:[%s6213_s3 + $0x210] sm:$0xff]  }
 0x37a   : > { %3349 = vmatprep.mubr.bf16.mxu0 %v4277_v54  ;;  %v1772_v9 = vor.u32 %v1771_v59, %v1768_v55  ;;  %v1782_v10 = vor.u32 %v1781_v61, %v1777_v60  ;;  %v1792_v49 = vrot.slane %v1790_v37, 4  ;;  %v2003_v55 = vld [vmem:[#allocation2 + $0x24] sm:$0xe] }
 0x37b   : > { %3439 = vmatmul.mubr.bf16.gmra.mrb[20].mxu1 %v4292_v0  ;;  %v1475_v63 = vor.u32 %v1474_v18, %v1470_v16  ;;  %v1471_v7 = vsel %vm5703_vm12, %v1466_v23, %v1470_v16  ;;  %v5215_v0 = vld [vmem:[%s6213_s3 + $0x1f0] sm:$0xff]   ;;  %v2241_v16 = vrot.slane %v2239_v4, 4  ;;  %v2244_v18 = vrot.slane %v2242_v5, 5  ;;  %v2005_v4 = vld [vmem:[#allocation2 + $0x2c] sm:$0x1] }
 0x37c   : > { %3446 = vmatprep.mubr.bf16.mxu1 %v5205_v40  ;;  %4824 = vmatprep.subr.bf16.mxu1 %v5215_v0  ;;  %v2047_v40 = vrot.slane %v1998_v36, 5  ;;  %v2260_v23 = vrot.slane %v2258_v15, 5  ;;  %v1746_v0 = vld [vmem:[#allocation2 + $0x20] sm:$0x1]  ;;  %v5220_v36 = vld [vmem:[#allocation2 + $0x18] sm:$0xff]   ;;  %v4313_v5 = vrot.slane %v2003_v55, 9 }
 0x37d   : > { %v1476_v26 = vrot.slane %v1475_v63, 4  ;;  %4825 = vmatpush3.bf16.msra.mxu1 %v5216_v14  ;;  %v1773_v63 = vrot.slane %v1772_v9, 4  ;;  %v2245_v25 = vor.u32 %v2244_v18, %v2241_v16  ;;  %v1809_v44 = vshll.u32 %v1746_v0, 16  ;;  %v1747_v16 = vld [vmem:[#allocation2 + $0x24] sm:$0xf] }
 0x37e   : > { %4826 = vmatprep.subr.bf16.mxu1 %v5217_v34  ;;  %v2049_v46 = vrot.slane %v2047_v40, 4  ;;  %v2056_v34 = vrot.slane %v2054_v6, 4  ;;  %v2064_v24 = vrot.slane %v2005_v4, 5  ;;  %v1817_v0 = vshll.u32 %v1747_v16, 16 }
 0x37f   : > { %v1481_v32 = vsel %vm5703_vm12, %v1476_v26, %v1480_v20  ;;  %v1783_v20 = vrot.slane %v1782_v10, 4  ;;  %v2002_v26 = vld [vmem:[#allocation2 + $0x20] sm:$0x1]  ;;  %v1778_v30 = vsel %vm5703_vm12, %v1773_v63, %v1777_v60  ;;  %v2246_v17 = vrot.slane %v2245_v25, 4  ;;  %v1749_v25 = vld [vmem:[#allocation2 + $0x2c] sm:$0x1] }
 0x380   : > { %v4278_v28 = vcombine.low %v1471_v7, %v1481_v32  ;;  %v2051_v54 = vsel %vm5710_vm15, %v2049_v46, %v2050_v42  ;;  %v2057_v13 = vrot.slane %v2002_v26, 5  ;;  %v1745_v32 = vld [vmem:[#allocation2 + $0x1c] sm:$0xf]  ;;  %v2219_v46 = vld [vmem:[#allocation2 + $0x2c] sm:$0x1]  ;;  %v1814_v26 = vshrl.u32 %v1747_v16, 16 }
 0x381   : > { %3350 = vmatmul.mubr.bf16.gmra.mrb[24].mxu0 %v5203_v45  ;;  %v2048_v45 = vsel %vm5710_vm15, %v4311_v39, %v2047_v40  ;;  %4827 = vmatpush3.bf16.msra.mxu1 %v5218_v43  ;;  %v1788_v7 = vsel %vm5703_vm12, %v1783_v20, %v1787_v2  ;;  %v1799_v39 = vshll.u32 %v1745_v32, 16  ;;  %v2217_v40 = vld [vmem:[#allocation2 + $0x24] sm:$0xf]  ;;  %v1803_v43 = vshrl.u32 %v1745_v32, 16  ;;  %v1748_v20 = vld [vmem:[#allocation2 + $0x28] sm:$0xf] }
 0x382   : > { %3357 = vmatprep.mubr.bf16.mxu0 %v4278_v28  ;;  %v4319_v58 = vcombine.low %v2048_v45, %v2051_v54  ;;  %v5221_v28 = vld [vmem:[%s6213_s3 + $0x208] sm:$0xff]   ;;  %v4303_v33 = vcombine.low %v1778_v30, %v1788_v7  ;;  %v2058_v42 = vsel %vm5710_vm15, %v2056_v34, %v2057_v13  ;;  %v1811_v54 = vrot.slane %v1809_v44, 5  ;;  %v2220_v7 = vld [vmem:[#allocation2 + $0x30] sm:$0xf] }
 0x383   : > { %3447 = vmatmul.mubr.bf16.gmra.mrb[24].mxu1 %v4293_v8  ;;  %v2248_v8 = vshll.u32 %v2215_v1, 16  ;;  %v2218_v45 = vld [vmem:[#allocation2 + $0x28] sm:$0xf]  ;;  %v1801_v52 = vrot.slane %v1799_v39, 5  ;;  %v1805_v53 = vrot.slane %v1803_v43, 4  ;;  %v2263_v59 = vshrl.u32 %v2217_v40, 16 }
 0x384   : > { %3454 = vmatprep.mubr.bf16.mxu1 %v5213_v22  ;;  %v2254_v22 = vrot.slane %v2252_v12, 4  ;;  %v2266_v60 = vshll.u32 %v2217_v40, 16  ;;  %v2272_v61 = vshll.u32 %v2218_v45, 16  ;;  %v2004_v1 = vld [vmem:[#allocation2 + $0x28] sm:$0xf]  ;;  %v2276_v2 = vshrl.u32 %v2218_v45, 16 }
 0x385   : > { %v2250_v19 = vrot.slane %v2248_v8, 5  ;;  %v2282_v3 = vshll.u32 %v2219_v46, 16  ;;  %v5225_v8 = vld [vmem:[%s6213_s3 + $0x218] sm:$0xff]   ;;  %v2265_v10 = vrot.slane %v2263_v59, 4  ;;  %v2061_v63 = vrot.slane %v2004_v1, 5 }
 0x386   : > { %v2268_v12 = vrot.slane %v2266_v60, 5  ;;  %v2274_v15 = vrot.slane %v2272_v61, 5  ;;  %v1816_v32 = vrot.slane %v1814_v26, 4  ;;  %v1827_v34 = vshrl.u32 %v1748_v20, 16  ;;  %v2006_v46 = vld [vmem:[#allocation2 + $0x30] sm:$0xe] }
 0x387   : > { %v2255_v31 = vor.u32 %v2254_v22, %v2250_v19  ;;  %v2062_v29 = vsel %vm5710_vm15, %v4313_v5, %v2061_v63  ;;  %v2063_v30 = vrot.slane %v2061_v63, 4  ;;  %v1819_v39 = vrot.slane %v1817_v0, 5  ;;  %v1752_v63 = vld [vmem:[#allocation2 + $0x38] sm:$0x1]  ;;  %v5231_v26 = vld [vmem:[%s6213_s3 + $0x230] sm:$0xff]  }
 0x388   : > { %v1833_v40 = vshll.u32 %v1749_v25, 16  ;;  %v1829_v44 = vrot.slane %v1827_v34, 4  ;;  %v2287_v45 = vshrl.u32 %v2220_v7, 16  ;;  %v4314_v1 = vrot.slane %v2006_v46, 9  ;;  %v2223_v25 = vld [vmem:[#allocation2 + $0x3c] sm:$0xf] }
 0x389   : > { %3358 = vmatmul.mubr.bf16.gmra.mrb[28].mxu0 %v5211_v27  ;;  %v4312_v27 = vrot.slane %v2000_v62, 9  ;;  %v2256_v35 = vrot.slane %v2255_v31, 4  ;;  %v2284_v62 = vrot.slane %v2282_v3, 5  ;;  %v1857_v34 = vshll.u32 %v1752_v63, 16 }
 0x38a   : > { %3495 = vmatprep.mubr.bf16.mxu0 %v4319_v58  ;;  %v1796_v58 = vor.u32 %v1795_v50, %v1792_v49  ;;  %v1835_v49 = vrot.slane %v1833_v40, 5  ;;  %v2290_v50 = vshll.u32 %v2220_v7, 16  ;;  %v2314_v40 = vshll.u32 %v2223_v25, 16 }
 0x38b   : > { %3455 = vmatmul.mubr.bf16.gmra.mrb[28].mxu1 %v4294_v41  ;;  %v2055_v14 = vsel %vm5710_vm15, %v4312_v27, %v2054_v6  ;;  %v2251_v41 = vsel %vm5703_vm12, %v2246_v17, %v2250_v19  ;;  %v2261_v47 = vsel %vm5703_vm12, %v2256_v35, %v2260_v23  ;;  %v2278_v19 = vrot.slane %v2276_v2, 4  ;;  %v2222_v35 = vld [vmem:[#allocation2 + $0x38] sm:$0x1] }
 0x38c   : > { %v4320_v48 = vcombine.low %v2055_v14, %v2058_v42  ;;  %v4335_v51 = vcombine.low %v2251_v41, %v2261_v47  ;;  %v1797_v9 = vrot.slane %v1796_v58, 4  ;;  %v2269_v23 = vor.u32 %v2268_v12, %v2265_v10  ;;  %v5222_v42 = vld [vmem:[#allocation2 + $0x24] sm:$0xff]  }
 0x38d   : > { %v2279_v6 = vor.u32 %v2278_v19, %v2274_v15  ;;  %v2065_v17 = vsel %vm5710_vm15, %v2063_v30, %v2064_v24  ;;  %v1823_v14 = vshll.u32 %v1748_v20, 16  ;;  %v5229_v58 = vld [vmem:[%s6213_s3 + $0x228] sm:$0xff]   ;;  %v2292_v60 = vrot.slane %v2290_v50, 5 }
 0x38e   : > { %3592 = vmatprep.mubr.bf16.mxu1 %v4335_v51  ;;  %v1802_v22 = vsel %vm5703_vm12, %v1797_v9, %v1801_v52  ;;  %v2270_v13 = vrot.slane %v2269_v23, 4  ;;  %v4321_v38 = vcombine.low %v2062_v29, %v2065_v17  ;;  %v2007_v51 = vld [vmem:[#allocation2 + $0x34] sm:$0xf]  ;;  %v2306_v61 = vshll.u32 %v2222_v35, 16  ;;  %v2225_v35 = vld [vmem:[#allocation2 + $0x44] sm:$0x1] }
 0x38f   : > { %v1825_v43 = vrot.slane %v1823_v14, 5  ;;  %v2068_v5 = vrot.slane %v2007_v51, 5  ;;  %v2316_v50 = vrot.slane %v2314_v40, 5  ;;  %v2330_v51 = vshll.u32 %v2225_v35, 16 }
 0x390   : > { %v2275_v37 = vsel %vm5703_vm12, %v2270_v13, %v2274_v15  ;;  %v2308_v12 = vrot.slane %v2306_v61, 5 }
 0x391   : > { %3496 = vmatmul.mubr.bf16.vlgmr.msra.gmra.mrb[32].mxu0 %v4303_v33  ;;  %v2280_v33 = vrot.slane %v2279_v6, 4  ;;  %v2069_v19 = vsel %vm5710_vm15, %v4314_v1, %v2068_v5  ;;  %v5224_v6 = vld [vmem:[#allocation2 + $0x30] sm:$0xff]   ;;  %v1754_v1 = vld [vmem:[#allocation2 + $0x40] sm:$0xf] }
 0x392   : > { %4981 = vmatpush3.bf16.msra.mxu0 %v5219_v56  ;;  %3503 = vmatprep.mubr.bf16.mxu0 %v4320_v48  ;;  %v1806_v56 = vor.u32 %v1805_v53, %v1801_v52  ;;  %v1820_v48 = vor.u32 %v1819_v39, %v1816_v32  ;;  %v1830_v52 = vor.u32 %v1829_v44, %v1825_v43  ;;  %v2289_v53 = vrot.slane %v2287_v45, 4 }
 0x393   : > { %4982 = vmatprep.subr.bf16.mxu0 %v5221_v28  ;;  %3593 = vmatmul.mubr.bf16.vlgmr.msra.gmra.mrb[32].mxu1 %v5220_v36  ;;  %v5227_v36 = vld [vmem:[%s6213_s3 + $0x220] sm:$0xff]   ;;  %v2285_v41 = vsel %vm5703_vm12, %v2280_v33, %v2284_v62  ;;  %v2070_v62 = vrot.slane %v2068_v5, 4  ;;  %v2311_v39 = vshrl.u32 %v2223_v25, 16  ;;  %v1859_v44 = vrot.slane %v1857_v34, 5 }
 0x394   : > { %v1807_v18 = vrot.slane %v1806_v56, 4  ;;  %v4336_v47 = vcombine.low %v2275_v37, %v2285_v41  ;;  %v1821_v59 = vrot.slane %v1820_v48, 4  ;;  %v1750_v56 = vld [vmem:[#allocation2 + $0x30] sm:$0xf]  ;;  %v1831_v2 = vrot.slane %v1830_v52, 4 }
 0x395   : > { %v2293_v10 = vor.u32 %v2292_v60, %v2289_v53  ;;  %v1838_v23 = vshrl.u32 %v1750_v56, 16  ;;  %v1841_v24 = vshll.u32 %v1750_v56, 16  ;;  %v2009_v41 = vld [vmem:[#allocation2 + $0x3c] sm:$0xe]  ;;  %v2332_v60 = vrot.slane %v2330_v51, 5 }
 0x396   : > { %4983 = vmatpush3.bf16.msra.mxu0 %v5221_v28  ;;  %v1812_v27 = vsel %vm5703_vm12, %v1807_v18, %v1811_v54  ;;  %v2221_v28 = vld [vmem:[#allocation2 + $0x34] sm:$0xf]  ;;  %3600 = vmatprep.mubr.bf16.mxu1 %v4336_v47  ;;  %v1826_v9 = vsel %vm5703_vm12, %v1821_v59, %v1825_v43  ;;  %v1836_v16 = vsel %vm5703_vm12, %v1831_v2, %v1835_v49  ;;  %v2011_v47 = vld [vmem:[#allocation2 + $0x44] sm:$0x1]  ;;  %v2313_v49 = vrot.slane %v2311_v39, 4 }
 0x397   : > { %4984 = vmatprep.subr.bf16.mxu0 %v5223_v57  ;;  %v4304_v31 = vcombine.low %v1802_v22, %v1812_v27  ;;  %v2296_v54 = vshll.u32 %v2221_v28, 16  ;;  %v2300_v55 = vshrl.u32 %v2221_v28, 16  ;;  %v4305_v20 = vcombine.low %v1826_v9, %v1836_v16  ;;  %v2224_v28 = vld [vmem:[#allocation2 + $0x40] sm:$0xf]  ;;  %v1753_v52 = vld [vmem:[#allocation2 + $0x3c] sm:$0xf] }
 0x398   : > { %v2294_v22 = vrot.slane %v2293_v10, 4  ;;  %v1840_v32 = vrot.slane %v1838_v23, 4  ;;  %v1843_v0 = vrot.slane %v1841_v24, 5  ;;  %v2320_v45 = vshll.u32 %v2224_v28, 16 }
 0x399   : > { %3504 = vmatmul.mubr.bf16.gmra.mrb[36].mxu0 %v4304_v31  ;;  %v2298_v3 = vrot.slane %v2296_v54, 5  ;;  %v2302_v4 = vrot.slane %v2300_v55, 4  ;;  %v2324_v46 = vshrl.u32 %v2224_v28, 16  ;;  %v2317_v59 = vor.u32 %v2316_v50, %v2313_v49 }
 0x39a   : > { %4985 = vmatpush3.bf16.msra.mxu0 %v5223_v57  ;;  %3511 = vmatprep.mubr.bf16.mxu0 %v4321_v38  ;;  %v2008_v57 = vld [vmem:[#allocation2 + $0x38] sm:$0x1]  ;;  %v1844_v38 = vor.u32 %v1843_v0, %v1840_v32  ;;  %v2322_v54 = vrot.slane %v2320_v45, 5  ;;  %v1862_v5 = vshrl.u32 %v1753_v52, 16  ;;  %v1871_v63 = vshll.u32 %v1754_v1, 16 }
 0x39b   : > { %4986 = vmatprep.subr.bf16.mxu0 %v5225_v8  ;;  %3601 = vmatmul.mubr.bf16.gmra.mrb[36].mxu1 %v5222_v42  ;;  %v2071_v15 = vrot.slane %v2008_v57, 5  ;;  %v2303_v18 = vor.u32 %v2302_v4, %v2298_v3  ;;  %v2299_v31 = vsel %vm5703_vm12, %v2294_v22, %v2298_v3  ;;  %v2010_v42 = vld [vmem:[#allocation2 + $0x40] sm:$0xf]  ;;  %v2326_v55 = vrot.slane %v2324_v46, 4  ;;  %v1755_v4 = vld [vmem:[#allocation2 + $0x44] sm:$0x1] }
 0x39c   : > { %v1845_v48 = vrot.slane %v1844_v38, 4  ;;  %v4315_v57 = vrot.slane %v2009_v41, 9  ;;  %v2075_v61 = vrot.slane %v2010_v42, 5  ;;  %v2078_v3 = vrot.slane %v2011_v47, 5 }
 0x39d   : > { %v2304_v27 = vrot.slane %v2303_v18, 4  ;;  %v2072_v29 = vsel %vm5710_vm15, %v2070_v62, %v2071_v15  ;;  %v2327_v2 = vor.u32 %v2326_v55, %v2322_v54  ;;  %v2318_v10 = vrot.slane %v2317_v59, 4  ;;  %v5226_v18 = vld [vmem:[#allocation2 + $0x3c] sm:$0xff]  }
 0x39e   : > { %4987 = vmatpush3.bf16.msra.mxu0 %v5225_v8  ;;  %v1751_v8 = vld [vmem:[#allocation2 + $0x34] sm:$0xf]  ;;  %v4322_v13 = vcombine.low %v2069_v19, %v2072_v29  ;;  %v2077_v15 = vrot.slane %v2075_v61, 4  ;;  %v1864_v19 = vrot.slane %v1862_v5, 4  ;;  %v1865_v62 = vshll.u32 %v1753_v52, 16 }
 0x39f   : > { %4988 = vmatprep.subr.bf16.mxu0 %v5227_v36  ;;  %v1847_v30 = vshll.u32 %v1751_v8, 16  ;;  %v1851_v7 = vshrl.u32 %v1751_v8, 16  ;;  %v2309_v33 = vsel %vm5703_vm12, %v2304_v27, %v2308_v12  ;;  %v2226_v8 = vld [vmem:[#allocation2 + $0x48] sm:$0xf]  ;;  %v2076_v12 = vsel %vm5710_vm15, %v4315_v57, %v2075_v61  ;;  %v1757_v52 = vld [vmem:[#allocation2 + $0x4c] sm:$0xf] }
 0x3a0   : > { %v4337_v37 = vcombine.low %v2299_v31, %v2309_v33  ;;  %v2328_v16 = vrot.slane %v2327_v2, 4  ;;  %v2323_v22 = vsel %vm5703_vm12, %v2318_v10, %v2322_v54  ;;  %v2079_v23 = vsel %vm5710_vm15, %v2077_v15, %v2078_v3  ;;  %v2012_v27 = vld [vmem:[#allocation2 + $0x48] sm:$0xe]  ;;  %v2013_v31 = vld [vmem:[#allocation2 + $0x4c] sm:$0xf] }
 0x3a1   : > { %3512 = vmatmul.mubr.bf16.gmra.mrb[40].mxu0 %v4305_v20  ;;  %v1849_v17 = vrot.slane %v1847_v30, 5  ;;  %v1853_v14 = vrot.slane %v1851_v7, 4  ;;  %v2227_v20 = vld [vmem:[#allocation2 + $0x4c] sm:$0xf]  ;;  %v1875_v24 = vshrl.u32 %v1754_v1, 16  ;;  %v1881_v25 = vshll.u32 %v1755_v4, 16 }
 0x3a2   : > { %4989 = vmatpush3.bf16.msra.mxu0 %v5227_v36  ;;  %v5233_v36 = vld [vmem:[%s6213_s3 + $0x238] sm:$0xff]   ;;  %3519 = vmatprep.mubr.bf16.mxu0 %v4322_v13  ;;  %v4323_v29 = vcombine.low %v2076_v12, %v2079_v23  ;;  %v1867_v30 = vrot.slane %v1865_v62, 5  ;;  %v1873_v7 = vrot.slane %v1871_v63, 5  ;;  %v2014_v13 = vld [vmem:[#allocation2 + $0x50] sm:$0x1]  ;;  %v2335_v33 = vshrl.u32 %v2226_v8, 16 }
 0x3a3   : > { %4990 = vmatprep.subr.bf16.mxu0 %v5229_v58  ;;  %v1854_v43 = vor.u32 %v1853_v14, %v1849_v17  ;;  %3608 = vmatprep.mubr.bf16.mxu1 %v4337_v37  ;;  %v1877_v0 = vrot.slane %v1875_v24, 4  ;;  %v1883_v28 = vrot.slane %v1881_v25, 5  ;;  %v2338_v34 = vshll.u32 %v2226_v8, 16  ;;  %v2229_v2 = vld [vmem:[#allocation2 + $0x54] sm:$0xf]  ;;  %v5228_v15 = vld [vmem:[#allocation2 + $0x48] sm:$0xff]  }
 0x3a4   : > { %3609 = vmatmul.mubr.bf16.gmra.mrb[40].mxu1 %v5224_v6  ;;  %v2333_v6 = vsel %vm5703_vm12, %v2328_v16, %v2332_v60  ;;  %v1868_v14 = vor.u32 %v1867_v30, %v1864_v19  ;;  %v2344_v35 = vshll.u32 %v2227_v20, 16  ;;  %v2337_v38 = vrot.slane %v2335_v33, 4  ;;  %v2231_v19 = vld [vmem:[#allocation2 + $0x5c] sm:$0x1]  ;;  %v2015_v62 = vld [vmem:[#allocation2 + $0x54] sm:$0xe] }
 0x3a5   : > { %v1855_v53 = vrot.slane %v1854_v43, 4  ;;  %v4338_v32 = vcombine.low %v2323_v22, %v2333_v6  ;;  %v1878_v37 = vor.u32 %v1877_v0, %v1873_v7  ;;  %v4316_v40 = vrot.slane %v2012_v27, 9  ;;  %v2016_v24 = vld [vmem:[#allocation2 + $0x58] sm:$0xf]  ;;  %v2017_v25 = vld [vmem:[#allocation2 + $0x5c] sm:$0x1] }
 0x3a6   : > { %4991 = vmatpush3.bf16.msra.mxu0 %v5229_v58  ;;  %v1850_v58 = vsel %vm5703_vm12, %v1845_v48, %v1849_v17  ;;  %v1756_v17 = vld [vmem:[#allocation2 + $0x48] sm:$0xf]  ;;  %v1869_v41 = vrot.slane %v1868_v14, 4  ;;  %v2340_v42 = vrot.slane %v2338_v34, 5  ;;  %v2346_v43 = vrot.slane %v2344_v35, 5 }
 0x3a7   : > { %4992 = vmatprep.subr.bf16.mxu0 %v5231_v26  ;;  %v1860_v56 = vsel %vm5703_vm12, %v1855_v53, %v1859_v44  ;;  %3616 = vmatprep.mubr.bf16.mxu1 %v4338_v32  ;;  %v1879_v45 = vrot.slane %v1878_v37, 4  ;;  %v2082_v47 = vrot.slane %v2013_v31, 5  ;;  %v2085_v48 = vrot.slane %v2014_v13, 5  ;;  %v1759_v32 = vld [vmem:[#allocation2 + $0x54] sm:$0xf] }
 0x3a8   : > { %v4306_v9 = vcombine.low %v1850_v58, %v1860_v56  ;;  %v1874_v49 = vsel %vm5703_vm12, %v1869_v41, %v1873_v7  ;;  %v2341_v50 = vor.u32 %v2340_v42, %v2337_v38  ;;  %v1886_v53 = vshrl.u32 %v1756_v17, 16  ;;  %v1758_v58 = vld [vmem:[#allocation2 + $0x50] sm:$0x1]  ;;  %v1760_v14 = vld [vmem:[#allocation2 + $0x58] sm:$0xf] }
 0x3a9   : > { %v1884_v54 = vsel %vm5703_vm12, %v1879_v45, %v1883_v28  ;;  %v2083_v55 = vsel %vm5710_vm15, %v4316_v40, %v2082_v47  ;;  %v2084_v57 = vrot.slane %v2082_v47, 4  ;;  %v1889_v59 = vshll.u32 %v1756_v17, 16 }
 0x3aa   : > { %4993 = vmatpush3.bf16.msra.mxu0 %v5231_v26  ;;  %v2228_v26 = vld [vmem:[#allocation2 + $0x50] sm:$0x1]  ;;  %v4307_v60 = vcombine.low %v1874_v49, %v1884_v54  ;;  %v2342_v61 = vrot.slane %v2341_v50, 4  ;;  %v1888_v56 = vrot.slane %v1886_v53, 4  ;;  %v1895_v5 = vshll.u32 %v1757_v52, 16 }
 0x3ab   : > { %4994 = vmatprep.subr.bf16.mxu0 %v5233_v36  ;;  %3520 = vmatmul.mubr.bf16.gmra.mrb[44].mxu0 %v4306_v9  ;;  %v2354_v39 = vshll.u32 %v2228_v26, 16  ;;  %v2086_v3 = vsel %vm5710_vm15, %v2084_v57, %v2085_v48  ;;  %v1891_v4 = vrot.slane %v1889_v59, 5  ;;  %v1899_v8 = vshrl.u32 %v1757_v52, 16  ;;  %v2230_v9 = vld [vmem:[#allocation2 + $0x58] sm:$0xf] }
 0x3ac   : > { %3527 = vmatprep.mubr.bf16.mxu0 %v4323_v29  ;;  %3617 = vmatmul.mubr.bf16.gmra.mrb[44].mxu1 %v5226_v18  ;;  %v2347_v10 = vsel %vm5703_vm12, %v2342_v61, %v2346_v43  ;;  %v4324_v16 = vcombine.low %v2083_v55, %v2086_v3  ;;  %v1905_v18 = vshll.u32 %v1758_v58, 16  ;;  %v1897_v22 = vrot.slane %v1895_v5, 5  ;;  %v2233_v52 = vld [vmem:[#allocation2 + $0x64] sm:$0xf]  ;;  %v2234_v58 = vld [vmem:[#allocation2 + $0x68] sm:$0x1] }
 0x3ad   : > { %v2356_v46 = vrot.slane %v2354_v39, 5  ;;  %v1901_v23 = vrot.slane %v1899_v8, 4  ;;  %v2359_v27 = vshrl.u32 %v2229_v2, 16  ;;  %v2362_v6 = vshll.u32 %v2229_v2, 16  ;;  %v2019_v2 = vld [vmem:[#allocation2 + $0x64] sm:$0xf] }
 0x3ae   : > { %4995 = vmatpush3.bf16.msra.mxu0 %v5233_v36  ;;  %v2348_v36 = vshrl.u32 %v2227_v20, 16  ;;  %v1892_v20 = vor.u32 %v1891_v4, %v1888_v56  ;;  %v1907_v26 = vrot.slane %v1905_v18, 5  ;;  %v2368_v29 = vshll.u32 %v2230_v9, 16  ;;  %v2018_v56 = vld [vmem:[#allocation2 + $0x60] sm:$0xe]  ;;  %v5230_v4 = vld [vmem:[#allocation2 + $0x54] sm:$0xff]  }
 0x3af   : > { %v1902_v7 = vor.u32 %v1901_v23, %v1897_v22  ;;  %v2372_v31 = vshrl.u32 %v2230_v9, 16  ;;  %v2378_v13 = vshll.u32 %v2231_v19, 16  ;;  %v2361_v0 = vrot.slane %v2359_v27, 4  ;;  %v2020_v18 = vld [vmem:[#allocation2 + $0x68] sm:$0x1] }
 0x3b0   : > { %v2350_v44 = vrot.slane %v2348_v36, 4  ;;  %v1893_v30 = vrot.slane %v1892_v20, 4  ;;  %v2364_v28 = vrot.slane %v2362_v6, 5  ;;  %v2370_v33 = vrot.slane %v2368_v29, 5  ;;  %v1763_v27 = vld [vmem:[#allocation2 + $0x64] sm:$0xf] }
 0x3b1   : > { %v4317_v17 = vrot.slane %v2015_v62, 9  ;;  %v1903_v35 = vrot.slane %v1902_v7, 4  ;;  %v2374_v36 = vrot.slane %v2372_v31, 4  ;;  %v2380_v37 = vrot.slane %v2378_v13, 5 }
 0x3b2   : > { %v2351_v51 = vor.u32 %v2350_v44, %v2346_v43  ;;  %v1898_v34 = vsel %vm5703_vm12, %v1893_v30, %v1897_v22  ;;  %v2365_v38 = vor.u32 %v2364_v28, %v2361_v0  ;;  %v2089_v39 = vrot.slane %v2016_v24, 5  ;;  %v1761_v44 = vld [vmem:[#allocation2 + $0x5c] sm:$0x1]  ;;  %v1762_v22 = vld [vmem:[#allocation2 + $0x60] sm:$0xf] }
 0x3b3   : > { %3528 = vmatmul.mubr.bf16.gmra.mrb[48].mxu0 %v4307_v60  ;;  %v2092_v40 = vrot.slane %v2017_v25, 5  ;;  %v1910_v41 = vshrl.u32 %v1759_v32, 16  ;;  %v1908_v42 = vsel %vm5703_vm12, %v1903_v35, %v1907_v26  ;;  %v2375_v43 = vor.u32 %v2374_v36, %v2370_v33 }
 0x3b4   : > { %v2352_v1 = vrot.slane %v2351_v51, 4  ;;  %3535 = vmatprep.mubr.bf16.mxu0 %v4324_v16  ;;  %v1913_v45 = vshll.u32 %v1759_v32, 16  ;;  %v4308_v47 = vcombine.low %v1898_v34, %v1908_v42  ;;  %v2366_v48 = vrot.slane %v2365_v38, 4  ;;  %v2232_v51 = vld [vmem:[#allocation2 + $0x60] sm:$0xf] }
 0x3b5   : > { %v2090_v49 = vsel %vm5710_vm15, %v4317_v17, %v2089_v39  ;;  %v2091_v50 = vrot.slane %v2089_v39, 4  ;;  %v2376_v53 = vrot.slane %v2375_v43, 4  ;;  %v1912_v54 = vrot.slane %v1910_v41, 4  ;;  %v2235_v39 = vld [vmem:[#allocation2 + $0x6c] sm:$0xf] }
 0x3b6   : > { %v2357_v12 = vsel %vm5703_vm12, %v2352_v1, %v2356_v46  ;;  %v1919_v46 = vshll.u32 %v1760_v14, 16  ;;  %v1915_v55 = vrot.slane %v1913_v45, 5  ;;  %v2371_v59 = vsel %vm5703_vm12, %v2366_v48, %v2370_v33 }
 0x3b7   : > { %v4339_v63 = vcombine.low %v2347_v10, %v2357_v12  ;;  %v2093_v60 = vsel %vm5710_vm15, %v2091_v50, %v2092_v40  ;;  %v1923_v61 = vshrl.u32 %v1760_v14, 16  ;;  %v1929_v1 = vshll.u32 %v1761_v44, 16  ;;  %v1764_v14 = vld [vmem:[#allocation2 + $0x68] sm:$0x1]  ;;  %v2236_v44 = vld [vmem:[#allocation2 + $0x70] sm:$0xf] }
 0x3b8   : > { %v1921_v57 = vrot.slane %v1919_v46, 5  ;;  %v2381_v3 = vsel %vm5703_vm12, %v2376_v53, %v2380_v37  ;;  %v4325_v5 = vcombine.low %v2090_v49, %v2093_v60  ;;  %v1916_v8 = vor.u32 %v1915_v55, %v1912_v54  ;;  %v5232_v50 = vld [vmem:[#allocation2 + $0x60] sm:$0xff]   ;;  %v2237_v53 = vld [vmem:[#allocation2 + $0x74] sm:$0x1]  ;;  %v2470_v60 = vld [vmem:[#allocation2 + $0x18] sm:$0xe] }
 0x3b9   : > { %3624 = vmatprep.mubr.bf16.mxu1 %v4339_v63  ;;  %v2383_v9 = vshrl.u32 %v2232_v51, 16  ;;  %v4340_v10 = vcombine.low %v2371_v59, %v2381_v3  ;;  %v1925_v12 = vrot.slane %v1923_v61, 4  ;;  %v2386_v16 = vshll.u32 %v2232_v51, 16  ;;  %v2471_v61 = vld [vmem:[#allocation2 + $0x1c] sm:$0xf] }
 0x3ba   : > { %3625 = vmatmul.mubr.bf16.gmra.mrb[48].mxu1 %v5228_v15  ;;  %v1931_v15 = vrot.slane %v1929_v1, 5  ;;  %v1917_v19 = vrot.slane %v1916_v8, 4  ;;  %v2392_v63 = vshll.u32 %v2233_v52, 16  ;;  %v2396_v20 = vshrl.u32 %v2233_v52, 16 }
 0x3bb   : > { %3536 = vmatmul.mubr.bf16.gmra.mrb[52].mxu0 %v4308_v47  ;;  %v2385_v62 = vrot.slane %v2383_v9, 4  ;;  %3632 = vmatprep.mubr.bf16.mxu1 %v4340_v10  ;;  %v1926_v23 = vor.u32 %v1925_v12, %v1921_v57  ;;  %v2388_v24 = vrot.slane %v2386_v16, 5  ;;  %v2402_v25 = vshll.u32 %v2234_v58, 16  ;;  %v2473_v12 = vld [vmem:[#allocation2 + $0x24] sm:$0xe] }
 0x3bc   : > { %3543 = vmatprep.mubr.bf16.mxu0 %v4325_v5  ;;  %v4318_v26 = vrot.slane %v2018_v56, 9  ;;  %v1922_v6 = vsel %vm5703_vm12, %v1917_v19, %v1921_v57  ;;  %v2394_v29 = vrot.slane %v2392_v63, 5  ;;  %v2398_v30 = vrot.slane %v2396_v20, 4 }
 0x3bd   : > { %v2096_v7 = vrot.slane %v2019_v2, 5  ;;  %v1927_v31 = vrot.slane %v1926_v23, 4  ;;  %v2389_v13 = vor.u32 %v2388_v24, %v2385_v62  ;;  %v2404_v32 = vrot.slane %v2402_v25, 5  ;;  %v2474_v62 = vld [vmem:[#allocation2 + $0x28] sm:$0xf] }
 0x3be   : > { %v2099_v0 = vrot.slane %v2020_v18, 5  ;;  %v2399_v28 = vor.u32 %v2398_v30, %v2394_v29  ;;  %v1934_v34 = vshrl.u32 %v1762_v22, 16  ;;  %v1937_v37 = vshll.u32 %v1762_v22, 16  ;;  %v2475_v24 = vld [vmem:[#allocation2 + $0x2c] sm:$0x1] }
 0x3bf   : > { %v2097_v33 = vsel %vm5710_vm15, %v4318_v26, %v2096_v7  ;;  %v2098_v17 = vrot.slane %v2096_v7, 4  ;;  %v1932_v35 = vsel %vm5703_vm12, %v1927_v31, %v1931_v15  ;;  %v2390_v36 = vrot.slane %v2389_v13, 4  ;;  %v2477_v30 = vld [vmem:[#allocation2 + $0x34] sm:$0xf] }
 0x3c0   : > { %v1943_v38 = vshll.u32 %v1763_v27, 16  ;;  %v4309_v40 = vcombine.low %v1922_v6, %v1932_v35  ;;  %v2400_v41 = vrot.slane %v2399_v28, 4  ;;  %v1936_v43 = vrot.slane %v1934_v34, 4 }
 0x3c1   : > { %v2100_v42 = vsel %vm5710_vm15, %v2098_v17, %v2099_v0  ;;  %v2395_v45 = vsel %vm5703_vm12, %v2390_v36, %v2394_v29  ;;  %v1939_v47 = vrot.slane %v1937_v37, 5  ;;  %v1947_v51 = vshrl.u32 %v1763_v27, 16  ;;  %v2476_v29 = vld [vmem:[#allocation2 + $0x30] sm:$0xe]  ;;  %v2480_v37 = vld [vmem:[#allocation2 + $0x40] sm:$0xf] }
 0x3c2   : > { %3633 = vmatmul.mubr.bf16.gmra.mrb[52].mxu1 %v5230_v4  ;;  %v4326_v46 = vcombine.low %v2097_v33, %v2100_v42  ;;  %v1945_v48 = vrot.slane %v1943_v38, 5  ;;  %v2405_v49 = vsel %vm5703_vm12, %v2400_v41, %v2404_v32  ;;  %v1953_v52 = vshll.u32 %v1764_v14, 16  ;;  %v2472_v4 = vld [vmem:[#allocation2 + $0x20] sm:$0x1]  ;;  %v2478_v32 = vld [vmem:[#allocation2 + $0x38] sm:$0x1] }
 0x3c3   : > { %3544 = vmatmul.mubr.bf16.gmra.mrb[56].mxu0 %v4309_v40  ;;  %v2407_v54 = vshrl.u32 %v2235_v39, 16  ;;  %v4341_v55 = vcombine.low %v2395_v45, %v2405_v49  ;;  %v1940_v57 = vor.u32 %v1939_v47, %v1936_v43  ;;  %v2410_v58 = vshll.u32 %v2235_v39, 16  ;;  %v5234_v39 = vld [vmem:[#allocation2 + $0x6c] sm:$0xff]   ;;  %v2479_v45 = vld [vmem:[#allocation2 + $0x3c] sm:$0xe] }
 0x3c4   : > { %3551 = vmatprep.mubr.bf16.mxu0 %v4326_v46  ;;  %v2416_v59 = vshll.u32 %v2236_v44, 16  ;;  %v1949_v1 = vrot.slane %v1947_v51, 4  ;;  %v1955_v56 = vrot.slane %v1953_v52, 5  ;;  %v2420_v3 = vshrl.u32 %v2236_v44, 16  ;;  %v2483_v43 = vld [vmem:[#allocation2 + $0x4c] sm:$0xf] }
 0x3c5   : > { %v2409_v2 = vrot.slane %v2407_v54, 4  ;;  %3640 = vmatprep.mubr.bf16.mxu1 %v4341_v55  ;;  %v1941_v5 = vrot.slane %v1940_v57, 4  ;;  %v2412_v8 = vrot.slane %v2410_v58, 5  ;;  %v2426_v10 = vshll.u32 %v2237_v53, 16  ;;  %v2481_v46 = vld [vmem:[#allocation2 + $0x44] sm:$0x1] }
 0x3c6   : > { %v2418_v9 = vrot.slane %v2416_v59, 5  ;;  %v1950_v15 = vor.u32 %v1949_v1, %v1945_v48  ;;  %v2422_v16 = vrot.slane %v2420_v3, 4  ;;  %v4343_v18 = vrot.slane %v2470_v60, 9  ;;  %v2482_v53 = vld [vmem:[#allocation2 + $0x48] sm:$0xe] }
 0x3c7   : > { %v2520_v19 = vrot.slane %v2471_v61, 5  ;;  %v1946_v63 = vsel %vm5703_vm12, %v1941_v5, %v1945_v48  ;;  %v2413_v20 = vor.u32 %v2412_v8, %v2409_v2  ;;  %v2428_v22 = vrot.slane %v2426_v10, 5  ;;  %v2484_v54 = vld [vmem:[#allocation2 + $0x50] sm:$0x1]  ;;  %v2486_v58 = vld [vmem:[#allocation2 + $0x58] sm:$0xf] }
 0x3c8   : > { %v2523_v23 = vrot.slane %v2472_v4, 5  ;;  %v1951_v25 = vrot.slane %v1950_v15, 4  ;;  %v2423_v26 = vor.u32 %v2422_v16, %v2418_v9  ;;  %v4344_v31 = vrot.slane %v2473_v12, 9  ;;  %v2489_v3 = vld [vmem:[#allocation2 + $0x64] sm:$0xf] }
 0x3c9   : > { %v2521_v27 = vsel %vm5710_vm15, %v4343_v18, %v2520_v19  ;;  %v2522_v6 = vrot.slane %v2520_v19, 4  ;;  %v2414_v7 = vrot.slane %v2413_v20, 4  ;;  %v2527_v13 = vrot.slane %v2474_v62, 5  ;;  %v2485_v12 = vld [vmem:[#allocation2 + $0x54] sm:$0xe] }
 0x3ca   : > { %3641 = vmatmul.mubr.bf16.gmra.mrb[56].mxu1 %v5232_v50  ;;  %v1956_v0 = vsel %vm5703_vm12, %v1951_v25, %v1955_v56  ;;  %v2424_v28 = vrot.slane %v2423_v26, 4  ;;  %v2530_v17 = vrot.slane %v2475_v24, 5  ;;  %v4345_v36 = vrot.slane %v2476_v29, 9  ;;  %v2487_v15 = vld [vmem:[#allocation2 + $0x5c] sm:$0x1] }
 0x3cb   : > { %v2524_v33 = vsel %vm5710_vm15, %v2522_v6, %v2523_v23  ;;  %v4310_v14 = vcombine.low %v1946_v63, %v1956_v0  ;;  %v2419_v34 = vsel %vm5703_vm12, %v2414_v7, %v2418_v9  ;;  %v2529_v40 = vrot.slane %v2527_v13, 4  ;;  %v2488_v18 = vld [vmem:[#allocation2 + $0x60] sm:$0xe]  ;;  %v2490_v19 = vld [vmem:[#allocation2 + $0x68] sm:$0x1] }
 0x3cc   : > { %v4351_v35 = vcombine.low %v2521_v27, %v2524_v33  ;;  %v2429_v38 = vsel %vm5703_vm12, %v2424_v28, %v2428_v22  ;;  %v2534_v41 = vrot.slane %v2477_v30, 5  ;;  %v2537_v42 = vrot.slane %v2478_v32, 5  ;;  %v2492_v27 = vld [vmem:[#allocation2 + $0x70] sm:$0xf]  ;;  %v2493_v32 = vld [vmem:[#allocation2 + $0x74] sm:$0x1] }
 0x3cd   : > { %3552 = vmatmul.mubr.bf16.gmra.mrb[60].mxu0 %v4310_v14  ;;  %v4342_v44 = vcombine.low %v2419_v34, %v2429_v38  ;;  %v2528_v47 = vsel %vm5710_vm15, %v4344_v31, %v2527_v13  ;;  %v2531_v48 = vsel %vm5710_vm15, %v2529_v40, %v2530_v17  ;;  %v2541_v50 = vrot.slane %v2480_v37, 5  ;;  %v2491_v13 = vld [vmem:[#allocation2 + $0x6c] sm:$0xe]  ;;  %v6035_v40 = vld [vmem:[%s6214_s4] ss:$0 sm:$0xff] }
 0x3ce   : > { %4996 = vmatprep.mubr.bf16.mxu0 %v4351_v35  ;;  %v2536_v49 = vrot.slane %v2534_v41, 4  ;;  %v2535_v11 = vsel %vm5710_vm15, %v4345_v36, %v2534_v41  ;;  %v2548_v51 = vrot.slane %v2483_v43, 5  ;;  %v4352_v55 = vcombine.low %v2528_v47, %v2531_v48  ;;  %v5235_v36 = vld [vmem:[%s6215_s5] sm:$0xff]   ;;  %v5236_v38 = vld [vmem:[%s6215_s5 + $0x8] sm:$0xff]  }
 0x3cf   : > { %3648 = vmatprep.mubr.bf16.mxu1 %v4342_v44  ;;  %v4346_v57 = vrot.slane %v2479_v45, 9  ;;  %v2543_v60 = vrot.slane %v2541_v50, 4  ;;  %v2544_v61 = vrot.slane %v2481_v46, 5  ;;  %v4347_v1 = vrot.slane %v2482_v53, 9  ;;  %5012 = vmatprep.subr.bf16.mxu1 %v5235_v36 }
 0x3d0   : > { %v2538_v52 = vsel %vm5710_vm15, %v2536_v49, %v2537_v42  ;;  %v2550_v56 = vrot.slane %v2548_v51, 4  ;;  %v2551_v2 = vrot.slane %v2484_v54, 5  ;;  %v2555_v8 = vrot.slane %v2486_v58, 5  ;;  %5013 = vmatpush3.bf16.msra.mxu1 %v5235_v36  ;;  %v5238_v42 = vld [vmem:[%s6215_s5 + $0x18] sm:$0xff]  }
 0x3d1   : > { %v4353_v59 = vcombine.low %v2535_v11, %v2538_v52  ;;  %v2542_v4 = vsel %vm5710_vm15, %v4346_v57, %v2541_v50  ;;  %v2545_v5 = vsel %vm5710_vm15, %v2543_v60, %v2544_v61  ;;  %v2549_v9 = vsel %vm5710_vm15, %v4347_v1, %v2548_v51  ;;  %5014 = vmatprep.subr.bf16.mxu1 %v5236_v38 }
 0x3d2   : > { %3649 = vmatmul.mubr.bf16.gmra.mrb[60].mxu1 %v5234_v39  ;;  %v2552_v10 = vsel %vm5710_vm15, %v2550_v56, %v2551_v2  ;;  %v2562_v16 = vrot.slane %v2489_v3, 5  ;;  %v4354_v62 = vcombine.low %v2542_v4, %v2545_v5  ;;  %v4348_v20 = vrot.slane %v2485_v12, 9  ;;  %v5237_v39 = vld [vmem:[%s6215_s5 + $0x10] sm:$0xff]   ;;  %v5239_v3 = vld [vmem:[%s6215_s5 + $0x20] sm:$0xff]  }
 0x3d3   : > { %v4355_v63 = vcombine.low %v2549_v9, %v2552_v10  ;;  %v2557_v22 = vrot.slane %v2555_v8, 4  ;;  %v2558_v23 = vrot.slane %v2487_v15, 5  ;;  %v4349_v24 = vrot.slane %v2488_v18, 9 }
 0x3d4   : > { %v2564_v25 = vrot.slane %v2562_v16, 4  ;;  %v2565_v26 = vrot.slane %v2490_v19, 5  ;;  %v2556_v6 = vsel %vm5710_vm15, %v4348_v20, %v2555_v8  ;;  %v2569_v30 = vrot.slane %v2492_v27, 5  ;;  %5015 = vmatpush3.bf16.msra.mxu1 %v5236_v38 }
 0x3d5   : > { %4997 = vmatmul.mubr.bf16.vlgmr.msra.gmra.mrb[64].mxu0 %v4352_v55  ;;  %v2559_v29 = vsel %vm5710_vm15, %v2557_v22, %v2558_v23  ;;  %v2563_v7 = vsel %vm5710_vm15, %v4349_v24, %v2562_v16  ;;  %v4350_v33 = vrot.slane %v2491_v13, 9  ;;  %v2572_v14 = vrot.slane %v2493_v32, 5  ;;  %5016 = vmatprep.subr.bf16.mxu1 %v5237_v39 }
 0x3d6   : > { %5000 = vmatprep.mubr.bf16.mxu0 %v4353_v59  ;;  %v2566_v31 = vsel %vm5710_vm15, %v2564_v25, %v2565_v26  ;;  %v4356_v0 = vcombine.low %v2556_v6, %v2559_v29  ;;  %v2571_v17 = vrot.slane %v2569_v30, 4 }
 0x3d7   : > { %v4357_v28 = vcombine.low %v2563_v7, %v2566_v31  ;;  %v2570_v34 = vsel %vm5710_vm15, %v4350_v33, %v2569_v30  ;;  %v5240_v30 = vld [vmem:[%s6215_s5 + $0x28] sm:$0xff]  }
 0x3d8   : > { %v2573_v35 = vsel %vm5710_vm15, %v2571_v17, %v2572_v14  ;;  %5017 = vmatpush3.bf16.msra.mxu1 %v5237_v39 }
 0x3d9   : > { %v4358_v37 = vcombine.low %v2570_v34, %v2573_v35  ;;  %5018 = vmatprep.subr.bf16.mxu1 %v5238_v42 }
 0x3dc   : > { %5019 = vmatpush3.bf16.msra.mxu1 %v5238_v42 }
 0x3dd   : > { %5001 = vmatmul.mubr.bf16.gmra.mrb[68].mxu0 %v4354_v62  ;;  %5020 = vmatprep.subr.bf16.mxu1 %v5239_v3 }
 0x3de   : > { %5004 = vmatprep.mubr.bf16.mxu0 %v4355_v63 }
 0x3e0   : > { %5021 = vmatpush3.bf16.msra.mxu1 %v5239_v3 }
 0x3e1   : > { %5022 = vmatprep.subr.bf16.mxu1 %v5240_v30 }
 0x3e4   : > { %5023 = vmatpush3.bf16.msra.mxu1 %v5240_v30 }
 0x3e5   : > { %5005 = vmatmul.mubr.bf16.gmra.mrb[72].mxu0 %v4356_v0 }
 0x3e6   : > { %5008 = vmatprep.mubr.bf16.mxu0 %v4357_v28 }
 0x3ed   : > { %5009 = vmatmul.mubr.bf16.gmra.mrb[76].mxu0 %v4358_v37 }
 0x424   : > { %v4636_v21 = vpop.f32.mrb[0].mxu0 }
 0x425   : > { %v4637_v41 = vpop.f32.mrb[1].mxu0 }
 0x426   : > { %v4638_v43 = vadd.f32 %v4637_v41, %v4636_v21  ;;  %v4639_v44 = vpop.f32.mrb[2].mxu0  ;;  %v4700_v45 = vpop.f32.mrb[0].mxu1 }
 0x427   : > { %v4640_v46 = vpop.f32.mrb[3].mxu0  ;;  %v4701_v47 = vpop.f32.mrb[1].mxu1 }
 0x428   : > { %v3304_v48 = vadd.f32 %v4638_v43, %v6035_v40  ;;  %v4641_v49 = vadd.f32 %v4640_v46, %v4639_v44  ;;  %v4702_v50 = vadd.f32 %v4701_v47, %v4700_v45  ;;  %v4703_v11 = vpop.f32.mrb[2].mxu1  ;;  %v5241_v43 = vld [vmem:[%s6215_s5 + $0x30] sm:$0xff]  }
 0x429   : > { %v4704_v51 = vpop.f32.mrb[3].mxu1  ;;  %5024 = vmatprep.subr.bf16.mxu1 %v5241_v43 }
 0x42a   : > { %v3307_v52 = vadd.f32 %v4641_v49, %v6035_v40  ;;  %v6042_v53 = vadd.f32 %v4702_v50, %v3304_v48  ;;  %v4705_v54 = vadd.f32 %v4704_v51, %v4703_v11  ;;  %5025 = vmatpush3.bf16.msra.mxu1 %v5241_v43 }
 0x42c   : > { %v6044_v55 = vadd.f32 %v4705_v54, %v3307_v52  ;;  %v4642_v57 = vpop.f32.mrb[4].mxu0 }
 0x42d   : > { %v4643_v59 = vpop.f32.mrb[5].mxu0 }
 0x42e   : > { %v4706_v58 = vpop.f32.mrb[4].mxu1  ;;  %v4644_v61 = vadd.f32 %v4643_v59, %v4642_v57  ;;  %v4645_v1 = vpop.f32.mrb[6].mxu0 }
 0x42f   : > { %v4707_v60 = vpop.f32.mrb[5].mxu1  ;;  %v4646_v4 = vpop.f32.mrb[7].mxu0 }
 0x430   : > { %v4708_v56 = vadd.f32 %v4707_v60, %v4706_v58  ;;  %v4709_v2 = vpop.f32.mrb[6].mxu1  ;;  %v3312_v8 = vadd.f32 %v4644_v61, %v6035_v40  ;;  %v4647_v9 = vadd.f32 %v4646_v4, %v4645_v1  ;;  %v5242_v1 = vld [vmem:[%s6215_s5 + $0x38] sm:$0xff]  }
 0x431   : > { %v4710_v5 = vpop.f32.mrb[7].mxu1  ;;  %5026 = vmatprep.subr.bf16.mxu1 %v5242_v1 }
 0x432   : > { %v4711_v10 = vadd.f32 %v4710_v5, %v4709_v2  ;;  %v3315_v12 = vadd.f32 %v4647_v9, %v6035_v40  ;;  %v6051_v15 = vadd.f32 %v4708_v56, %v3312_v8  ;;  %5027 = vmatpush3.bf16.msra.mxu1 %v5242_v1 }
 0x434   : > { %v6053_v16 = vadd.f32 %v4711_v10, %v3315_v12  ;;  %v4648_v18 = vpop.f32.mrb[8].mxu0 }
 0x435   : > { %v4649_v62 = vpop.f32.mrb[9].mxu0 }
 0x436   : > { %v4712_v19 = vpop.f32.mrb[8].mxu1  ;;  %v4650_v20 = vadd.f32 %v4649_v62, %v4648_v18  ;;  %v4651_v22 = vpop.f32.mrb[10].mxu0 }
 0x437   : > { %v4713_v63 = vpop.f32.mrb[9].mxu1  ;;  %v4652_v25 = vpop.f32.mrb[11].mxu0 }
 0x438   : > { %v4714_v23 = vadd.f32 %v4713_v63, %v4712_v19  ;;  %v4715_v24 = vpop.f32.mrb[10].mxu1  ;;  %v3320_v27 = vadd.f32 %v4650_v20, %v6035_v40  ;;  %v4653_v6 = vadd.f32 %v4652_v25, %v4651_v22 }
 0x439   : > { %v4716_v26 = vpop.f32.mrb[11].mxu1 }
 0x43a   : > { %v4717_v29 = vadd.f32 %v4716_v26, %v4715_v24  ;;  %v3323_v7 = vadd.f32 %v4653_v6, %v6035_v40  ;;  %v6060_v31 = vadd.f32 %v4714_v23, %v3320_v27 }
 0x43c   : > { %v6062_v13 = vadd.f32 %v4717_v29, %v3323_v7  ;;  %v4654_v32 = vpop.f32.mrb[12].mxu0 }
 0x43d   : > { %v4655_v28 = vpop.f32.mrb[13].mxu0 }
 0x43e   : > { %v4718_v0 = vpop.f32.mrb[12].mxu1  ;;  %v4656_v17 = vadd.f32 %v4655_v28, %v4654_v32  ;;  %v4657_v14 = vpop.f32.mrb[14].mxu0 }
 0x43f   : > { %v4719_v33 = vpop.f32.mrb[13].mxu1  ;;  %v4658_v36 = vpop.f32.mrb[15].mxu0 }
 0x440   : > { %v4720_v34 = vadd.f32 %v4719_v33, %v4718_v0  ;;  %v4721_v35 = vpop.f32.mrb[14].mxu1  ;;  %v3328_v38 = vadd.f32 %v4656_v17, %v6035_v40  ;;  %v4659_v39 = vadd.f32 %v4658_v36, %v4657_v14 }
 0x441   : > { %v4722_v37 = vpop.f32.mrb[15].mxu1 }
 0x442   : > { %v4723_v21 = vadd.f32 %v4722_v37, %v4721_v35  ;;  %v3331_v41 = vadd.f32 %v4659_v39, %v6035_v40  ;;  %v6066_v42 = vadd.f32 %v4720_v34, %v3328_v38 }
 0x444   : > { %v6071_v44 = vadd.f32 %v4723_v21, %v3331_v41  ;;  %v4660_v45 = vpop.f32.mrb[16].mxu0 }
 0x445   : > { %v4661_v46 = vpop.f32.mrb[17].mxu0 }
 0x446   : > { %v4724_v47 = vpop.f32.mrb[16].mxu1  ;;  %v4662_v48 = vadd.f32 %v4661_v46, %v4660_v45  ;;  %v4663_v49 = vpop.f32.mrb[18].mxu0 }
 0x447   : > { %v4725_v50 = vpop.f32.mrb[17].mxu1  ;;  %v4664_v11 = vpop.f32.mrb[19].mxu0 }
 0x448   : > { %v4726_v51 = vadd.f32 %v4725_v50, %v4724_v47  ;;  %v4727_v52 = vpop.f32.mrb[18].mxu1  ;;  %v3336_v54 = vadd.f32 %v4662_v48, %v6035_v40  ;;  %v4665_v57 = vadd.f32 %v4664_v11, %v4663_v49 }
 0x449   : > { %v4728_v58 = vpop.f32.mrb[19].mxu1 }
 0x44a   : > { %v4729_v59 = vadd.f32 %v4728_v58, %v4727_v52  ;;  %v3339_v60 = vadd.f32 %v4665_v57, %v6035_v40  ;;  %v6075_v61 = vadd.f32 %v4726_v51, %v3336_v54 }
 0x44c   : > { %v6080_v56 = vadd.f32 %v4729_v59, %v3339_v60  ;;  %v4666_v2 = vpop.f32.mrb[20].mxu0 }
 0x44d   : > { %v4667_v3 = vpop.f32.mrb[21].mxu0 }
 0x44e   : > { %v4730_v4 = vpop.f32.mrb[20].mxu1  ;;  %v4668_v5 = vadd.f32 %v4667_v3, %v4666_v2  ;;  %v4669_v8 = vpop.f32.mrb[22].mxu0 }
 0x44f   : > { %v4731_v9 = vpop.f32.mrb[21].mxu1  ;;  %v4670_v10 = vpop.f32.mrb[23].mxu0 }
 0x450   : > { %v4732_v12 = vadd.f32 %v4731_v9, %v4730_v4  ;;  %v4733_v18 = vpop.f32.mrb[22].mxu1  ;;  %v3344_v19 = vadd.f32 %v4668_v5, %v6035_v40  ;;  %v4671_v62 = vadd.f32 %v4670_v10, %v4669_v8 }
 0x451   : > { %v4734_v63 = vpop.f32.mrb[23].mxu1 }
 0x452   : > { %v4735_v20 = vadd.f32 %v4734_v63, %v4733_v18  ;;  %v3347_v22 = vadd.f32 %v4671_v62, %v6035_v40  ;;  %v6084_v23 = vadd.f32 %v4732_v12, %v3344_v19 }
 0x454   : > { %v6086_v24 = vadd.f32 %v4735_v20, %v3347_v22  ;;  %v4672_v25 = vpop.f32.mrb[24].mxu0 }
 0x455   : > { %v4673_v26 = vpop.f32.mrb[25].mxu0 }
 0x456   : > { %v4674_v27 = vadd.f32 %v4673_v26, %v4672_v25  ;;  %v4675_v6 = vpop.f32.mrb[26].mxu0  ;;  %v4736_v29 = vpop.f32.mrb[24].mxu1 }
 0x457   : > { %v4676_v30 = vpop.f32.mrb[27].mxu0  ;;  %v4737_v7 = vpop.f32.mrb[25].mxu1 }
 0x458   : > { %v3352_v32 = vadd.f32 %v4674_v27, %v6035_v40  ;;  %v4677_v0 = vadd.f32 %v4676_v30, %v4675_v6  ;;  %v4738_v28 = vadd.f32 %v4737_v7, %v4736_v29  ;;  %v4739_v33 = vpop.f32.mrb[26].mxu1 }
 0x459   : > { %v4740_v17 = vpop.f32.mrb[27].mxu1 }
 0x45a   : > { %v3355_v14 = vadd.f32 %v4677_v0, %v6035_v40  ;;  %v6090_v34 = vadd.f32 %v4738_v28, %v3352_v32  ;;  %v4741_v35 = vadd.f32 %v4740_v17, %v4739_v33 }
 0x45c   : > { %v6092_v36 = vadd.f32 %v4741_v35, %v3355_v14  ;;  %v4678_v37 = vpop.f32.mrb[28].mxu0 }
 0x45d   : > { %v4679_v38 = vpop.f32.mrb[29].mxu0 }
 0x45e   : > { %v4680_v39 = vadd.f32 %v4679_v38, %v4678_v37  ;;  %v4681_v21 = vpop.f32.mrb[30].mxu0  ;;  %v4742_v41 = vpop.f32.mrb[28].mxu1 }
 0x45f   : > { %v4682_v43 = vpop.f32.mrb[31].mxu0  ;;  %v4743_v45 = vpop.f32.mrb[29].mxu1 }
 0x460   : > { %v3360_v46 = vadd.f32 %v4680_v39, %v6035_v40  ;;  %v4683_v47 = vadd.f32 %v4682_v43, %v4681_v21  ;;  %v4744_v48 = vadd.f32 %v4743_v45, %v4742_v41  ;;  %v4745_v49 = vpop.f32.mrb[30].mxu1 }
 0x461   : > { %v4746_v50 = vpop.f32.mrb[31].mxu1 }
 0x462   : > { %v3363_v11 = vadd.f32 %v4683_v47, %v6035_v40  ;;  %v6096_v51 = vadd.f32 %v4744_v48, %v3360_v46  ;;  %v4747_v52 = vadd.f32 %v4746_v50, %v4745_v49 }
 0x464   : > { %v6098_v54 = vadd.f32 %v4747_v52, %v3363_v11  ;;  %v4764_v57 = vpop.f32.mrb[32].mxu0 }
 0x465   : > { %v4765_v58 = vpop.f32.mrb[33].mxu0 }
 0x466   : > { %v4766_v59 = vadd.f32 %v4765_v58, %v4764_v57  ;;  %v4767_v60 = vpop.f32.mrb[34].mxu0  ;;  %v4828_v4 = vpop.f32.mrb[32].mxu1 }
 0x467   : > { %v4768_v1 = vpop.f32.mrb[35].mxu0  ;;  %v4829_v8 = vpop.f32.mrb[33].mxu1 }
 0x468   : > { %v3498_v2 = vadd.f32 %v4766_v59, %v6042_v53  ;;  %v4769_v3 = vadd.f32 %v4768_v1, %v4767_v60  ;;  %v4830_v9 = vadd.f32 %v4829_v8, %v4828_v4  ;;  %v4831_v10 = vpop.f32.mrb[34].mxu1 }
 0x469   : > { %v4832_v40 = vpop.f32.mrb[35].mxu1 }
 0x46a   : > { %v3501_v5 = vadd.f32 %v4769_v3, %v6044_v55  ;;  %v4833_v12 = vadd.f32 %v4832_v40, %v4831_v10  ;;  %v6102_v18 = vadd.f32 %v4830_v9, %v3498_v2 }
 0x46c   : > { %v4770_v19 = vpop.f32.mrb[36].mxu0  ;;  %v6104_v62 = vadd.f32 %v4833_v12, %v3501_v5 }
 0x46d   : > { %v4771_v63 = vpop.f32.mrb[37].mxu0 }
 0x46e   : > { %v4772_v20 = vadd.f32 %v4771_v63, %v4770_v19  ;;  %v4773_v22 = vpop.f32.mrb[38].mxu0  ;;  %v4834_v27 = vpop.f32.mrb[36].mxu1 }
 0x46f   : > { %v4774_v25 = vpop.f32.mrb[39].mxu0  ;;  %v4835_v6 = vpop.f32.mrb[37].mxu1 }
 0x470   : > { %v3506_v53 = vadd.f32 %v4772_v20, %v6051_v15  ;;  %v4775_v26 = vadd.f32 %v4774_v25, %v4773_v22  ;;  %v4836_v29 = vadd.f32 %v4835_v6, %v4834_v27  ;;  %v4837_v30 = vpop.f32.mrb[38].mxu1 }
 0x471   : > { %v4838_v7 = vpop.f32.mrb[39].mxu1 }
 0x472   : > { %v3509_v55 = vadd.f32 %v4775_v26, %v6053_v16  ;;  %v4839_v32 = vadd.f32 %v4838_v7, %v4837_v30  ;;  %v6108_v0 = vadd.f32 %v4836_v29, %v3506_v53 }
 0x474   : > { %v4776_v28 = vpop.f32.mrb[40].mxu0  ;;  %v6110_v17 = vadd.f32 %v4839_v32, %v3509_v55 }
 0x475   : > { %v4777_v33 = vpop.f32.mrb[41].mxu0 }
 0x476   : > { %v4778_v14 = vadd.f32 %v4777_v33, %v4776_v28  ;;  %v4779_v35 = vpop.f32.mrb[42].mxu0 }
 0x477   : > { %v4780_v37 = vpop.f32.mrb[43].mxu0  ;;  %v4840_v39 = vpop.f32.mrb[40].mxu1 }
 0x478   : > { %v3514_v15 = vadd.f32 %v4778_v14, %v6060_v31  ;;  %v4781_v38 = vadd.f32 %v4780_v37, %v4779_v35  ;;  %v4841_v21 = vpop.f32.mrb[41].mxu1 }
 0x479   : > { %v4842_v41 = vadd.f32 %v4841_v21, %v4840_v39  ;;  %v4843_v43 = vpop.f32.mrb[42].mxu1 }
 0x47a   : > { %v3517_v16 = vadd.f32 %v4781_v38, %v6062_v13  ;;  %v4844_v45 = vpop.f32.mrb[43].mxu1 }
 0x47b   : > { %v4845_v46 = vadd.f32 %v4844_v45, %v4843_v43  ;;  %v6114_v47 = vadd.f32 %v4842_v41, %v3514_v15 }
 0x47d   : > { %v6116_v50 = vadd.f32 %v4845_v46, %v3517_v16 }
 0x47e   : > { %v4782_v48 = vpop.f32.mrb[44].mxu0 }
 0x47f   : > { %v4783_v49 = vpop.f32.mrb[45].mxu0  ;;  %v4846_v59 = vpop.f32.mrb[44].mxu1 }
 0x480   : > { %v4784_v11 = vadd.f32 %v4783_v49, %v4782_v48  ;;  %v4785_v52 = vpop.f32.mrb[46].mxu0  ;;  %v4847_v60 = vpop.f32.mrb[45].mxu1 }
 0x481   : > { %v4786_v57 = vpop.f32.mrb[47].mxu0  ;;  %v4848_v1 = vadd.f32 %v4847_v60, %v4846_v59  ;;  %v4849_v2 = vpop.f32.mrb[46].mxu1 }
 0x482   : > { %v3522_v31 = vadd.f32 %v4784_v11, %v6066_v42  ;;  %v4787_v58 = vadd.f32 %v4786_v57, %v4785_v52  ;;  %v4850_v3 = vpop.f32.mrb[47].mxu1 }
 0x483   : > { %v4851_v4 = vadd.f32 %v4850_v3, %v4849_v2 }
 0x484   : > { %v3525_v13 = vadd.f32 %v4787_v58, %v6071_v44  ;;  %v6120_v5 = vadd.f32 %v4848_v1, %v3522_v31 }
 0x486   : > { %v4788_v8 = vpop.f32.mrb[48].mxu0  ;;  %v6122_v9 = vadd.f32 %v4851_v4, %v3525_v13 }
 0x487   : > { %v4789_v10 = vpop.f32.mrb[49].mxu0 }
 0x488   : > { %v4790_v40 = vadd.f32 %v4789_v10, %v4788_v8  ;;  %v4791_v12 = vpop.f32.mrb[50].mxu0 }
 0x489   : > { %v4792_v19 = vpop.f32.mrb[51].mxu0 }
 0x48a   : > { %v3530_v42 = vadd.f32 %v4790_v40, %v6075_v61  ;;  %v4793_v20 = vadd.f32 %v4792_v19, %v4791_v12 }
 0x48c   : > { %v3533_v44 = vadd.f32 %v4793_v20, %v6080_v56 }
 0x48d   : > { %v4852_v63 = vpop.f32.mrb[48].mxu1 }
 0x48e   : > { %v4853_v22 = vpop.f32.mrb[49].mxu1  ;;  %v4794_v6 = vpop.f32.mrb[52].mxu0 }
 0x48f   : > { %v4854_v25 = vadd.f32 %v4853_v22, %v4852_v63  ;;  %v4855_v53 = vpop.f32.mrb[50].mxu1  ;;  %v4795_v30 = vpop.f32.mrb[53].mxu0 }
 0x490   : > { %v4856_v26 = vpop.f32.mrb[51].mxu1  ;;  %v4796_v7 = vadd.f32 %v4795_v30, %v4794_v6  ;;  %v4797_v32 = vpop.f32.mrb[54].mxu0 }
 0x491   : > { %v4857_v27 = vadd.f32 %v4856_v26, %v4855_v53  ;;  %v6126_v55 = vadd.f32 %v4854_v25, %v3530_v42  ;;  %v4798_v28 = vpop.f32.mrb[55].mxu0 }
 0x492   : > { %v3538_v61 = vadd.f32 %v4796_v7, %v6084_v23  ;;  %v4799_v33 = vadd.f32 %v4798_v28, %v4797_v32 }
 0x493   : > { %v6128_v29 = vadd.f32 %v4857_v27, %v3533_v44 }
 0x494   : > { %v3541_v35 = vadd.f32 %v4799_v33, %v6086_v24 }
 0x495   : > { %v4858_v14 = vpop.f32.mrb[52].mxu1 }
 0x496   : > { %v4859_v56 = vpop.f32.mrb[53].mxu1  ;;  %v4800_v21 = vpop.f32.mrb[56].mxu0 }
 0x497   : > { %v4860_v37 = vadd.f32 %v4859_v56, %v4858_v14  ;;  %v4861_v15 = vpop.f32.mrb[54].mxu1  ;;  %v4801_v43 = vpop.f32.mrb[57].mxu0 }
 0x498   : > { %v4862_v38 = vpop.f32.mrb[55].mxu1  ;;  %v4802_v45 = vadd.f32 %v4801_v43, %v4800_v21  ;;  %v4803_v46 = vpop.f32.mrb[58].mxu0 }
 0x499   : > { %v4863_v39 = vadd.f32 %v4862_v38, %v4861_v15  ;;  %v6132_v16 = vadd.f32 %v4860_v37, %v3538_v61  ;;  %v4804_v48 = vpop.f32.mrb[59].mxu0 }
 0x49a   : > { %v3546_v23 = vadd.f32 %v4802_v45, %v6090_v34  ;;  %v4805_v11 = vadd.f32 %v4804_v48, %v4803_v46 }
 0x49b   : > { %v6134_v41 = vadd.f32 %v4863_v39, %v3541_v35 }
 0x49c   : > { %v3549_v24 = vadd.f32 %v4805_v11, %v6092_v36 }
 0x49d   : > { %v4864_v49 = vpop.f32.mrb[56].mxu1 }
 0x49e   : > { %v4865_v52 = vpop.f32.mrb[57].mxu1 }
 0x49f   : > { %v4866_v57 = vadd.f32 %v4865_v52, %v4864_v49  ;;  %v4867_v31 = vpop.f32.mrb[58].mxu1 }
 0x4a0   : > { %v4868_v58 = vpop.f32.mrb[59].mxu1  ;;  %v4806_v1 = vpop.f32.mrb[60].mxu0 }
 0x4a1   : > { %v4869_v59 = vadd.f32 %v4868_v58, %v4867_v31  ;;  %v6138_v13 = vadd.f32 %v4866_v57, %v3546_v23  ;;  %v4807_v2 = vpop.f32.mrb[61].mxu0 }
 0x4a2   : > { %v4808_v3 = vadd.f32 %v4807_v2, %v4806_v1  ;;  %v4809_v4 = vpop.f32.mrb[62].mxu0 }
 0x4a3   : > { %v6140_v60 = vadd.f32 %v4869_v59, %v3549_v24  ;;  %v4810_v10 = vpop.f32.mrb[63].mxu0 }
 0x4a4   : > { %v3554_v34 = vadd.f32 %v4808_v3, %v6096_v51  ;;  %v4811_v40 = vadd.f32 %v4810_v10, %v4809_v4 }
 0x4a5   : > { %v4870_v8 = vpop.f32.mrb[60].mxu1 }
 0x4a6   : > { %v4871_v12 = vpop.f32.mrb[61].mxu1  ;;  %v3557_v42 = vadd.f32 %v4811_v40, %v6098_v54 }
 0x4a7   : > { %v4872_v19 = vadd.f32 %v4871_v12, %v4870_v8  ;;  %v4873_v36 = vpop.f32.mrb[62].mxu1 }
 0x4a8   : > { %v4874_v63 = vpop.f32.mrb[63].mxu1  ;;  %v4998_v44 = vpop.f32.mrb[64].mxu0 }
 0x4a9   : > { %v4875_v20 = vadd.f32 %v4874_v63, %v4873_v36  ;;  %v3651_v22 = vadd.f32 %v4872_v19, %v3554_v34  ;;  %v3700_v25 = vadd.f32 %v4998_v44, %v6108_v0  ;;  %v3691_v53 = vpop.f32.mrb[65].mxu0  ;;  %v4572_v36 = vld [vmem:[%s5397_s17 + $0x8] sm:$0xff]  }
 0x4aa   : > { %v3692_v27 = vadd.f32 %v3691_v53, %v6102_v18  ;;  %v4999_v6 = vpop.f32.mrb[66].mxu0  ;;  %v4505_v63 = vunpack.c.l.bf16 %v4572_v36 }
 0x4ab   : > { %v3654_v26 = vadd.f32 %v4875_v20, %v3557_v42  ;;  %v3703_v30 = vadd.f32 %v4999_v6, %v6110_v17  ;;  %v3694_v51 = vpop.f32.mrb[67].mxu0  ;;  %v3756_v32 = vmax.f32 %v3700_v25, 0.0  ;;  %v4500_v42 = vld [vmem:[%s5397_s17] sm:$0xff]   ;;  %v4506_v25 = vunpack.c.h.bf16 %v4572_v36 }
 0x4ac   : > { %v3695_v7 = vadd.f32 %v3694_v51, %v6104_v62  ;;  %v3754_v61 = vmax.f32 %v3692_v27, 0.0  ;;  %v4502_v27 = vunpack.c.h.bf16 %v4500_v42 }
 0x4ad   : > { %v3757_v28 = vmax.f32 %v3703_v30, 0.0 }
 0x4ae   : > { %v3755_v54 = vmax.f32 %v3695_v7, 0.0 }
 0x4af   : > { %v3771_v33 = vpack.c.bf16 %v3757_v28, %v3756_v32  ;;  %v4574_v28 = vld [vmem:[%s5397_s17 + $0x18] sm:$0xff]  }
 0x4b0   : > { %v3770_v14 = vpack.c.bf16 %v3755_v54, %v3754_v61  ;;  %v5002_v35 = vpop.f32.mrb[68].mxu0  ;;  %v4573_v54 = vld [vmem:[%s5397_s17 + $0x10] sm:$0xff]  }
 0x4b1   : > { %v3716_v56 = vadd.f32 %v5002_v35, %v6120_v5  ;;  %v3707_v0 = vpop.f32.mrb[69].mxu0 }
 0x4b2   : > { %v3708_v37 = vadd.f32 %v3707_v0, %v6114_v47  ;;  %v5003_v15 = vpop.f32.mrb[70].mxu0  ;;  %5028 = vmatprep.mubr.bf16.mxu1 %v3770_v14 }
 0x4b3   : > { %v3719_v18 = vadd.f32 %v5003_v15, %v6122_v9  ;;  %v3710_v17 = vpop.f32.mrb[71].mxu0  ;;  %5029 = vmatmul.mubr.bf16.vlgmr.msra.gmra.mrb[64].mxu1 %v3771_v33  ;;  %v3760_v38 = vmax.f32 %v3716_v56, 0.0  ;;  %v4513_v56 = vunpack.c.l.bf16 %v4574_v28 }
 0x4b4   : > { %v3711_v62 = vadd.f32 %v3710_v17, %v6116_v50  ;;  %v3758_v21 = vmax.f32 %v3708_v37, 0.0 }
 0x4b5   : > { %v3761_v39 = vmax.f32 %v3719_v18, 0.0  ;;  %v4509_v18 = vunpack.c.l.bf16 %v4573_v54 }
 0x4b6   : > { %v3759_v43 = vmax.f32 %v3711_v62, 0.0 }
 0x4b7   : > { %v3773_v45 = vpack.c.bf16 %v3761_v39, %v3760_v38  ;;  %v4514_v39 = vunpack.c.h.bf16 %v4574_v28 }
 0x4b8   : > { %v3772_v46 = vpack.c.bf16 %v3759_v43, %v3758_v21  ;;  %v5006_v48 = vpop.f32.mrb[72].mxu0 }
 0x4b9   : > { %v3732_v5 = vadd.f32 %v5006_v48, %v6132_v16  ;;  %v3723_v23 = vpop.f32.mrb[73].mxu0 }
 0x4ba   : > { %v3724_v47 = vadd.f32 %v3723_v23, %v6126_v55  ;;  %v5007_v49 = vpop.f32.mrb[74].mxu0  ;;  %5032 = vmatprep.mubr.bf16.mxu1 %v3772_v46  ;;  %v4510_v46 = vunpack.c.h.bf16 %v4573_v54 }
 0x4bb   : > { %v3735_v9 = vadd.f32 %v5007_v49, %v6134_v41  ;;  %v3726_v11 = vpop.f32.mrb[75].mxu0  ;;  %5033 = vmatmul.mubr.bf16.gmra.mrb[68].mxu1 %v3773_v45  ;;  %v3764_v52 = vmax.f32 %v3732_v5, 0.0 }
 0x4bc   : > { %v3727_v50 = vadd.f32 %v3726_v11, %v6128_v29  ;;  %v3762_v57 = vmax.f32 %v3724_v47, 0.0 }
 0x4bd   : > { %v3765_v24 = vmax.f32 %v3735_v9, 0.0  ;;  %v4576_v9 = vld [vmem:[%s5397_s17 + $0x28] sm:$0xff]  }
 0x4be   : > { %v3763_v31 = vmax.f32 %v3727_v50, 0.0  ;;  %v4575_v50 = vld [vmem:[%s5397_s17 + $0x20] sm:$0xff]  }
 0x4bf   : > { %v3775_v58 = vpack.c.bf16 %v3765_v24, %v3764_v52 }
 0x4c0   : > { %v3774_v59 = vpack.c.bf16 %v3763_v31, %v3762_v57  ;;  %v5010_v1 = vpop.f32.mrb[76].mxu0  ;;  %v4521_v31 = vunpack.c.l.bf16 %v4576_v9 }
 0x4c1   : > { %v3748_v2 = vadd.f32 %v5010_v1, %v3651_v22  ;;  %v3739_v16 = vpop.f32.mrb[77].mxu0 }
 0x4c2   : > { %v3740_v55 = vadd.f32 %v3739_v16, %v6138_v13  ;;  %v5011_v3 = vpop.f32.mrb[78].mxu0  ;;  %5036 = vmatprep.mubr.bf16.mxu1 %v3774_v59  ;;  %v6163_v13 = vld [vmem:[%s6216_s6] ss:$0 sm:$0xff] }
 0x4c3   : > { %v3751_v41 = vadd.f32 %v5011_v3, %v3654_v26  ;;  %v3742_v4 = vpop.f32.mrb[79].mxu0  ;;  %5037 = vmatmul.mubr.bf16.gmra.mrb[72].mxu1 %v3775_v58  ;;  %v3768_v8 = vmax.f32 %v3748_v2, 0.0  ;;  %v4517_v2 = vunpack.c.l.bf16 %v4575_v50 }
 0x4c4   : > { %v3743_v29 = vadd.f32 %v3742_v4, %v6140_v60  ;;  %v3766_v34 = vmax.f32 %v3740_v55, 0.0  ;;  %v4501_v60 = vunpack.c.l.bf16 %v4500_v42  ;;  %v4578_v42 = vld [vmem:[%s5397_s17 + $0x38] sm:$0xff]  }
 0x4c5   : > { %v3769_v10 = vmax.f32 %v3751_v41, 0.0  ;;  %v4522_v41 = vunpack.c.h.bf16 %v4576_v9 }
 0x4c6   : > { %v3767_v40 = vmax.f32 %v3743_v29, 0.0 }
 0x4c7   : > { %v3777_v12 = vpack.c.bf16 %v3769_v10, %v3768_v8  ;;  %v4518_v10 = vunpack.c.h.bf16 %v4575_v50 }
 0x4c8   : > { %v3776_v19 = vpack.c.bf16 %v3767_v40, %v3766_v34 }
 0x4ca   : > { %5040 = vmatprep.mubr.bf16.mxu1 %v3776_v19 }
 0x4cb   : > { %5041 = vmatmul.mubr.bf16.gmra.mrb[76].mxu1 %v3777_v12 }
 0x586   : > { %v5030_v20 = vpop.f32.mrb[64].mxu1 }
 0x587   : > { %v3928_v22 = vadd.f32 %v5030_v20, %v6163_v13  ;;  %v3919_v44 = vpop.f32.mrb[65].mxu1  ;;  %v4577_v20 = vld [vmem:[%s5397_s17 + $0x30] sm:$0xff]  }
 0x588   : > { %v3920_v53 = vadd.f32 %v6163_v13, %v3919_v44  ;;  %v5031_v26 = vpop.f32.mrb[66].mxu1 }
 0x589   : > { %v3984_v6 = vadd.f32 %v4505_v63, %v3928_v22  ;;  %v3931_v30 = vadd.f32 %v5031_v26, %v6163_v13  ;;  %v3922_v51 = vpop.f32.mrb[67].mxu1 }
 0x58a   : > { %v3982_v7 = vadd.f32 %v4501_v60, %v3920_v53  ;;  %v3923_v32 = vadd.f32 %v6163_v13, %v3922_v51 }
 0x58b   : > { %v3985_v61 = vadd.f32 %v4506_v25, %v3931_v30  ;;  %v4000_v14 = vmax.f32 %v3984_v6, 0.0  ;;  %v4529_v25 = vunpack.c.l.bf16 %v4578_v42  ;;  %v4525_v6 = vunpack.c.l.bf16 %v4577_v20 }
 0x58c   : > { %v3983_v33 = vadd.f32 %v4502_v27, %v3923_v32  ;;  %v3998_v0 = vmax.f32 %v3982_v7, 0.0  ;;  %v4530_v32 = vunpack.c.h.bf16 %v4578_v42 }
 0x58d   : > { %v4001_v35 = vmax.f32 %v3985_v61, 0.0 }
 0x58e   : > { %v3999_v37 = vmax.f32 %v3983_v33, 0.0  ;;  %v5034_v15 = vpop.f32.mrb[68].mxu1  ;;  %v4526_v33 = vunpack.c.h.bf16 %v4577_v20 }
 0x58f   : > { %v4539_v17 = vpack.c.bf16 %v4001_v35, %v4000_v14  ;;  %v3944_v62 = vadd.f32 %v5034_v15, %v6163_v13  ;;  %v3935_v38 = vpop.f32.mrb[69].mxu1 }
 0x590   : > { %v4534_v21 = vpack.c.bf16 %v3999_v37, %v3998_v0  ;;  %v3936_v43 = vadd.f32 %v6163_v13, %v3935_v38  ;;  %v5035_v45 = vpop.f32.mrb[70].mxu1 }
 0x591   : > { %4579 = vst [vmem:[%s5394_s16 + $0x8] sm:$0xff] %v4539_v17   ;;  %v3988_v48 = vadd.f32 %v4513_v56, %v3944_v62  ;;  %v3947_v5 = vadd.f32 %v5035_v45, %v6163_v13  ;;  %v3938_v23 = vpop.f32.mrb[71].mxu1 }
 0x592   : > { %4535 = vst [vmem:[%s5394_s16] sm:$0xff] %v4534_v21   ;;  %v3986_v47 = vadd.f32 %v4509_v18, %v3936_v43  ;;  %v3939_v49 = vadd.f32 %v6163_v13, %v3938_v23 }
 0x593   : > { %v3989_v11 = vadd.f32 %v4514_v39, %v3947_v5  ;;  %v4004_v24 = vmax.f32 %v3988_v48, 0.0 }
 0x594   : > { %v3987_v52 = vadd.f32 %v4510_v46, %v3939_v49  ;;  %v4002_v58 = vmax.f32 %v3986_v47, 0.0 }
 0x595   : > { %v4005_v57 = vmax.f32 %v3989_v11, 0.0 }
 0x596   : > { %v4003_v59 = vmax.f32 %v3987_v52, 0.0  ;;  %v5038_v1 = vpop.f32.mrb[72].mxu1 }
 0x597   : > { %v4549_v16 = vpack.c.bf16 %v4005_v57, %v4004_v24  ;;  %v3960_v55 = vadd.f32 %v5038_v1, %v6163_v13  ;;  %v3951_v3 = vpop.f32.mrb[73].mxu1 }
 0x598   : > { %v4544_v4 = vpack.c.bf16 %v4003_v59, %v4002_v58  ;;  %v3952_v29 = vadd.f32 %v6163_v13, %v3951_v3  ;;  %v5039_v8 = vpop.f32.mrb[74].mxu1 }
 0x599   : > { %4581 = vst [vmem:[%s5394_s16 + $0x18] sm:$0xff] %v4549_v16   ;;  %v3992_v34 = vadd.f32 %v4521_v31, %v3960_v55  ;;  %v3963_v40 = vadd.f32 %v5039_v8, %v6163_v13  ;;  %v3954_v12 = vpop.f32.mrb[75].mxu1 }
 0x59a   : > { %4580 = vst [vmem:[%s5394_s16 + $0x10] sm:$0xff] %v4544_v4   ;;  %v3990_v19 = vadd.f32 %v4517_v2, %v3952_v29  ;;  %v3955_v36 = vadd.f32 %v6163_v13, %v3954_v12 }
 0x59b   : > { %v3993_v63 = vadd.f32 %v4522_v41, %v3963_v40  ;;  %v4008_v22 = vmax.f32 %v3992_v34, 0.0 }
 0x59c   : > { %v3991_v60 = vadd.f32 %v4518_v10, %v3955_v36  ;;  %v4006_v53 = vmax.f32 %v3990_v19, 0.0 }
 0x59d   : > { %v4009_v44 = vmax.f32 %v3993_v63, 0.0 }
 0x59e   : > { %v4007_v26 = vmax.f32 %v3991_v60, 0.0  ;;  %v5042_v27 = vpop.f32.mrb[76].mxu1 }
 0x59f   : > { %v4559_v30 = vpack.c.bf16 %v4009_v44, %v4008_v22  ;;  %v3976_v51 = vadd.f32 %v5042_v27, %v6163_v13  ;;  %v3967_v7 = vpop.f32.mrb[77].mxu1 }
 0x5a0   : > { %v4554_v28 = vpack.c.bf16 %v4007_v26, %v4006_v53  ;;  %v3968_v61 = vadd.f32 %v6163_v13, %v3967_v7  ;;  %v5043_v54 = vpop.f32.mrb[78].mxu1 }
 0x5a1   : > { %4583 = vst [vmem:[%s5394_s16 + $0x28] sm:$0xff] %v4559_v30   ;;  %v3996_v14 = vadd.f32 %v4529_v25, %v3976_v51  ;;  %v3979_v35 = vadd.f32 %v5043_v54, %v6163_v13  ;;  %v3970_v56 = vpop.f32.mrb[79].mxu1 }
 0x5a2   : > { %4582 = vst [vmem:[%s5394_s16 + $0x20] sm:$0xff] %v4554_v28   ;;  %v3994_v0 = vadd.f32 %v4525_v6, %v3968_v61  ;;  %v3971_v37 = vadd.f32 %v6163_v13, %v3970_v56 }
 0x5a3   : > { %v3997_v15 = vadd.f32 %v4530_v32, %v3979_v35  ;;  %v4012_v17 = vmax.f32 %v3996_v14, 0.0 }
 0x5a4   : > { %v3995_v18 = vadd.f32 %v4526_v33, %v3971_v37  ;;  %v4010_v38 = vmax.f32 %v3994_v0, 0.0 }
 0x5a5   : > { %v4013_v62 = vmax.f32 %v3997_v15, 0.0 }
 0x5a6   : > { %v4011_v39 = vmax.f32 %v3995_v18, 0.0 }
 0x5a7   : > { %v4569_v21 = vpack.c.bf16 %v4013_v62, %v4012_v17 }
 0x5a8   : > { %v4564_v43 = vpack.c.bf16 %v4011_v39, %v4010_v38 }
 0x5a9   : > { %4585 = vst [vmem:[%s5394_s16 + $0x38] sm:$0xff] %v4569_v21  }
 0x5aa   : > { %4584 = vst [vmem:[%s5394_s16 + $0x30] sm:$0xff] %v4564_v43  }
 0x5ab PF: > { %s17_s28 = sadd.s32 1, %s5281_s28   ;;  %s6228_s24 = smov %s5273_s26 }
 0x5ac   : > { %p14_p9 = scmp.ge.s32.totalorder %s17_s28, 6   ;;  %s6229_s25 = smov %s5277_s27 }
 0x5ad   : > { %s6230_s26 = smov %s6233_s29  ;;  %s6231_s27 = smov %s6237_s30 }
 0x5ae   :  { %16 = sbr.rel (!%p14_p9) target bundleno = 3 (0x3), region = 93 }

</bundles_post_ra>
